<compile_context>
chip_gen: v7x
topology: tpu7x:2x2x1
jax: 0.10.0
libtpu: 0.0.40
codegen_flags: <defaults>
</compile_context>

<pallas_src>
import functools

import jax
import jax.numpy as jnp
from jax.experimental import pallas as pl
from jax.experimental.pallas import tpu as pltpu

HID_PAD = 128        # lane-padded feature width (one full vreg lane row)
M_BLK_TARGET = 128   # target node rows per grid block (fills the MXU M dim)


def gin_encoder_kernel(adj_ref, feat_ref, gmean_ref, w1_ref, w2_ref, bn_ref,
                       out_ref, *, n_layer, hid_dim):
    m, hp = feat_ref.shape

    a = adj_ref[...]          # [M, M] bf16 block-diagonal (A + I) for GPB graphs
    gmean = gmean_ref[...]    # [M, M] f32 block-diagonal (1/N) group-mean operator
    x = feat_ref[...]         # [M, HP] f32, zero-padded lanes

    lane = jax.lax.broadcasted_iota(jnp.int32, (m, hp), 1)
    packed = jnp.zeros((m, hp), jnp.float32)
    row_max = jnp.full((m, 1), -jnp.inf, jnp.float32)

    for l in range(n_layer):              # static unroll over layers
        w1 = w1_ref[l]                    # [HP, HP] bf16 (stored bf16 in HBM)
        w2 = w2_ref[l]
        bnp = bn_ref[l]                   # [8, HP] f32: rows = b1, b2, gamma, beta
        b1 = bnp[0:1, :]
        b2 = bnp[1:2, :]
        gamma = bnp[2:3, :]               # padded lanes are 0
        beta = bnp[3:4, :]

        # GINConv('sum'), eps = 0, self term folded: h = (A + I) @ x
        h = jnp.dot(a, x.astype(jnp.bfloat16), preferred_element_type=jnp.float32)

        # apply_func: Linear -> ReLU -> Linear, then encoder-level ReLU
        h1 = jnp.maximum(jnp.dot(h.astype(jnp.bfloat16), w1,
                                 preferred_element_type=jnp.float32) + b1, 0.0)
        h2 = jnp.dot(h1.astype(jnp.bfloat16), w2,
                     preferred_element_type=jnp.float32) + b2
        h3 = jnp.maximum(h2, 0.0)

        # Per-graph BatchNorm1d (training-mode batch stats, biased variance,
        # eps=1e-5, two-pass form).  gmean @ v gives every node its own graph's
        # mean already broadcast to its row, so the whole thing stays 2D.
        mean = jnp.dot(gmean, h3, preferred_element_type=jnp.float32)
        d = h3 - mean
        var = jnp.dot(gmean, d * d, preferred_element_type=jnp.float32)
        scale = gamma * jax.lax.rsqrt(var + 1e-5)   # 0 on padded lanes (gamma=0)
        shift = beta - mean * scale
        y = h3 * scale + shift                      # exactly 0 on padded lanes

        # running per-node max over the real hid_dim lanes (for SortPooling k=1)
        y_real = jnp.where(lane < hid_dim, y, -jnp.inf)
        row_max = jnp.maximum(row_max, jnp.max(y_real, axis=1, keepdims=True))

        # place this layer's hid_dim real lanes at lane offset l*hid_dim
        # (padded lanes of y are exactly zero, so rotate-and-add == concat)
        packed = packed + (y if l == 0 else pltpu.roll(y, l * hid_dim, axis=1))

        x = y                                       # next layer input

    # stash the per-node row-max in the spare lane n_layer*hid_dim
    packed = packed + jnp.where(lane == n_layer * hid_dim, row_max, 0.0)
    out_ref[...] = packed                           # lane-dense [M, 128] store


def _pad_mat(w, hp):
    return jnp.zeros((hp, hp), jnp.float32).at[:w.shape[0], :w.shape[1]].set(w)


def _bn_block(p, hp):
    """Merge b1 / b2 / gamma / beta into one zero-padded [8, HP] tile."""
    b1, b2, gamma, beta = p[1], p[3], p[4], p[5]
    blk = jnp.zeros((8, hp), jnp.float32)
    blk = blk.at[0, :b1.shape[-1]].set(b1[0])
    blk = blk.at[1, :b2.shape[-1]].set(b2[0])
    blk = blk.at[2, :gamma.shape[-1]].set(gamma[0])
    blk = blk.at[3, :beta.shape[-1]].set(beta[0])
    return blk


def gin_encoder_forward(adj, feat, params, hid_dim):
    """Batched forward.  adj: [G, N, N] dense A[dst, src], feat: [G, N, in_dim].

    Each graph uses its own BatchNorm batch statistics, i.e. the result equals
    running the torch module once per graph.
    Returns (global_emb [G, L*hid], local_emb [G, N, L*hid]).
    """
    g, n, _ = adj.shape
    n_layer = len(params)
    hp = HID_PAD
    assert n_layer * hid_dim + 1 <= hp, "n_layer * hid_dim must be < HID_PAD"

    gpb = max(1, M_BLK_TARGET // n)   # graphs packed per grid block
    m_blk = gpb * n                   # node rows per block (MXU M dimension)
    # TODO(synk): ragged graph sizes / m_blk not a multiple of 8 would need
    #             per-node masking of the BN stats; fixed N assumed here.
    assert m_blk % 8 == 0, "graphs_per_block * N must be a multiple of 8"
    nb = -(-g // gpb)                 # number of grid blocks
    gp = nb * gpb                     # graphs incl. zero-padded empty graphs

    # pad the batch with empty graphs, pad feature lanes to HP
    adj_p = jnp.zeros((gp, n, n), jnp.float32).at[:g].set(adj.astype(jnp.float32))
    feat_p = (jnp.zeros((gp, n, hp), jnp.float32)
              .at[:g, :, :feat.shape[-1]].set(feat.astype(jnp.float32)))

    # fold the GIN self term (A + I) and pack gpb graphs block-diagonally so the
    # aggregation is a single [M,M]@[M,HP] matmul per block (0/1 -> exact bf16).
    adj_si = adj_p + jnp.eye(n, dtype=jnp.float32)[None]
    a4 = adj_si.reshape(nb, gpb, n, n)
    bd = jnp.einsum('bpij,pq->bpiqj', a4, jnp.eye(gpb, dtype=jnp.float32))
    adj_blk = bd.reshape(nb * m_blk, m_blk).astype(jnp.bfloat16)

    feat_blk = feat_p.reshape(nb * m_blk, hp)

    # block-diagonal per-graph mean operator; identical for every block, stays
    # resident in VMEM via a constant index_map.
    gid = jnp.arange(m_blk) // n
    gmean = (gid[:, None] == gid[None, :]).astype(jnp.float32) / jnp.float32(n)

    # weights stored in bf16 (halves the dominant DMA); zero padding keeps
    # padded lanes exactly zero through every layer.
    w1s = jnp.stack([_pad_mat(p[0], hp) for p in params]).astype(jnp.bfloat16)
    w2s = jnp.stack([_pad_mat(p[2], hp) for p in params]).astype(jnp.bfloat16)
    bns = jnp.stack([_bn_block(p, hp) for p in params])      # [L, 8, HP] f32

    kernel = functools.partial(gin_encoder_kernel,
                               n_layer=n_layer, hid_dim=hid_dim)
    out = pl.pallas_call(
        kernel,
        out_shape=jax.ShapeDtypeStruct((nb * m_blk, hp), jnp.float32),
        grid=(nb,),
        in_specs=[
            pl.BlockSpec((m_blk, m_blk), lambda b: (b, 0)),        # adjacency blk
            pl.BlockSpec((m_blk, hp), lambda b: (b, 0)),           # feature blk
            pl.BlockSpec((m_blk, m_blk), lambda b: (0, 0)),        # gmean (resident)
            pl.BlockSpec((n_layer, hp, hp), lambda b: (0, 0, 0)),  # W1 (resident)
            pl.BlockSpec((n_layer, hp, hp), lambda b: (0, 0, 0)),  # W2 (resident)
            pl.BlockSpec((n_layer, 8, hp), lambda b: (0, 0, 0)),   # biases + BN
        ],
        out_specs=pl.BlockSpec((m_blk, hp), lambda b: (b, 0)),
        compiler_params=pltpu.CompilerParams(
            dimension_semantics=("parallel",),       # use both TCs on v7x
            vmem_limit_bytes=16 * 1024 * 1024),      # sized for 128-row blocks
    )(adj_blk, feat_blk, gmean, w1s, w2s, bns)

    out3 = out.reshape(gp, n, hp)[:g]
    local_emb = out3[:, :, :n_layer * hid_dim]          # [G, N, L*hid]
    row_max = out3[:, :, n_layer * hid_dim]             # [G, N] (from the kernel)

    # SortPooling(k=1) per graph: pick the node whose largest feature value is
    # maximal, return its feature vector sorted ascending.
    # TODO(synk): sort has no clean Mosaic/Pallas TPU lowering; only the single
    #             selected row per graph is sorted in plain JAX.
    top = jnp.argmax(row_max, axis=1)                   # [G]
    top_rows = local_emb[jnp.arange(g), top]            # [G, L*hid]
    global_emb = jnp.sort(top_rows, axis=-1)
    return global_emb, local_emb


def init_params(key, in_dim, hid_dim, n_layer):
    """Deterministic synthetic parameters (shapes match the torch module)."""
    params = []
    for i in range(n_layer):
        n_in = in_dim if i == 0 else hid_dim
        key, k1, k2, k3, k4 = jax.random.split(key, 5)
        w1 = (jax.random.normal(k1, (n_in, hid_dim), jnp.float32)
              / jnp.sqrt(jnp.float32(n_in)))
        b1 = 0.01 * jax.random.normal(k2, (1, hid_dim), jnp.float32)
        w2 = (jax.random.normal(k3, (hid_dim, hid_dim), jnp.float32)
              / jnp.sqrt(jnp.float32(hid_dim)))
        b2 = 0.01 * jax.random.normal(k4, (1, hid_dim), jnp.float32)
        gamma = jnp.ones((1, hid_dim), jnp.float32)   # BatchNorm1d weight
        beta = jnp.zeros((1, hid_dim), jnp.float32)   # BatchNorm1d bias
        params.append((w1, b1, w2, b2, gamma, beta))
    return params


def reference_forward(adj, feat, params):
    """Single-graph plain-JAX reference (same bf16 matmul operands as kernel)."""
    n = adj.shape[0]
    a16 = (adj + jnp.eye(n, dtype=adj.dtype)).astype(jnp.bfloat16)
    xs = []
    x = feat
    for (w1, b1, w2, b2, gamma, beta) in params:
        h = jnp.dot(a16, x.astype(jnp.bfloat16),
                    preferred_element_type=jnp.float32)
        h1 = jnp.maximum(
            jnp.dot(h.astype(jnp.bfloat16), w1.astype(jnp.bfloat16),
                    preferred_element_type=jnp.float32) + b1, 0.0)
        h2 = jnp.dot(h1.astype(jnp.bfloat16), w2.astype(jnp.bfloat16),
                     preferred_element_type=jnp.float32) + b2
        h3 = jnp.maximum(h2, 0.0)
        mean = jnp.mean(h3, axis=0, keepdims=True)
        var = jnp.mean((h3 - mean) ** 2, axis=0, keepdims=True)
        y = gamma * (h3 - mean) * jax.lax.rsqrt(var + 1e-5) + beta
        xs.append(y)
        x = y
    local = jnp.concatenate(xs, axis=1)
    srt = jnp.sort(local, axis=-1)
    top = jnp.argmax(srt[:, -1])
    glob = jax.lax.dynamic_slice_in_dim(srt, top, 1, axis=0)
    return glob, local


if __name__ == "__main__":
    G, N, IN_DIM, HID_DIM, N_LAYER = 16, 16, 8, 32, 3

    key = jax.random.PRNGKey(0)
    k_adj, k_feat, k_par = jax.random.split(key, 3)

    # Deterministic small graphs: dense adjacency A[dst, src], no self loops.
    adj = (jax.random.uniform(k_adj, (G, N, N)) < 0.3).astype(jnp.float32)
    adj = adj * (1.0 - jnp.eye(N, dtype=jnp.float32))[None]

    feat = jax.random.normal(k_feat, (G, N, IN_DIM), jnp.float32)
    params = init_params(k_par, IN_DIM, HID_DIM, N_LAYER)

    global_emb, local_emb = gin_encoder_forward(adj, feat, params, HID_DIM)
    jax.block_until_ready((global_emb, local_emb))

    assert global_emb.shape == (G, N_LAYER * HID_DIM), global_emb.shape
    assert local_emb.shape == (G, N, N_LAYER * HID_DIM), local_emb.shape
    assert jnp.all(jnp.isfinite(global_emb)) and jnp.all(jnp.isfinite(local_emb))

    # Per-graph parity check against the plain-JAX reference.
    for gi in range(G):
        ref_g, ref_l = reference_forward(adj[gi], feat[gi], params)
        assert jnp.allclose(local_emb[gi], ref_l, atol=3e-2, rtol=3e-2), (
            gi, float(jnp.max(jnp.abs(local_emb[gi] - ref_l))))
        assert jnp.allclose(global_emb[gi], ref_g[0], atol=3e-2, rtol=3e-2), (
            gi, float(jnp.max(jnp.abs(global_emb[gi] - ref_g[0]))))

    print("KERNEL_OK")
</pallas_src>

<mosaic_0001>
module attributes {stable_mosaic.version = 11 : i64} {
  func.func @gin_encoder_kernel(%arg0: i32, %arg1: memref<128x128xbf16, #tpu.memory_space<vmem>>, %arg2: memref<128x128xf32, #tpu.memory_space<vmem>>, %arg3: memref<128x128xf32, #tpu.memory_space<vmem>>, %arg4: memref<3x128x128xbf16, #tpu.memory_space<vmem>>, %arg5: memref<3x128x128xbf16, #tpu.memory_space<vmem>>, %arg6: memref<3x8x128xf32, #tpu.memory_space<vmem>>, %arg7: memref<128x128xf32, #tpu.memory_space<vmem>>) attributes {dimension_semantics = [#tpu.dimension_semantics<parallel>], iteration_bounds = array<i64: 2>, scalar_prefetch = 0 : i64, scratch_operands = 0 : i64, tpu.core_type = #tpu.core_type<tc>, window_params = [{transform_indices = @transform_0, window_bounds = array<i64: 128, 128>}, {transform_indices = @transform_1, window_bounds = array<i64: 128, 128>}, {pipeline_mode = #tpu.pipeline_mode<synchronous>, transform_indices = @transform_2, window_bounds = array<i64: 128, 128>}, {pipeline_mode = #tpu.pipeline_mode<synchronous>, transform_indices = @transform_3, window_bounds = array<i64: 3, 128, 128>}, {pipeline_mode = #tpu.pipeline_mode<synchronous>, transform_indices = @transform_4, window_bounds = array<i64: 3, 128, 128>}, {pipeline_mode = #tpu.pipeline_mode<synchronous>, transform_indices = @transform_5, window_bounds = array<i64: 3, 8, 128>}, {transform_indices = @transform_6, window_bounds = array<i64: 128, 128>}]} {
    %c0 = arith.constant 0 : index
    %c0_0 = arith.constant 0 : index
    %0 = vector.load %arg1[%c0, %c0_0] : memref<128x128xbf16, #tpu.memory_space<vmem>>, vector<128x128xbf16>
    %c0_1 = arith.constant 0 : index
    %c0_2 = arith.constant 0 : index
    %1 = vector.load %arg3[%c0_1, %c0_2] : memref<128x128xf32, #tpu.memory_space<vmem>>, vector<128x128xf32>
    %c0_3 = arith.constant 0 : index
    %c0_4 = arith.constant 0 : index
    %2 = vector.load %arg2[%c0_3, %c0_4] : memref<128x128xf32, #tpu.memory_space<vmem>>, vector<128x128xf32>
    %3 = tpu.iota {dimensions = array<i32: 1>} : vector<128x128xi32>
    %cst = arith.constant 0.000000e+00 : f32
    %4 = vector.broadcast %cst : f32 to vector<128x128xf32>
    %cst_5 = arith.constant 0xFF800000 : f32
    %5 = vector.broadcast %cst_5 : f32 to vector<128x1xf32>
    %c0_6 = arith.constant 0 : index
    %c0_7 = arith.constant 0 : index
    %c0_8 = arith.constant 0 : index
    %6 = vector.load %arg4[%c0_6, %c0_7, %c0_8] : memref<3x128x128xbf16, #tpu.memory_space<vmem>>, vector<1x128x128xbf16>
    %7 = vector.shape_cast %6 : vector<1x128x128xbf16> to vector<128x128xbf16>
    %c0_9 = arith.constant 0 : index
    %c0_10 = arith.constant 0 : index
    %c0_11 = arith.constant 0 : index
    %8 = vector.load %arg5[%c0_9, %c0_10, %c0_11] : memref<3x128x128xbf16, #tpu.memory_space<vmem>>, vector<1x128x128xbf16>
    %9 = vector.shape_cast %8 : vector<1x128x128xbf16> to vector<128x128xbf16>
    %c0_12 = arith.constant 0 : index
    %c0_13 = arith.constant 0 : index
    %c0_14 = arith.constant 0 : index
    %10 = vector.load %arg6[%c0_12, %c0_13, %c0_14] : memref<3x8x128xf32, #tpu.memory_space<vmem>>, vector<1x8x128xf32>
    %11 = vector.shape_cast %10 : vector<1x8x128xf32> to vector<8x128xf32>
    %12 = vector.extract_strided_slice %11 {offsets = [0, 0], sizes = [1, 128], strides = [1, 1]} : vector<8x128xf32> to vector<1x128xf32>
    %13 = vector.extract_strided_slice %11 {offsets = [1, 0], sizes = [1, 128], strides = [1, 1]} : vector<8x128xf32> to vector<1x128xf32>
    %14 = vector.extract_strided_slice %11 {offsets = [2, 0], sizes = [1, 128], strides = [1, 1]} : vector<8x128xf32> to vector<1x128xf32>
    %15 = vector.extract_strided_slice %11 {offsets = [3, 0], sizes = [1, 128], strides = [1, 1]} : vector<8x128xf32> to vector<1x128xf32>
    %16 = arith.truncf %2 : vector<128x128xf32> to vector<128x128xbf16>
    %cst_15 = arith.constant dense<0.000000e+00> : vector<128x128xf32>
    %17 = tpu.matmul %0, %16, %cst_15 {dimension_numbers = #tpu.dot_dimension_numbers<[1], [0], [0], [1], [0, 0, 1, 1], [], []>} : vector<128x128xbf16>, vector<128x128xbf16>, vector<128x128xf32> -> vector<128x128xf32>
    %18 = arith.truncf %17 : vector<128x128xf32> to vector<128x128xbf16>
    %cst_16 = arith.constant dense<0.000000e+00> : vector<128x128xf32>
    %19 = tpu.matmul %18, %7, %cst_16 {dimension_numbers = #tpu.dot_dimension_numbers<[1], [0], [0], [1], [0, 0, 1, 1], [], []>} : vector<128x128xbf16>, vector<128x128xbf16>, vector<128x128xf32> -> vector<128x128xf32>
    %20 = vector.broadcast %12 : vector<1x128xf32> to vector<128x128xf32>
    %21 = arith.addf %19, %20 : vector<128x128xf32>
    %cst_17 = arith.constant 0.000000e+00 : f32
    %22 = vector.broadcast %cst_17 : f32 to vector<128x128xf32>
    %23 = arith.maximumf %21, %22 : vector<128x128xf32>
    %24 = arith.truncf %23 : vector<128x128xf32> to vector<128x128xbf16>
    %cst_18 = arith.constant dense<0.000000e+00> : vector<128x128xf32>
    %25 = tpu.matmul %24, %9, %cst_18 {dimension_numbers = #tpu.dot_dimension_numbers<[1], [0], [0], [1], [0, 0, 1, 1], [], []>} : vector<128x128xbf16>, vector<128x128xbf16>, vector<128x128xf32> -> vector<128x128xf32>
    %26 = vector.broadcast %13 : vector<1x128xf32> to vector<128x128xf32>
    %27 = arith.addf %25, %26 : vector<128x128xf32>
    %cst_19 = arith.constant 0.000000e+00 : f32
    %28 = vector.broadcast %cst_19 : f32 to vector<128x128xf32>
    %29 = arith.maximumf %27, %28 : vector<128x128xf32>
    %cst_20 = arith.constant dense<0.000000e+00> : vector<128x128xf32>
    %30 = tpu.matmul %1, %29, %cst_20 {dimension_numbers = #tpu.dot_dimension_numbers<[1], [0], [0], [1], [0, 0, 1, 1], [], []>} : vector<128x128xf32>, vector<128x128xf32>, vector<128x128xf32> -> vector<128x128xf32>
    %31 = arith.subf %29, %30 : vector<128x128xf32>
    %32 = arith.mulf %31, %31 : vector<128x128xf32>
    %cst_21 = arith.constant dense<0.000000e+00> : vector<128x128xf32>
    %33 = tpu.matmul %1, %32, %cst_21 {dimension_numbers = #tpu.dot_dimension_numbers<[1], [0], [0], [1], [0, 0, 1, 1], [], []>} : vector<128x128xf32>, vector<128x128xf32>, vector<128x128xf32> -> vector<128x128xf32>
    %cst_22 = arith.constant 9.99999974E-6 : f32
    %34 = vector.broadcast %cst_22 : f32 to vector<128x128xf32>
    %35 = arith.addf %33, %34 : vector<128x128xf32>
    %36 = math.rsqrt %35 : vector<128x128xf32>
    %37 = vector.broadcast %14 : vector<1x128xf32> to vector<128x128xf32>
    %38 = arith.mulf %37, %36 : vector<128x128xf32>
    %39 = arith.mulf %30, %38 : vector<128x128xf32>
    %40 = vector.broadcast %15 : vector<1x128xf32> to vector<128x128xf32>
    %41 = arith.subf %40, %39 : vector<128x128xf32>
    %42 = arith.mulf %29, %38 : vector<128x128xf32>
    %43 = arith.addf %42, %41 : vector<128x128xf32>
    %c32_i32 = arith.constant 32 : i32
    %44 = vector.broadcast %c32_i32 : i32 to vector<128x128xi32>
    %45 = arith.cmpi slt, %3, %44 : vector<128x128xi32>
    %cst_23 = arith.constant 0xFF800000 : f32
    %46 = vector.broadcast %cst_23 : f32 to vector<128x128xf32>
    %47 = arith.select %45, %43, %46 : vector<128x128xi1>, vector<128x128xf32>
    %cst_24 = arith.constant dense<0xFF800000> : vector<128xf32>
    %48 = vector.multi_reduction <maximumf>, %47, %cst_24 [1] : vector<128x128xf32> to vector<128xf32>
    %49 = vector.shape_cast %48 : vector<128xf32> to vector<128x1xf32>
    %50 = arith.maximumf %5, %49 : vector<128x1xf32>
    %51 = arith.addf %4, %43 : vector<128x128xf32>
    %c1 = arith.constant 1 : index
    %c0_25 = arith.constant 0 : index
    %c0_26 = arith.constant 0 : index
    %52 = vector.load %arg4[%c1, %c0_25, %c0_26] : memref<3x128x128xbf16, #tpu.memory_space<vmem>>, vector<1x128x128xbf16>
    %53 = vector.shape_cast %52 : vector<1x128x128xbf16> to vector<128x128xbf16>
    %c1_27 = arith.constant 1 : index
    %c0_28 = arith.constant 0 : index
    %c0_29 = arith.constant 0 : index
    %54 = vector.load %arg5[%c1_27, %c0_28, %c0_29] : memref<3x128x128xbf16, #tpu.memory_space<vmem>>, vector<1x128x128xbf16>
    %55 = vector.shape_cast %54 : vector<1x128x128xbf16> to vector<128x128xbf16>
    %c1_30 = arith.constant 1 : index
    %c0_31 = arith.constant 0 : index
    %c0_32 = arith.constant 0 : index
    %56 = vector.load %arg6[%c1_30, %c0_31, %c0_32] : memref<3x8x128xf32, #tpu.memory_space<vmem>>, vector<1x8x128xf32>
    %57 = vector.shape_cast %56 : vector<1x8x128xf32> to vector<8x128xf32>
    %58 = vector.extract_strided_slice %57 {offsets = [0, 0], sizes = [1, 128], strides = [1, 1]} : vector<8x128xf32> to vector<1x128xf32>
    %59 = vector.extract_strided_slice %57 {offsets = [1, 0], sizes = [1, 128], strides = [1, 1]} : vector<8x128xf32> to vector<1x128xf32>
    %60 = vector.extract_strided_slice %57 {offsets = [2, 0], sizes = [1, 128], strides = [1, 1]} : vector<8x128xf32> to vector<1x128xf32>
    %61 = vector.extract_strided_slice %57 {offsets = [3, 0], sizes = [1, 128], strides = [1, 1]} : vector<8x128xf32> to vector<1x128xf32>
    %62 = arith.truncf %43 : vector<128x128xf32> to vector<128x128xbf16>
    %cst_33 = arith.constant dense<0.000000e+00> : vector<128x128xf32>
    %63 = tpu.matmul %0, %62, %cst_33 {dimension_numbers = #tpu.dot_dimension_numbers<[1], [0], [0], [1], [0, 0, 1, 1], [], []>} : vector<128x128xbf16>, vector<128x128xbf16>, vector<128x128xf32> -> vector<128x128xf32>
    %64 = arith.truncf %63 : vector<128x128xf32> to vector<128x128xbf16>
    %cst_34 = arith.constant dense<0.000000e+00> : vector<128x128xf32>
    %65 = tpu.matmul %64, %53, %cst_34 {dimension_numbers = #tpu.dot_dimension_numbers<[1], [0], [0], [1], [0, 0, 1, 1], [], []>} : vector<128x128xbf16>, vector<128x128xbf16>, vector<128x128xf32> -> vector<128x128xf32>
    %66 = vector.broadcast %58 : vector<1x128xf32> to vector<128x128xf32>
    %67 = arith.addf %65, %66 : vector<128x128xf32>
    %cst_35 = arith.constant 0.000000e+00 : f32
    %68 = vector.broadcast %cst_35 : f32 to vector<128x128xf32>
    %69 = arith.maximumf %67, %68 : vector<128x128xf32>
    %70 = arith.truncf %69 : vector<128x128xf32> to vector<128x128xbf16>
    %cst_36 = arith.constant dense<0.000000e+00> : vector<128x128xf32>
    %71 = tpu.matmul %70, %55, %cst_36 {dimension_numbers = #tpu.dot_dimension_numbers<[1], [0], [0], [1], [0, 0, 1, 1], [], []>} : vector<128x128xbf16>, vector<128x128xbf16>, vector<128x128xf32> -> vector<128x128xf32>
    %72 = vector.broadcast %59 : vector<1x128xf32> to vector<128x128xf32>
    %73 = arith.addf %71, %72 : vector<128x128xf32>
    %cst_37 = arith.constant 0.000000e+00 : f32
    %74 = vector.broadcast %cst_37 : f32 to vector<128x128xf32>
    %75 = arith.maximumf %73, %74 : vector<128x128xf32>
    %cst_38 = arith.constant dense<0.000000e+00> : vector<128x128xf32>
    %76 = tpu.matmul %1, %75, %cst_38 {dimension_numbers = #tpu.dot_dimension_numbers<[1], [0], [0], [1], [0, 0, 1, 1], [], []>} : vector<128x128xf32>, vector<128x128xf32>, vector<128x128xf32> -> vector<128x128xf32>
    %77 = arith.subf %75, %76 : vector<128x128xf32>
    %78 = arith.mulf %77, %77 : vector<128x128xf32>
    %cst_39 = arith.constant dense<0.000000e+00> : vector<128x128xf32>
    %79 = tpu.matmul %1, %78, %cst_39 {dimension_numbers = #tpu.dot_dimension_numbers<[1], [0], [0], [1], [0, 0, 1, 1], [], []>} : vector<128x128xf32>, vector<128x128xf32>, vector<128x128xf32> -> vector<128x128xf32>
    %cst_40 = arith.constant 9.99999974E-6 : f32
    %80 = vector.broadcast %cst_40 : f32 to vector<128x128xf32>
    %81 = arith.addf %79, %80 : vector<128x128xf32>
    %82 = math.rsqrt %81 : vector<128x128xf32>
    %83 = vector.broadcast %60 : vector<1x128xf32> to vector<128x128xf32>
    %84 = arith.mulf %83, %82 : vector<128x128xf32>
    %85 = arith.mulf %76, %84 : vector<128x128xf32>
    %86 = vector.broadcast %61 : vector<1x128xf32> to vector<128x128xf32>
    %87 = arith.subf %86, %85 : vector<128x128xf32>
    %88 = arith.mulf %75, %84 : vector<128x128xf32>
    %89 = arith.addf %88, %87 : vector<128x128xf32>
    %c32_i32_41 = arith.constant 32 : i32
    %90 = vector.broadcast %c32_i32_41 : i32 to vector<128x128xi32>
    %91 = arith.cmpi slt, %3, %90 : vector<128x128xi32>
    %cst_42 = arith.constant 0xFF800000 : f32
    %92 = vector.broadcast %cst_42 : f32 to vector<128x128xf32>
    %93 = arith.select %91, %89, %92 : vector<128x128xi1>, vector<128x128xf32>
    %cst_43 = arith.constant dense<0xFF800000> : vector<128xf32>
    %94 = vector.multi_reduction <maximumf>, %93, %cst_43 [1] : vector<128x128xf32> to vector<128xf32>
    %95 = vector.shape_cast %94 : vector<128xf32> to vector<128x1xf32>
    %96 = arith.maximumf %50, %95 : vector<128x1xf32>
    %c32_i32_44 = arith.constant 32 : i32
    %97 = tpu.dynamic_rotate %89 by %c32_i32_44 dim 1 : vector<128x128xf32>, i32 -> vector<128x128xf32>
    %98 = arith.addf %51, %97 : vector<128x128xf32>
    %c2 = arith.constant 2 : index
    %c0_45 = arith.constant 0 : index
    %c0_46 = arith.constant 0 : index
    %99 = vector.load %arg4[%c2, %c0_45, %c0_46] : memref<3x128x128xbf16, #tpu.memory_space<vmem>>, vector<1x128x128xbf16>
    %100 = vector.shape_cast %99 : vector<1x128x128xbf16> to vector<128x128xbf16>
    %c2_47 = arith.constant 2 : index
    %c0_48 = arith.constant 0 : index
    %c0_49 = arith.constant 0 : index
    %101 = vector.load %arg5[%c2_47, %c0_48, %c0_49] : memref<3x128x128xbf16, #tpu.memory_space<vmem>>, vector<1x128x128xbf16>
    %102 = vector.shape_cast %101 : vector<1x128x128xbf16> to vector<128x128xbf16>
    %c2_50 = arith.constant 2 : index
    %c0_51 = arith.constant 0 : index
    %c0_52 = arith.constant 0 : index
    %103 = vector.load %arg6[%c2_50, %c0_51, %c0_52] : memref<3x8x128xf32, #tpu.memory_space<vmem>>, vector<1x8x128xf32>
    %104 = vector.shape_cast %103 : vector<1x8x128xf32> to vector<8x128xf32>
    %105 = vector.extract_strided_slice %104 {offsets = [0, 0], sizes = [1, 128], strides = [1, 1]} : vector<8x128xf32> to vector<1x128xf32>
    %106 = vector.extract_strided_slice %104 {offsets = [1, 0], sizes = [1, 128], strides = [1, 1]} : vector<8x128xf32> to vector<1x128xf32>
    %107 = vector.extract_strided_slice %104 {offsets = [2, 0], sizes = [1, 128], strides = [1, 1]} : vector<8x128xf32> to vector<1x128xf32>
    %108 = vector.extract_strided_slice %104 {offsets = [3, 0], sizes = [1, 128], strides = [1, 1]} : vector<8x128xf32> to vector<1x128xf32>
    %109 = arith.truncf %89 : vector<128x128xf32> to vector<128x128xbf16>
    %cst_53 = arith.constant dense<0.000000e+00> : vector<128x128xf32>
    %110 = tpu.matmul %0, %109, %cst_53 {dimension_numbers = #tpu.dot_dimension_numbers<[1], [0], [0], [1], [0, 0, 1, 1], [], []>} : vector<128x128xbf16>, vector<128x128xbf16>, vector<128x128xf32> -> vector<128x128xf32>
    %111 = arith.truncf %110 : vector<128x128xf32> to vector<128x128xbf16>
    %cst_54 = arith.constant dense<0.000000e+00> : vector<128x128xf32>
    %112 = tpu.matmul %111, %100, %cst_54 {dimension_numbers = #tpu.dot_dimension_numbers<[1], [0], [0], [1], [0, 0, 1, 1], [], []>} : vector<128x128xbf16>, vector<128x128xbf16>, vector<128x128xf32> -> vector<128x128xf32>
    %113 = vector.broadcast %105 : vector<1x128xf32> to vector<128x128xf32>
    %114 = arith.addf %112, %113 : vector<128x128xf32>
    %cst_55 = arith.constant 0.000000e+00 : f32
    %115 = vector.broadcast %cst_55 : f32 to vector<128x128xf32>
    %116 = arith.maximumf %114, %115 : vector<128x128xf32>
    %117 = arith.truncf %116 : vector<128x128xf32> to vector<128x128xbf16>
    %cst_56 = arith.constant dense<0.000000e+00> : vector<128x128xf32>
    %118 = tpu.matmul %117, %102, %cst_56 {dimension_numbers = #tpu.dot_dimension_numbers<[1], [0], [0], [1], [0, 0, 1, 1], [], []>} : vector<128x128xbf16>, vector<128x128xbf16>, vector<128x128xf32> -> vector<128x128xf32>
    %119 = vector.broadcast %106 : vector<1x128xf32> to vector<128x128xf32>
    %120 = arith.addf %118, %119 : vector<128x128xf32>
    %cst_57 = arith.constant 0.000000e+00 : f32
    %121 = vector.broadcast %cst_57 : f32 to vector<128x128xf32>
    %122 = arith.maximumf %120, %121 : vector<128x128xf32>
    %cst_58 = arith.constant dense<0.000000e+00> : vector<128x128xf32>
    %123 = tpu.matmul %1, %122, %cst_58 {dimension_numbers = #tpu.dot_dimension_numbers<[1], [0], [0], [1], [0, 0, 1, 1], [], []>} : vector<128x128xf32>, vector<128x128xf32>, vector<128x128xf32> -> vector<128x128xf32>
    %124 = arith.subf %122, %123 : vector<128x128xf32>
    %125 = arith.mulf %124, %124 : vector<128x128xf32>
    %cst_59 = arith.constant dense<0.000000e+00> : vector<128x128xf32>
    %126 = tpu.matmul %1, %125, %cst_59 {dimension_numbers = #tpu.dot_dimension_numbers<[1], [0], [0], [1], [0, 0, 1, 1], [], []>} : vector<128x128xf32>, vector<128x128xf32>, vector<128x128xf32> -> vector<128x128xf32>
    %cst_60 = arith.constant 9.99999974E-6 : f32
    %127 = vector.broadcast %cst_60 : f32 to vector<128x128xf32>
    %128 = arith.addf %126, %127 : vector<128x128xf32>
    %129 = math.rsqrt %128 : vector<128x128xf32>
    %130 = vector.broadcast %107 : vector<1x128xf32> to vector<128x128xf32>
    %131 = arith.mulf %130, %129 : vector<128x128xf32>
    %132 = arith.mulf %123, %131 : vector<128x128xf32>
    %133 = vector.broadcast %108 : vector<1x128xf32> to vector<128x128xf32>
    %134 = arith.subf %133, %132 : vector<128x128xf32>
    %135 = arith.mulf %122, %131 : vector<128x128xf32>
    %136 = arith.addf %135, %134 : vector<128x128xf32>
    %c32_i32_61 = arith.constant 32 : i32
    %137 = vector.broadcast %c32_i32_61 : i32 to vector<128x128xi32>
    %138 = arith.cmpi slt, %3, %137 : vector<128x128xi32>
    %cst_62 = arith.constant 0xFF800000 : f32
    %139 = vector.broadcast %cst_62 : f32 to vector<128x128xf32>
    %140 = arith.select %138, %136, %139 : vector<128x128xi1>, vector<128x128xf32>
    %cst_63 = arith.constant dense<0xFF800000> : vector<128xf32>
    %141 = vector.multi_reduction <maximumf>, %140, %cst_63 [1] : vector<128x128xf32> to vector<128xf32>
    %142 = vector.shape_cast %141 : vector<128xf32> to vector<128x1xf32>
    %143 = arith.maximumf %96, %142 : vector<128x1xf32>
    %c64_i32 = arith.constant 64 : i32
    %144 = tpu.dynamic_rotate %136 by %c64_i32 dim 1 : vector<128x128xf32>, i32 -> vector<128x128xf32>
    %145 = arith.addf %98, %144 : vector<128x128xf32>
    %c96_i32 = arith.constant 96 : i32
    %146 = vector.broadcast %c96_i32 : i32 to vector<128x128xi32>
    %147 = arith.cmpi eq, %3, %146 : vector<128x128xi32>
    %cst_64 = arith.constant 0.000000e+00 : f32
    %148 = vector.shape_cast %143 : vector<128x1xf32> to vector<128x1xf32>
    %149 = vector.broadcast %148 : vector<128x1xf32> to vector<128x128xf32>
    %150 = vector.broadcast %cst_64 : f32 to vector<128x128xf32>
    %151 = arith.select %147, %149, %150 : vector<128x128xi1>, vector<128x128xf32>
    %152 = arith.addf %145, %151 : vector<128x128xf32>
    %c0_65 = arith.constant 0 : index
    %c0_66 = arith.constant 0 : index
    %153 = vector.load %arg7[%c0_65, %c0_66] : memref<128x128xf32, #tpu.memory_space<vmem>>, vector<128x128xf32>
    tpu.vector_store %arg7[%c0_65, %c0_66], %152 {strides = array<i32>} : memref<128x128xf32, #tpu.memory_space<vmem>>, vector<128x128xf32>,
    return
  }
  func.func @transform_0(%arg0: i32) -> (i32, i32) {
    %c0_i32 = arith.constant 0 : i32
    %c0_i32_0 = arith.constant 0 : i32
    return %arg0, %c0_i32 : i32, i32
  }
  func.func @transform_1(%arg0: i32) -> (i32, i32) {
    %c0_i32 = arith.constant 0 : i32
    %c0_i32_0 = arith.constant 0 : i32
    return %arg0, %c0_i32 : i32, i32
  }
  func.func @transform_2(%arg0: i32) -> (i32, i32) {
    %c0_i32 = arith.constant 0 : i32
    %c0_i32_0 = arith.constant 0 : i32
    %c0_i32_1 = arith.constant 0 : i32
    return %c0_i32, %c0_i32_0 : i32, i32
  }
  func.func @transform_3(%arg0: i32) -> (i32, i32, i32) {
    %c0_i32 = arith.constant 0 : i32
    %c0_i32_0 = arith.constant 0 : i32
    %c0_i32_1 = arith.constant 0 : i32
    %c0_i32_2 = arith.constant 0 : i32
    return %c0_i32, %c0_i32_0, %c0_i32_1 : i32, i32, i32
  }
  func.func @transform_4(%arg0: i32) -> (i32, i32, i32) {
    %c0_i32 = arith.constant 0 : i32
    %c0_i32_0 = arith.constant 0 : i32
    %c0_i32_1 = arith.constant 0 : i32
    %c0_i32_2 = arith.constant 0 : i32
    return %c0_i32, %c0_i32_0, %c0_i32_1 : i32, i32, i32
  }
  func.func @transform_5(%arg0: i32) -> (i32, i32, i32) {
    %c0_i32 = arith.constant 0 : i32
    %c0_i32_0 = arith.constant 0 : i32
    %c0_i32_1 = arith.constant 0 : i32
    %c0_i32_2 = arith.constant 0 : i32
    return %c0_i32, %c0_i32_0, %c0_i32_1 : i32, i32, i32
  }
  func.func @transform_6(%arg0: i32) -> (i32, i32) {
    %c0_i32 = arith.constant 0 : i32
    %c0_i32_0 = arith.constant 0 : i32
    return %arg0, %c0_i32 : i32, i32
  }
}

</mosaic_0001>

<bundles_post_ra>
// kernel: tpu_custom_call.1
= control target key start
LH: loop header
LB: loop body
LE: loop exit
PB: predicated region body
PF: predicated region fallthrough
CT: control target
= control target key end

     0   :  { %s7271_s0 = inlined_call_operand.hbm [shape: bf16[256,128], index: 0, kind: input, shape index: {}]   ;;  %s7272_s1 = inlined_call_operand.hbm [shape: f32[256,128], index: 1, kind: input, shape index: {}]   ;;  %s7273_s2 = inlined_call_operand.hbm [shape: f32[128,128], index: 2, kind: input, shape index: {}]   ;;  %s7274_s3 = inlined_call_operand.hbm [shape: bf16[3,128,128], index: 3, kind: input, shape index: {}]   ;;  %s7275_s4 = inlined_call_operand.hbm [shape: bf16[3,128,128], index: 4, kind: input, shape index: {}]   ;;  %s7276_s5 = inlined_call_operand.hbm [shape: f32[3,8,128], index: 5, kind: input, shape index: {}]   ;;  %s7277_s6 = inlined_call_operand.hbm [shape: f32[256,128], index: 6, kind: output, shape index: {}]  }
   0x1   :  { %7313 = sst [smem:[#allocation46_spill]] %s7271_s0 }
   0x2   :  { %7314 = sst [smem:[#allocation47_spill]] %s7273_s2 }
   0x3   :  { %7315 = sst [smem:[#allocation48_spill]] %s7274_s3 }
   0x4   :  { %7316 = sst [smem:[#allocation49_spill]] %s7275_s4 }
   0x5   :  { %7317 = sst [smem:[#allocation50_spill]] %s7276_s5 }
   0x6   :  { %11 = vsyncpa [#allocation3], 0 }
   0x7   :  { %13 = vsyncpa [#allocation3 + $0x1], 0 }
   0x8   :  { %14 = vsyncpa [#allocation6], 0 }
   0x9   :  { %16 = vsyncpa [#allocation6 + $0x1], 0 }
   0xa   :  { %17 = vsyncpa [#allocation9], 0 }
   0xb   :  { %18 = vsyncpa [#allocation12], 0 }
   0xc   :  { %19 = vsyncpa [#allocation4], 0 }
   0xd   :  { %21 = vsyncpa [#allocation4 + $0x1], 0  ;;  %s5543_s21 = smov 0   ;;  %s5545_s22 = smov 0  }
   0xe   :  { %s5547_s23 = smov 0   ;;  %s5549_s24 = smov 0  }
   0xf LB: > { %s5564_s25 = sadd.s32 4294967295, %s5491_s24   ;;  %s3692_s26 = sadd.s32 4294967294, %s5491_s24   ;;  %s5491_s24 = sphi %s5549_s24, %s7414_s24   ;;  %s5487_s23 = sphi %s5547_s23, %s7413_s23   ;;  %s5483_s22 = sphi %s5545_s22, %s7412_s22   ;;  %s5479_s21 = sphi %s5543_s21, %s7411_s21  }
  0x10   : > { %p47_p0 = scmp.ne.s32.totalorder %s5483_s22, %s5479_s21  ;;  %p7278_p1 = scmp.eq.s32.totalorder %s5564_s25, 0 }
  0x11   : > { %p187_p3 = scmp.eq.s32.totalorder %s3692_s26, 1  ;;  %p3693_p5 = scmp.ge.s32.totalorder %s5491_s24, 1 }
  0x12   : > { %p5573_p4 = por %p7278_p1, %p47_p0  ;;  %p194_p7 = scmp.lt.s32.totalorder %s5491_s24, 3 }
  0x13   : > { %p5578_p6 = por %p187_p3, %p47_p0  ;;  %s5493_s30 = smov [#allocation7]  }
  0x14   : > { %s7318_s27 = scalar_select %p5573_p4, 1, 0 }
  0x15   : > { %s7319_s28 = scalar_select %p5578_p6, 1, 0 }
  0x16   : > { %p5583_p8 = pnand %p3693_p5, %p194_p7  ;;  %s206_s7 = sshll.u32 %s5493_s30, 4  ;;  %s5587_s7 = int_to_ptr.vmem [resolvable:$true] %s206_s7 }
  0x17   : > { %s5494_s9 = smov [#allocation8]   ;;  %s7322_s2 = sld [smem:[#allocation47_spill]] }
  0x18   : > { %s7320_s29 = scalar_select %p5583_p8, 1, 0 }
  0x19   : > { %p4967_p9 = pneg %p5583_p8  ;;  %s219_s10 = sshll.u32 %s5494_s9, 4  ;;  %s5598_s10 = int_to_ptr.vmem [resolvable:$true] %s219_s10 }
  0x1b   : > { %p5594_p11 = pnand %p4967_p9, %p7278_p1 }
  0x1d   : > { %s5237_s13 = scalar_lea.hbm %s7322_s2, 2048  ;;  %p5608_p13 = pneg %p5594_p11 }
  0x1e   : > { %p5238_p12 = scmp.ne.s32.totalorder %s7322_s2, %s5237_s13  ;;  %p5244_p5 = scmp.lt.u32.totalorder %s5237_s13, %s7322_s2 }
  0x20   : > { %p5240_p0 = pnand %p5608_p13, %p5238_p12 }
  0x22   : > { %p5241_p3 = pneg %p5240_p0 }
  0x24   : > { %p5246_p7 = pnand %p5244_p5, %p5241_p3 }
  0x26   : > { %5249 = shalt.err (!%p5246_p7)
}
  0x27   : > { %s5250_s19 = scalar_lea.vmem %s5587_s7, 2048  ;;  %p5258_p2 = scmp.lt.s32.totalorder %s5587_s7, %s5587_s7 }
  0x28   : > { %p5251_p9 = scmp.ne.s32.totalorder %s5587_s7, %s5250_s19  ;;  %p5259_p6 = scmp.lt.s32.totalorder %s5250_s19, %s5250_s19 }
  0x2a   : > { %p5253_p10 = pnand %p5251_p9, %p5608_p13  ;;  %p5260_p12 = por %p5259_p6, %p5258_p2 }
  0x2c   : > { %p5254_p1 = pneg %p5253_p10 }
  0x2e   : > { %p5261_p0 = pnand %p5260_p12, %p5254_p1 }
  0x30   : > { %5264 = shalt.err (!%p5261_p0)
}
  0x31   : > { %s7279_s20 = smov 128   ;;  %s7281_s26 = smov 8  }
  0x32   : > { %4970 = dma.hbm_to_vmem [thread:$0]  (!%p5594_p11), %s7322_s2, 2048, %s5587_s7, [#allocation6], %s7279_s20, %s7279_s20, %s7281_s26  }
  0x33   : > { %s7324_s3 = sld [smem:[#allocation48_spill]] }
  0x39   : > { %s5265_s13 = scalar_lea.hbm %s7324_s3, 3072 }
  0x3a   : > { %p5266_p1 = scmp.ne.s32.totalorder %s7324_s3, %s5265_s13  ;;  %p5272_p10 = scmp.lt.u32.totalorder %s5265_s13, %s7324_s3 }
  0x3c   : > { %p5268_p2 = pnand %p5266_p1, %p5608_p13 }
  0x3e   : > { %p5269_p6 = pneg %p5268_p2 }
  0x40   : > { %p5274_p3 = pnand %p5272_p10, %p5269_p6 }
  0x42   : > { %5277 = shalt.err (!%p5274_p3)
}
  0x43   : > { %s5278_s7 = scalar_lea.vmem %s5598_s10, 3072  ;;  %p5286_p12 = scmp.lt.s32.totalorder %s5598_s10, %s5598_s10 }
  0x44   : > { %p5279_p5 = scmp.ne.s32.totalorder %s5598_s10, %s5278_s7  ;;  %p5287_p0 = scmp.lt.s32.totalorder %s5278_s7, %s5278_s7 }
  0x46   : > { %p5281_p7 = pnand %p5279_p5, %p5608_p13  ;;  %p5288_p1 = por %p5287_p0, %p5286_p12 }
  0x48   : > { %p5282_p9 = pneg %p5281_p7 }
  0x4a   : > { %p5289_p2 = pnand %p5288_p1, %p5282_p9 }
  0x4c   : > { %5292 = shalt.err (!%p5289_p2)
}
  0x4d   : > { %s7285_s19 = smov 64   ;;  %s7286_s30 = smov 4  }
  0x4e   : > { %4973 = dma.hbm_to_vmem [thread:$0]  (!%p5594_p11), %s7324_s3, 3072, %s5598_s10, [#allocation9], %s7285_s19, %s7285_s19, %s7286_s30  }
  0x4f   : > { %s5499_s12 = smov [#allocation10]   ;;  %s5500_s14 = smov [#allocation11]  }
  0x50   : > { %s232_s13 = sshll.u32 %s5499_s12, 4  ;;  %s245_s15 = sshll.u32 %s5500_s14, 4  ;;  %s233_s13 = int_to_ptr.vmem [resolvable:$true] %s232_s13  ;;  %s5658_s15 = int_to_ptr.vmem [resolvable:$true] %s245_s15 }
  0x51   : > { %s7325_s4 = sld [smem:[#allocation49_spill]] }
  0x57   : > { %s5293_s7 = scalar_lea.hbm %s7325_s4, 3072 }
  0x58   : > { %p5294_p6 = scmp.ne.s32.totalorder %s7325_s4, %s5293_s7  ;;  %p5300_p5 = scmp.lt.u32.totalorder %s5293_s7, %s7325_s4 }
  0x5a   : > { %p5296_p10 = pnand %p5294_p6, %p5608_p13 }
  0x5c   : > { %p5297_p3 = pneg %p5296_p10 }
  0x5e   : > { %p5302_p7 = pnand %p5300_p5, %p5297_p3 }
  0x60   : > { %5305 = shalt.err (!%p5302_p7)
}
  0x61   : > { %s5306_s11 = scalar_lea.vmem %s233_s13, 3072  ;;  %p5314_p1 = scmp.lt.s32.totalorder %s233_s13, %s233_s13 }
  0x62   : > { %p5307_p9 = scmp.ne.s32.totalorder %s233_s13, %s5306_s11  ;;  %p5315_p2 = scmp.lt.s32.totalorder %s5306_s11, %s5306_s11 }
  0x64   : > { %p5309_p12 = pnand %p5307_p9, %p5608_p13  ;;  %p5316_p4 = por %p5315_p2, %p5314_p1 }
  0x66   : > { %p5310_p0 = pneg %p5309_p12 }
  0x68   : > { %p5317_p8 = pnand %p5316_p4, %p5310_p0 }
  0x6a   : > { %5320 = shalt.err (!%p5317_p8)
}
  0x6b   : > { %4976 = dma.hbm_to_vmem [thread:$0]  (!%p5594_p11), %s7325_s4, 3072, %s233_s13, [#allocation9], %s7285_s19, %s7285_s19, %s7286_s30  }
  0x6c   : > { %s7326_s5 = sld [smem:[#allocation50_spill]] }
  0x72   : > { %s5321_s17 = scalar_lea.hbm %s7326_s5, 384 }
  0x73   : > { %p5322_p6 = scmp.ne.s32.totalorder %s7326_s5, %s5321_s17  ;;  %p5328_p10 = scmp.lt.u32.totalorder %s5321_s17, %s7326_s5 }
  0x75   : > { %p5324_p4 = pnand %p5322_p6, %p5608_p13 }
  0x77   : > { %p5325_p8 = pneg %p5324_p4 }
  0x79   : > { %p5330_p3 = pnand %p5328_p10, %p5325_p8 }
  0x7b   : > { %5333 = shalt.err (!%p5330_p3)
}
  0x7c   : > { %s5334_s13 = scalar_lea.vmem %s5658_s15, 384  ;;  %p5342_p12 = scmp.lt.s32.totalorder %s5658_s15, %s5658_s15 }
  0x7d   : > { %p5335_p5 = scmp.ne.s32.totalorder %s5658_s15, %s5334_s13  ;;  %p5343_p0 = scmp.lt.s32.totalorder %s5334_s13, %s5334_s13 }
  0x7f   : > { %p5337_p7 = pnand %p5335_p5, %p5608_p13  ;;  %p5344_p1 = por %p5343_p0, %p5342_p12 }
  0x81   : > { %p5338_p9 = pneg %p5337_p7 }
  0x83   : > { %p5345_p2 = pnand %p5344_p1, %p5338_p9 }
  0x85   : > { %5348 = shalt.err (!%p5345_p2)
}
  0x86   : > { %s7327_s11 = smov 8   ;;  %s7328_s20 = smov 128  }
  0x87   : > { %4979 = dma.hbm_to_vmem [thread:$0]  (!%p5594_p11), %s7326_s5, 384, %s5658_s15, [#allocation12], %s7328_s20, %s7328_s20, %s7327_s11  }
  0x88   : > { %s5708_s8 = sadd.s32 1, %s5491_s24   ;;  %s34_s14 = sadd.s32 1, %s5487_s23 }
  0x89   : > { %s31_s16 = ssub.s32 %s5491_s24, %s5708_s8  ;;  %p41_p6 = scmp.ne.s32.totalorder %s5487_s23, %s5483_s22 }
  0x8a   : > { %p32_p13 = scmp.eq.s32.totalorder %s31_s16, 0  ;;  %p42_p4 = scmp.eq.s32.totalorder %s5491_s24, 0 }
  0x8b   : > { %p7330_p10 = scmp.eq.s32.totalorder %s5564_s25, 1  ;;  %p4995_p5 = scmp.lt.s32.totalorder %s5491_s24, 2 }
  0x8c   : > { %s5717_s17 = scalar_select %p32_p13, %s5487_s23, %s34_s14  }
  0x8d   : > { %p43_p8 = por %p42_p4, %p41_p6  ;;  %p5721_p3 = por %p7330_p10, %p41_p6 }
  0x8e   : > { %7329 = sst [smem:[#allocation20_spill]] %s5717_s17  ;;  %s5727_s7 = sand.u32 1, %s5487_s23  }
  0x8f   : > { %s3699_s15 = sshll.u32 %s5727_s7, 6  ;;  %s3774_s9 = sshll.u32 %s5491_s24, 10 }
  0x90   : > { %s7332_s0 = sld [smem:[#allocation46_spill]]  ;;  %s263_s12 = scalar_lea.vmem [#allocation2], %s3699_s15 }
  0x91   : > { %s270_s16 = sshll.u32 %s263_s12, 4  ;;  %p5738_p11 = pnand %p4995_p5, %p43_p8  ;;  %s5736_s16 = int_to_ptr.vmem [resolvable:$true] %s270_s16 }
  0x92   : > { %s3702_s30 = sshll.u32 %s5727_s7, 7  ;;  %s260_s2 = scalar_lea.sflag [#allocation3], %s5727_s7 }
  0x93   : > { %p5351_p9 = pneg %p5738_p11 }
  0x96   : > { %s5734_s26 = scalar_lea.hbm %s7332_s0, %s3774_s9  ;;  %s5354_s13 = scalar_lea.hbm %s7332_s0, 2048 }
  0x97   : > { %s5349_s10 = scalar_lea.hbm %s5734_s26, 1024  ;;  %p5355_p1 = scmp.lt.u32.totalorder %s5734_s26, %s7332_s0 }
  0x98   : > { %p5350_p7 = scmp.ne.s32.totalorder %s5734_s26, %s5349_s10  ;;  %p5356_p2 = scmp.lt.u32.totalorder %s5354_s13, %s5349_s10 }
  0x99   : > { %p5358_p6 = scmp.lt.u32.totalorder %s5349_s10, %s5734_s26 }
  0x9a   : > { %p5352_p12 = pnand %p5351_p9, %p5350_p7  ;;  %p5357_p13 = por %p5356_p2, %p5355_p1 }
  0x9c   : > { %p5353_p0 = pneg %p5352_p12  ;;  %p5359_p4 = por %p5358_p6, %p5357_p13 }
  0x9e   : > { %p5360_p8 = pnand %p5359_p4, %p5353_p0 }
  0xa0   : > { %5363 = shalt.err (!%p5360_p8)
}
  0xa1   : > { %s5364_s19 = scalar_lea.vmem %s5736_s16, 1024  ;;  %s5501_s15 = smov [#allocation2]  }
  0xa2   : > { %p5365_p10 = scmp.ne.s32.totalorder %s5736_s16, %s5364_s19  ;;  %s5369_s9 = sshll.u32 %s5501_s15, 4  ;;  %s5370_s9 = int_to_ptr.vmem [resolvable:$false] %s5369_s9 }
  0xa3   : > { %s5371_s3 = scalar_lea.vmem %s5370_s9, 2048  ;;  %p5372_p12 = scmp.lt.s32.totalorder %s5736_s16, %s5370_s9 }
  0xa4   : > { %p5367_p5 = pnand %p5365_p10, %p5351_p9  ;;  %p5373_p1 = scmp.lt.s32.totalorder %s5371_s3, %s5364_s19 }
  0xa6   : > { %p5368_p7 = pneg %p5367_p5  ;;  %p5374_p2 = por %p5373_p1, %p5372_p12 }
  0xa8   : > { %p5375_p13 = pnand %p5374_p2, %p5368_p7 }
  0xaa   : > { %5378 = shalt.err (!%p5375_p13)
}
  0xab   : > { %s7334_s10 = smov 4   ;;  %s7335_s13 = smov 64  }
  0xac   : > { %4983 = dma.hbm_to_vmem [thread:$0]  (!%p5738_p11), %s5734_s26, 1024, %s5736_s16, %s260_s2, %s7335_s13, %s7335_s13, %s7334_s10  }
  0xad   : > { %s3775_s12 = sshll.u32 %s5491_s24, 11  ;;  %s284_s3 = scalar_lea.vmem [#allocation5], %s3702_s30 }
  0xae   : > { %s5779_s9 = scalar_lea.hbm %s7272_s1, %s3775_s12  ;;  %s291_s0 = sshll.u32 %s284_s3, 4  ;;  %s5783_s0 = int_to_ptr.vmem [resolvable:$true] %s291_s0 }
  0xaf   : > { %s7336_s4 = sand.u32 1, %s5491_s24   ;;  %s5379_s17 = scalar_lea.hbm %s5779_s9, 2048 }
  0xb0   : > { %s5787_s5 = scalar_lea.sflag [#allocation6], %s7336_s4  ;;  %p5380_p0 = scmp.ne.s32.totalorder %s5779_s9, %s5379_s17 }
  0xb1   : > { %s5384_s7 = scalar_lea.hbm %s7272_s1, 4096  ;;  %p5385_p8 = scmp.lt.u32.totalorder %s5779_s9, %s7272_s1 }
  0xb2   : > { %p5382_p6 = pnand %p5380_p0, %p5351_p9  ;;  %p5386_p10 = scmp.lt.u32.totalorder %s5384_s7, %s5379_s17 }
  0xb3   : > { %p5388_p7 = scmp.lt.u32.totalorder %s5379_s17, %s5779_s9 }
  0xb4   : > { %p5383_p4 = pneg %p5382_p6  ;;  %p5387_p5 = por %p5386_p10, %p5385_p8 }
  0xb6   : > { %p5389_p12 = por %p5388_p7, %p5387_p5 }
  0xb8   : > { %p5390_p1 = pnand %p5389_p12, %p5383_p4 }
  0xba   : > { %5393 = shalt.err (!%p5390_p1)
}
  0xbb   : > { %s5394_s4 = scalar_lea.vmem %s5783_s0, 2048  ;;  %s5502_s30 = smov [#allocation5]  }
  0xbc   : > { %p5395_p2 = scmp.ne.s32.totalorder %s5783_s0, %s5394_s4  ;;  %s5399_s13 = sshll.u32 %s5502_s30, 4  ;;  %s5400_s13 = int_to_ptr.vmem [resolvable:$false] %s5399_s13 }
  0xbd   : > { %s5401_s12 = scalar_lea.vmem %s5400_s13, 4096  ;;  %p5402_p6 = scmp.lt.s32.totalorder %s5783_s0, %s5400_s13 }
  0xbe   : > { %p5397_p13 = pnand %p5395_p2, %p5351_p9  ;;  %p5403_p8 = scmp.lt.s32.totalorder %s5401_s12, %s5394_s4 }
  0xc0   : > { %p5398_p0 = pneg %p5397_p13  ;;  %p5404_p10 = por %p5403_p8, %p5402_p6 }
  0xc2   : > { %p5405_p5 = pnand %p5404_p10, %p5398_p0 }
  0xc4   : > { %5408 = shalt.err (!%p5405_p5)
}
  0xc5   : > { %4986 = dma.hbm_to_vmem [thread:$0]  (!%p5738_p11), %s5779_s9, 2048, %s5783_s0, %s5787_s5, %s7328_s20, %s7328_s20, %s7327_s11  }
  0xc6   : > { %p7337_p9 = scmp.ne.s32.totalorder %s7320_s29, 0 }
  0xc8   : > { %303 = sbr.rel (%p7337_p9) target bundleno = 4249 (0x1099), region = 44 }
  0xcf   : > { %s5819_s17 = sand.u32 1, %s5483_s22   ;;  %p7338_p4 = scmp.ne.s32.totalorder %s7318_s27, 0 }
  0xd0   : > { %s3706_s15 = sshll.u32 %s5819_s17, 6  ;;  %s306_s19 = scalar_lea.sflag [#allocation3], %s5819_s17 }
  0xd1   : > { %s5823_s3 = scalar_lea.vmem [#allocation2], %s3706_s15 }
  0xd2   : > { %5454 = dma.done.wait (%p7338_p4), %s306_s19, 1024  }
  0xd3   : > { %5456 = vsyncadd (%p7338_p4), %s306_s19, 4294966272  ;;  %s314_s0 = sand.u32 1, %s5564_s25   ;;  %s3707_s5 = sshll.u32 %s5819_s17, 7 }
  0xd4   : > { %s315_s29 = scalar_lea.sflag [#allocation6], %s314_s0  ;;  %s5833_s11 = scalar_lea.vmem [#allocation5], %s3707_s5 }
  0xd5   : > { %5458 = dma.done.wait (%p7338_p4), %s315_s29, 2048  }
  0xd6   : > { %5460 = vsyncadd (%p7338_p4), %s315_s29, 4294965248  ;;  %p7339_p11 = scmp.eq.s32.totalorder %s5564_s25, 0 }
  0xd8   : > { %5462 = dma.done.wait (%p7339_p11), [#allocation6], 2048   ;;  %p7340_p7 = pmov %p7339_p11 }
  0xda   : > { %5464 = vsyncadd (%p7340_p7), [#allocation6], 4294965248  ;;  %p7341_p12 = pmov %p7340_p7 }
  0xdb   : > { %p7342_p1 = pmov %p7340_p7 }
  0xdc   : > { %5466 = dma.done.wait (%p7341_p12), [#allocation9], 6144  }
  0xdd   : > { %5468 = vsyncadd (%p7342_p1), [#allocation9], 4294961152  ;;  %p7343_p2 = pmov %p7342_p1 }
  0xde   : > { %p7344_p13 = pmov %p7342_p1 }
  0xdf   : > { %5470 = dma.done.wait (%p7343_p2), [#allocation12], 384  }
  0xe0   : > { %5472 = vsyncadd (%p7344_p13), [#allocation12], 4294966912  ;;  %v404_v0 = vld [vmem:[%s5833_s11] sm:$0xff]  ;;  %v405_v1 = vld [vmem:[%s5833_s11 + $0x8] sm:$0xff]  ;;  %s5503_s27 = smov 32   ;;  %s5504_s20 = smov 64  }
  0xe1   : > { %v406_v2 = vld [vmem:[%s5833_s11 + $0x10] sm:$0xff]  ;;  %v455_v3 = vpack.c.bf16 %v405_v1, %v404_v0  ;;  %v407_v4 = vld [vmem:[%s5833_s11 + $0x18] sm:$0xff]  ;;  %v408_v6 = vld [vmem:[%s5833_s11 + $0x20] sm:$0xff]  ;;  %s7105_s14 = scalar_lea.vmem [#allocation13], %s3707_s5  ;;  %s3776_s9 = sshll.u32 %s5564_s25, 11 }
  0xe2   : > { %v456_v5 = vpack.c.bf16 %v407_v4, %v406_v2  ;;  %v409_v7 = vld [vmem:[%s5833_s11 + $0x28] sm:$0xff]  ;;  %v410_v8 = vld [vmem:[%s5833_s11 + $0x30] sm:$0xff]  ;;  %v411_v10 = vld [vmem:[%s5833_s11 + $0x38] sm:$0xff]  ;;  %s3558_s2 = sshll.u32 %s7105_s14, 4  ;;  %s7224_s16 = scalar_lea.hbm %s7277_s6, %s3776_s9  ;;  %s7226_s2 = int_to_ptr.vmem [resolvable:$true] %s3558_s2 }
  0xe3   : > { %4113 = vmatprep.subr.bf16.mxu0 %v455_v3  ;;  %v457_v9 = vpack.c.bf16 %v409_v7, %v408_v6  ;;  %v5860_v11 = vld [vmem:[%s5823_s3] sm:$0xff]   ;;  %v458_v12 = vpack.c.bf16 %v411_v10, %v410_v8  ;;  %v413_v14 = vld [vmem:[%s5833_s11 + $0x48] sm:$0xff]  ;;  %v414_v15 = vld [vmem:[%s5833_s11 + $0x50] sm:$0xff]  ;;  %v7287_v8 = vlaneseq  ;;  %s3545_s25 = scalar_lea.sflag [#allocation4], %s5819_s17  ;;  %s5409_s10 = scalar_lea.vmem %s7226_s2, 2048 }
  0xe4   : > { %4114 = vmatpush3.bf16.msra.mxu0 %v455_v3  ;;  %4129 = vmatprep.mubr.bf16.mxu0 %v5860_v11  ;;  %v412_v13 = vld [vmem:[%s5833_s11 + $0x40] sm:$0xff]  ;;  %v415_v17 = vld [vmem:[%s5833_s11 + $0x58] sm:$0xff]  ;;  %v5054_v19 = vld [vmem:[#allocation8 + $0x8] sm:$0xff]   ;;  %p5410_p0 = scmp.ne.s32.totalorder %s7226_s2, %s5409_s10  ;;  %s5505_s4 = smov [#allocation13]  }
  0xe5   : > { %4115 = vmatprep.subr.bf16.mxu0 %v456_v5  ;;  %v459_v16 = vpack.c.bf16 %v413_v14, %v412_v13  ;;  %v5053_v18 = vld [vmem:[#allocation8] sm:$0xff]   ;;  %v460_v21 = vpack.c.bf16 %v415_v17, %v414_v15  ;;  %v417_v22 = vld [vmem:[%s5833_s11 + $0x68] sm:$0xff]  ;;  %v5055_v23 = vld [vmem:[#allocation8 + $0x10] sm:$0xff]   ;;  %s5413_s30 = sshll.u32 %s5505_s4, 4  ;;  %s5414_s30 = int_to_ptr.vmem [resolvable:$false] %s5413_s30 }
  0xe6   : > { %v416_v20 = vld [vmem:[%s5833_s11 + $0x60] sm:$0xff]  ;;  %4145 = vmatprep.subr.bf16.mxu1 %v5053_v18  ;;  %v418_v24 = vld [vmem:[%s5833_s11 + $0x70] sm:$0xff]  ;;  %v419_v25 = vld [vmem:[%s5833_s11 + $0x78] sm:$0xff]  ;;  %p5411_p6 = pnand %p5410_p0, %p5721_p3  ;;  %s5415_s13 = scalar_lea.vmem %s5414_s30, 4096 }
  0xe7   : > { %4146 = vmatpush3.bf16.msra.mxu1 %v5053_v18  ;;  %v5056_v26 = vld [vmem:[#allocation8 + $0x18] sm:$0xff]   ;;  %v461_v27 = vpack.c.bf16 %v417_v22, %v416_v20  ;;  %v5057_v28 = vld [vmem:[#allocation8 + $0x20] sm:$0xff]   ;;  %v462_v29 = vpack.c.bf16 %v419_v25, %v418_v24  ;;  %v5058_v30 = vld [vmem:[#allocation8 + $0x28] sm:$0xff]   ;;  %p5416_p10 = scmp.lt.s32.totalorder %s7226_s2, %s5414_s30  ;;  %p5417_p5 = scmp.lt.s32.totalorder %s5415_s13, %s5409_s10 }
  0xe8   : > { %4116 = vmatpush3.bf16.msra.mxu0 %v456_v5  ;;  %4147 = vmatprep.subr.bf16.mxu1 %v5054_v19  ;;  %v5046_v31 = vld [vmem:[%s5823_s3 + $0x8] sm:$0xff]   ;;  %v5047_v32 = vld [vmem:[%s5823_s3 + $0x10] sm:$0xff]   ;;  %v5048_v34 = vld [vmem:[%s5823_s3 + $0x18] sm:$0xff]   ;;  %p5412_p8 = pneg %p5411_p6 }
  0xe9   : > { %4117 = vmatprep.subr.bf16.mxu0 %v457_v9  ;;  %v5059_v33 = vld [vmem:[#allocation8 + $0x30] sm:$0xff]   ;;  %v5049_v35 = vld [vmem:[%s5823_s3 + $0x20] sm:$0xff]   ;;  %v5050_v36 = vld [vmem:[%s5823_s3 + $0x28] sm:$0xff]   ;;  %p5418_p9 = por %p5417_p5, %p5416_p10 }
  0xea   : > { %v5051_v37 = vld [vmem:[%s5823_s3 + $0x30] sm:$0xff]   ;;  %v5052_v38 = vld [vmem:[%s5823_s3 + $0x38] sm:$0xff]   ;;  %v5061_v40 = vld [vmem:[#allocation10] sm:$0xff]  }
  0xeb   : > { %4148 = vmatpush3.bf16.msra.mxu1 %v5054_v19  ;;  %v5060_v39 = vld [vmem:[#allocation8 + $0x38] sm:$0xff]   ;;  %v5062_v41 = vld [vmem:[#allocation10 + $0x8] sm:$0xff]   ;;  %v5063_v42 = vld [vmem:[#allocation10 + $0x10] sm:$0xff]   ;;  %p5419_p4 = pnand %p5418_p9, %p5412_p8 }
  0xec   : > { %4118 = vmatpush3.bf16.msra.mxu0 %v457_v9  ;;  %4149 = vmatprep.subr.bf16.mxu1 %v5055_v23  ;;  %v5064_v43 = vld [vmem:[#allocation10 + $0x18] sm:$0xff]   ;;  %v5065_v44 = vld [vmem:[#allocation10 + $0x20] sm:$0xff]   ;;  %v5066_v45 = vld [vmem:[#allocation10 + $0x28] sm:$0xff]   ;;  %v5879_v9 = vshrl.u32 %v7287_v8, 7 }
  0xed   : > { %4119 = vmatprep.subr.bf16.mxu0 %v458_v12  ;;  %v5067_v6 = vld [vmem:[#allocation10 + $0x30] sm:$0xff]   ;;  %v5068_v7 = vld [vmem:[#allocation10 + $0x38] sm:$0xff]  }
  0xee   : > { %v5882_v10 = vsub.s32 0, %v5879_v9 }
  0xef   : > { %4150 = vmatpush3.bf16.msra.mxu1 %v5055_v23 }
  0xf0   : > { %4120 = vmatpush3.bf16.msra.mxu0 %v458_v12  ;;  %4151 = vmatprep.subr.bf16.mxu1 %v5056_v26  ;;  %7345 = vst [vmem:[#allocation21_spill] sm:$0xff] %v5882_v10  ;;  %v5884_v12 = vld [vmem:[#allocation11] sm:$0xff] }
  0xf1   : > { %4121 = vmatprep.subr.bf16.mxu0 %v459_v16  ;;  %v619_v13 = vrot.slane %v5884_v12, %v5882_v10 }
  0xf3   : > { %4152 = vmatpush3.bf16.msra.mxu1 %v5056_v26 }
  0xf4   : > { %4122 = vmatpush3.bf16.msra.mxu0 %v459_v16  ;;  %4153 = vmatprep.subr.bf16.mxu1 %v5057_v28 }
  0xf5   : > { %4123 = vmatprep.subr.bf16.mxu0 %v460_v21 }
  0xf7   : > { %4154 = vmatpush3.bf16.msra.mxu1 %v5057_v28 }
  0xf8   : > { %4124 = vmatpush3.bf16.msra.mxu0 %v460_v21  ;;  %4155 = vmatprep.subr.bf16.mxu1 %v5058_v30 }
  0xf9   : > { %4125 = vmatprep.subr.bf16.mxu0 %v461_v27 }
  0xfb   : > { %4156 = vmatpush3.bf16.msra.mxu1 %v5058_v30 }
  0xfc   : > { %4126 = vmatpush3.bf16.msra.mxu0 %v461_v27  ;;  %4157 = vmatprep.subr.bf16.mxu1 %v5059_v33 }
  0xfd   : > { %4127 = vmatprep.subr.bf16.mxu0 %v462_v29 }
  0xff   : > { %4158 = vmatpush3.bf16.msra.mxu1 %v5059_v33 }
 0x100   : > { %4128 = vmatpush3.bf16.msra.mxu0 %v462_v29  ;;  %4159 = vmatprep.subr.bf16.mxu1 %v5060_v39 }
 0x101   : > { %4177 = vmatprep.subr.bf16.mxu0 %v5061_v40 }
 0x103   : > { %4130 = vmatmul.mubr.bf16.vlgmr.msra.gmra.mrb[0].mxu0 %v5046_v31  ;;  %4160 = vmatpush3.bf16.msra.mxu1 %v5060_v39 }
 0x104   : > { %4133 = vmatprep.mubr.bf16.mxu0 %v5047_v32  ;;  %4178 = vmatpush3.bf16.msra.mxu0 %v5061_v40 }
 0x105   : > { %4179 = vmatprep.subr.bf16.mxu0 %v5062_v41 }
 0x108   : > { %4180 = vmatpush3.bf16.msra.mxu0 %v5062_v41 }
 0x109   : > { %4181 = vmatprep.subr.bf16.mxu0 %v5063_v42 }
 0x10b   : > { %4134 = vmatmul.mubr.bf16.gmra.mrb[4].mxu0 %v5048_v34 }
 0x10c   : > { %4137 = vmatprep.mubr.bf16.mxu0 %v5049_v35  ;;  %4182 = vmatpush3.bf16.msra.mxu0 %v5063_v42 }
 0x10d   : > { %4183 = vmatprep.subr.bf16.mxu0 %v5064_v43 }
 0x110   : > { %4184 = vmatpush3.bf16.msra.mxu0 %v5064_v43 }
 0x111   : > { %4185 = vmatprep.subr.bf16.mxu0 %v5065_v44 }
 0x113   : > { %4138 = vmatmul.mubr.bf16.gmra.mrb[8].mxu0 %v5050_v36 }
 0x114   : > { %4141 = vmatprep.mubr.bf16.mxu0 %v5051_v37  ;;  %4186 = vmatpush3.bf16.msra.mxu0 %v5065_v44 }
 0x115   : > { %4187 = vmatprep.subr.bf16.mxu0 %v5066_v45 }
 0x118   : > { %4188 = vmatpush3.bf16.msra.mxu0 %v5066_v45 }
 0x119   : > { %4189 = vmatprep.subr.bf16.mxu0 %v5067_v6 }
 0x11b   : > { %4142 = vmatmul.mubr.bf16.gmra.mrb[12].mxu0 %v5052_v38 }
 0x11c   : > { %4190 = vmatpush3.bf16.msra.mxu0 %v5067_v6  ;;  %v5888_v6 = vld [vmem:[#allocation7] sm:$0xff] }
 0x11d   : > { %4191 = vmatprep.subr.bf16.mxu0 %v5068_v7 }
 0x120   : > { %4192 = vmatpush3.bf16.msra.mxu0 %v5068_v7  ;;  %v5893_v7 = vsub.s32 1, %v5879_v9 }
 0x122   : > { %7346 = vst [vmem:[#allocation22_spill] sm:$0xff] %v5893_v7 }
 0x1d6   : > { %v4131_v46 = vpop.f32.mrb[0].mxu0 }
 0x1d7   : > { %v545_v47 = vpop.f32.mrb[1].mxu0 }
 0x1d8   : > { %v4132_v48 = vpop.f32.mrb[2].mxu0 }
 0x1d9   : > { %v609_v49 = vpack.c.bf16 %v4132_v48, %v4131_v46  ;;  %v548_v50 = vpop.f32.mrb[3].mxu0 }
 0x1da   : > { %v608_v51 = vpack.c.bf16 %v548_v50, %v545_v47 }
 0x1dc   : > { %4161 = vmatprep.mubr.bf16.mxu1 %v608_v51 }
 0x1dd   : > { %4162 = vmatmul.mubr.bf16.vlgmr.msra.gmra.mrb[0].mxu1 %v609_v49 }
 0x1de   : > { %v4135_v52 = vpop.f32.mrb[4].mxu0 }
 0x1df   : > { %v561_v53 = vpop.f32.mrb[5].mxu0 }
 0x1e0   : > { %v4136_v54 = vpop.f32.mrb[6].mxu0 }
 0x1e1   : > { %v611_v55 = vpack.c.bf16 %v4136_v54, %v4135_v52  ;;  %v564_v56 = vpop.f32.mrb[7].mxu0 }
 0x1e2   : > { %v610_v57 = vpack.c.bf16 %v564_v56, %v561_v53 }
 0x1e4   : > { %4165 = vmatprep.mubr.bf16.mxu1 %v610_v57 }
 0x1e5   : > { %4166 = vmatmul.mubr.bf16.gmra.mrb[4].mxu1 %v611_v55 }
 0x1e6   : > { %v4139_v58 = vpop.f32.mrb[8].mxu0 }
 0x1e7   : > { %v577_v59 = vpop.f32.mrb[9].mxu0 }
 0x1e8   : > { %v4140_v60 = vpop.f32.mrb[10].mxu0 }
 0x1e9   : > { %v613_v61 = vpack.c.bf16 %v4140_v60, %v4139_v58  ;;  %v580_v62 = vpop.f32.mrb[11].mxu0 }
 0x1ea   : > { %v612_v63 = vpack.c.bf16 %v580_v62, %v577_v59 }
 0x1ec   : > { %4169 = vmatprep.mubr.bf16.mxu1 %v612_v63 }
 0x1ed   : > { %4170 = vmatmul.mubr.bf16.gmra.mrb[8].mxu1 %v613_v61 }
 0x1ee   : > { %v4143_v0 = vpop.f32.mrb[12].mxu0 }
 0x1ef   : > { %v593_v1 = vpop.f32.mrb[13].mxu0 }
 0x1f0   : > { %v4144_v2 = vpop.f32.mrb[14].mxu0 }
 0x1f1   : > { %v615_v3 = vpack.c.bf16 %v4144_v2, %v4143_v0  ;;  %v596_v4 = vpop.f32.mrb[15].mxu0 }
 0x1f2   : > { %v614_v5 = vpack.c.bf16 %v596_v4, %v593_v1 }
 0x1f4   : > { %4173 = vmatprep.mubr.bf16.mxu1 %v614_v5 }
 0x1f5   : > { %4174 = vmatmul.mubr.bf16.gmra.mrb[12].mxu1 %v615_v3 }
 0x1f6   : > { %4241 = vmatprep.mubr.f32.mxu1 %v5888_v6 }
 0x2b0   : > { %v4163_v14 = vpop.f32.mrb[0].mxu1 }
 0x2b1   : > { %v711_v15 = vadd.f32 %v4163_v14, %v619_v13  ;;  %v702_v16 = vpop.f32.mrb[1].mxu1 }
 0x2b2   : > { %v703_v17 = vadd.f32 %v702_v16, %v619_v13  ;;  %v4164_v18 = vpop.f32.mrb[2].mxu1 }
 0x2b3   : > { %v714_v19 = vadd.f32 %v4164_v18, %v619_v13  ;;  %v705_v20 = vpop.f32.mrb[3].mxu1  ;;  %v767_v22 = vmax.f32 %v711_v15, 0.0 }
 0x2b4   : > { %v706_v21 = vadd.f32 %v705_v20, %v619_v13  ;;  %v765_v24 = vmax.f32 %v703_v17, 0.0 }
 0x2b5   : > { %v768_v23 = vmax.f32 %v714_v19, 0.0 }
 0x2b6   : > { %v766_v25 = vmax.f32 %v706_v21, 0.0 }
 0x2b7   : > { %v782_v26 = vpack.c.bf16 %v768_v23, %v767_v22 }
 0x2b8   : > { %v781_v27 = vpack.c.bf16 %v766_v25, %v765_v24  ;;  %v4167_v28 = vpop.f32.mrb[4].mxu1 }
 0x2b9   : > { %v727_v29 = vadd.f32 %v4167_v28, %v619_v13  ;;  %v718_v30 = vpop.f32.mrb[5].mxu1 }
 0x2ba   : > { %v719_v31 = vadd.f32 %v718_v30, %v619_v13  ;;  %v4168_v32 = vpop.f32.mrb[6].mxu1  ;;  %4193 = vmatprep.mubr.bf16.mxu0 %v781_v27 }
 0x2bb   : > { %v730_v33 = vadd.f32 %v4168_v32, %v619_v13  ;;  %v721_v34 = vpop.f32.mrb[7].mxu1  ;;  %4194 = vmatmul.mubr.bf16.vlgmr.msra.gmra.mrb[16].mxu0 %v782_v26  ;;  %v771_v36 = vmax.f32 %v727_v29, 0.0 }
 0x2bc   : > { %v722_v35 = vadd.f32 %v721_v34, %v619_v13  ;;  %v769_v38 = vmax.f32 %v719_v31, 0.0 }
 0x2bd   : > { %v772_v37 = vmax.f32 %v730_v33, 0.0 }
 0x2be   : > { %v770_v39 = vmax.f32 %v722_v35, 0.0 }
 0x2bf   : > { %v784_v40 = vpack.c.bf16 %v772_v37, %v771_v36 }
 0x2c0   : > { %v783_v41 = vpack.c.bf16 %v770_v39, %v769_v38  ;;  %v4171_v42 = vpop.f32.mrb[8].mxu1 }
 0x2c1   : > { %v743_v43 = vadd.f32 %v4171_v42, %v619_v13  ;;  %v734_v44 = vpop.f32.mrb[9].mxu1 }
 0x2c2   : > { %v735_v45 = vadd.f32 %v734_v44, %v619_v13  ;;  %v4172_v46 = vpop.f32.mrb[10].mxu1  ;;  %4197 = vmatprep.mubr.bf16.mxu0 %v783_v41 }
 0x2c3   : > { %v746_v47 = vadd.f32 %v4172_v46, %v619_v13  ;;  %v737_v48 = vpop.f32.mrb[11].mxu1  ;;  %4198 = vmatmul.mubr.bf16.gmra.mrb[20].mxu0 %v784_v40  ;;  %v775_v50 = vmax.f32 %v743_v43, 0.0 }
 0x2c4   : > { %v738_v49 = vadd.f32 %v737_v48, %v619_v13  ;;  %v773_v52 = vmax.f32 %v735_v45, 0.0 }
 0x2c5   : > { %v776_v51 = vmax.f32 %v746_v47, 0.0 }
 0x2c6   : > { %v774_v53 = vmax.f32 %v738_v49, 0.0 }
 0x2c7   : > { %v786_v54 = vpack.c.bf16 %v776_v51, %v775_v50 }
 0x2c8   : > { %v785_v55 = vpack.c.bf16 %v774_v53, %v773_v52  ;;  %v4175_v56 = vpop.f32.mrb[12].mxu1 }
 0x2c9   : > { %v759_v57 = vadd.f32 %v4175_v56, %v619_v13  ;;  %v750_v58 = vpop.f32.mrb[13].mxu1 }
 0x2ca   : > { %v751_v59 = vadd.f32 %v750_v58, %v619_v13  ;;  %v4176_v60 = vpop.f32.mrb[14].mxu1  ;;  %4201 = vmatprep.mubr.bf16.mxu0 %v785_v55 }
 0x2cb   : > { %v762_v61 = vadd.f32 %v4176_v60, %v619_v13  ;;  %v753_v62 = vpop.f32.mrb[15].mxu1  ;;  %4202 = vmatmul.mubr.bf16.gmra.mrb[24].mxu0 %v786_v54  ;;  %v779_v0 = vmax.f32 %v759_v57, 0.0 }
 0x2cc   : > { %v754_v63 = vadd.f32 %v753_v62, %v619_v13  ;;  %v777_v2 = vmax.f32 %v751_v59, 0.0  ;;  %v792_v13 = vrot.slane %v5884_v12, %v5893_v7 }
 0x2cd   : > { %v780_v1 = vmax.f32 %v762_v61, 0.0 }
 0x2ce   : > { %v778_v3 = vmax.f32 %v754_v63, 0.0 }
 0x2cf   : > { %v788_v4 = vpack.c.bf16 %v780_v1, %v779_v0 }
 0x2d0   : > { %v787_v5 = vpack.c.bf16 %v778_v3, %v777_v2 }
 0x2d2   : > { %4205 = vmatprep.mubr.bf16.mxu0 %v787_v5 }
 0x2d3   : > { %4206 = vmatmul.mubr.bf16.gmra.mrb[28].mxu0 %v788_v4 }
 0x2d4   : > { %4297 = vmatprep.mubr.f32.mxu0 %v5888_v6 }
 0x38e   : > { %v4195_v14 = vpop.f32.mrb[16].mxu0 }
 0x38f   : > { %v875_v15 = vpop.f32.mrb[17].mxu0  ;;  %v884_v20 = vadd.f32 %v4195_v14, %v792_v13  ;;  %v5947_v14 = vld [vmem:[#allocation7 + $0x10] sm:$0xff] }
 0x390   : > { %v876_v16 = vadd.f32 %v875_v15, %v792_v13  ;;  %v4196_v17 = vpop.f32.mrb[18].mxu0  ;;  %v5951_v15 = vld [vmem:[#allocation7 + $0x18] sm:$0xff] }
 0x391   : > { %v887_v18 = vadd.f32 %v4196_v17, %v792_v13  ;;  %v878_v19 = vpop.f32.mrb[19].mxu0  ;;  %v5903_v25 = vmax.f32 %v884_v20, 0.0  ;;  %v5957_v17 = vld [vmem:[#allocation7 + $0x28] sm:$0xff]  ;;  %v5965_v20 = vld [vmem:[#allocation7 + $0x40] sm:$0xff] }
 0x392   : > { %v879_v21 = vadd.f32 %v878_v19, %v792_v13  ;;  %v5897_v22 = vmax.f32 %v876_v16, 0.0  ;;  %v5953_v16 = vld [vmem:[#allocation7 + $0x20] sm:$0xff]  ;;  %v5963_v19 = vld [vmem:[#allocation7 + $0x38] sm:$0xff] }
 0x393   : > { %v5899_v23 = vmax.f32 %v887_v18, 0.0  ;;  %v5959_v18 = vld [vmem:[#allocation7 + $0x30] sm:$0xff] }
 0x394   : > { %v5901_v24 = vmax.f32 %v879_v21, 0.0  ;;  %v5969_v21 = vld [vmem:[#allocation7 + $0x48] sm:$0xff] }
 0x395   : > { %v4741_v31 = vpack.c.bf16 %v5899_v23, %v5903_v25 }
 0x396   : > { %v4199_v26 = vpop.f32.mrb[20].mxu0  ;;  %v4737_v27 = vpack.c.bf16 %v5901_v24, %v5897_v22 }
 0x397   : > { %v891_v28 = vpop.f32.mrb[21].mxu0  ;;  %v900_v34 = vadd.f32 %v4199_v26, %v792_v13  ;;  %v5971_v26 = vld [vmem:[#allocation7 + $0x50] sm:$0xff] }
 0x398   : > { %v892_v29 = vadd.f32 %v891_v28, %v792_v13  ;;  %v4200_v30 = vpop.f32.mrb[22].mxu0  ;;  %4738 = vmatprep.subr.bf16.mxu1 %v4737_v27  ;;  %v5977_v28 = vld [vmem:[#allocation7 + $0x60] sm:$0xff] }
 0x399   : > { %v903_v32 = vadd.f32 %v4200_v30, %v792_v13  ;;  %v894_v33 = vpop.f32.mrb[23].mxu0  ;;  %4740 = vmatpush3.bf16.msra.mxu1 %v4737_v27  ;;  %v5915_v39 = vmax.f32 %v900_v34, 0.0  ;;  %v5975_v27 = vld [vmem:[#allocation7 + $0x58] sm:$0xff]  ;;  %v5983_v30 = vld [vmem:[#allocation7 + $0x70] sm:$0xff] }
 0x39a   : > { %v895_v35 = vadd.f32 %v894_v33, %v792_v13  ;;  %4742 = vmatprep.subr.bf16.mxu1 %v4741_v31  ;;  %v5909_v36 = vmax.f32 %v892_v29, 0.0  ;;  %v5981_v29 = vld [vmem:[#allocation7 + $0x68] sm:$0xff] }
 0x39b   : > { %v5911_v37 = vmax.f32 %v903_v32, 0.0 }
 0x39c   : > { %v5913_v38 = vmax.f32 %v895_v35, 0.0 }
 0x39d   : > { %4744 = vmatpush3.bf16.msra.mxu1 %v4741_v31  ;;  %v4749_v45 = vpack.c.bf16 %v5911_v37, %v5915_v39  ;;  %v5987_v31 = vld [vmem:[#allocation7 + $0x78] sm:$0xff] }
 0x39e   : > { %v4203_v40 = vpop.f32.mrb[24].mxu0  ;;  %v4745_v41 = vpack.c.bf16 %v5913_v38, %v5909_v36 }
 0x39f   : > { %v907_v42 = vpop.f32.mrb[25].mxu0  ;;  %v916_v48 = vadd.f32 %v4203_v40, %v792_v13 }
 0x3a0   : > { %v908_v43 = vadd.f32 %v907_v42, %v792_v13  ;;  %v4204_v44 = vpop.f32.mrb[26].mxu0  ;;  %4746 = vmatprep.subr.bf16.mxu1 %v4745_v41 }
 0x3a1   : > { %v919_v46 = vadd.f32 %v4204_v44, %v792_v13  ;;  %v910_v47 = vpop.f32.mrb[27].mxu0  ;;  %4748 = vmatpush3.bf16.msra.mxu1 %v4745_v41  ;;  %v5927_v53 = vmax.f32 %v916_v48, 0.0 }
 0x3a2   : > { %v911_v49 = vadd.f32 %v910_v47, %v792_v13  ;;  %4750 = vmatprep.subr.bf16.mxu1 %v4749_v45  ;;  %v5921_v50 = vmax.f32 %v908_v43, 0.0 }
 0x3a3   : > { %v5923_v51 = vmax.f32 %v919_v46, 0.0 }
 0x3a4   : > { %v5925_v52 = vmax.f32 %v911_v49, 0.0 }
 0x3a5   : > { %4752 = vmatpush3.bf16.msra.mxu1 %v4749_v45  ;;  %v4757_v59 = vpack.c.bf16 %v5923_v51, %v5927_v53 }
 0x3a6   : > { %v4207_v54 = vpop.f32.mrb[28].mxu0  ;;  %v4753_v55 = vpack.c.bf16 %v5925_v52, %v5921_v50 }
 0x3a7   : > { %v923_v56 = vpop.f32.mrb[29].mxu0  ;;  %v932_v62 = vadd.f32 %v4207_v54, %v792_v13 }
 0x3a8   : > { %v924_v57 = vadd.f32 %v923_v56, %v792_v13  ;;  %v4208_v58 = vpop.f32.mrb[30].mxu0  ;;  %4754 = vmatprep.subr.bf16.mxu1 %v4753_v55 }
 0x3a9   : > { %v935_v60 = vadd.f32 %v4208_v58, %v792_v13  ;;  %v926_v61 = vpop.f32.mrb[31].mxu0  ;;  %4756 = vmatpush3.bf16.msra.mxu1 %v4753_v55  ;;  %v5939_v3 = vmax.f32 %v932_v62, 0.0 }
 0x3aa   : > { %v927_v63 = vadd.f32 %v926_v61, %v792_v13  ;;  %4758 = vmatprep.subr.bf16.mxu1 %v4757_v59  ;;  %v5933_v0 = vmax.f32 %v924_v57, 0.0  ;;  %v5945_v13 = vld [vmem:[#allocation7 + $0x8] sm:$0xff] }
 0x3ab   : > { %v5935_v1 = vmax.f32 %v935_v60, 0.0 }
 0x3ac   : > { %v5937_v2 = vmax.f32 %v927_v63, 0.0 }
 0x3ad   : > { %4760 = vmatpush3.bf16.msra.mxu1 %v4757_v59  ;;  %v4765_v5 = vpack.c.bf16 %v5935_v1, %v5939_v3 }
 0x3ae   : > { %v4761_v4 = vpack.c.bf16 %v5937_v2, %v5933_v0 }
 0x3b0   : > { %4762 = vmatprep.subr.bf16.mxu1 %v4761_v4 }
 0x3b1   : > { %4764 = vmatpush3.bf16.msra.mxu1 %v4761_v4 }
 0x3b2   : > { %4766 = vmatprep.subr.bf16.mxu1 %v4765_v5 }
 0x3b5   : > { %4768 = vmatpush3.bf16.msra.mxu1 %v4765_v5 }
 0x3b8   : > { %4242 = vmatmul.mubr.f32.vlgmr.msra.gmra.mrb[16].mxu1 %v5945_v13 }
 0x3b9   : > { %4244 = vmatprep.mubr.f32.mxu1 %v5947_v14 }
 0x3bc   : > { %4245 = vmatmul.mubr.f32.gmra.mrb[18].mxu1 %v5951_v15 }
 0x3bd   : > { %4247 = vmatprep.mubr.f32.mxu1 %v5953_v16 }
 0x3c0   : > { %4248 = vmatmul.mubr.f32.gmra.mrb[20].mxu1 %v5957_v17 }
 0x3c1   : > { %4250 = vmatprep.mubr.f32.mxu1 %v5959_v18 }
 0x3c4   : > { %4251 = vmatmul.mubr.f32.gmra.mrb[22].mxu1 %v5963_v19 }
 0x3c5   : > { %4253 = vmatprep.mubr.f32.mxu1 %v5965_v20 }
 0x3c8   : > { %4254 = vmatmul.mubr.f32.gmra.mrb[24].mxu1 %v5969_v21 }
 0x3c9   : > { %4256 = vmatprep.mubr.f32.mxu1 %v5971_v26 }
 0x3cc   : > { %4257 = vmatmul.mubr.f32.gmra.mrb[26].mxu1 %v5975_v27 }
 0x3cd   : > { %4259 = vmatprep.mubr.f32.mxu1 %v5977_v28 }
 0x3d0   : > { %4260 = vmatmul.mubr.f32.gmra.mrb[28].mxu1 %v5981_v29 }
 0x3d1   : > { %4262 = vmatprep.mubr.f32.mxu1 %v5983_v30 }
 0x3d4   : > { %4263 = vmatmul.mubr.f32.gmra.mrb[30].mxu1 %v5987_v31 }
 0x3d5   : > { %4337 = vmatprep.mubr.bf16.mxu1 %v5860_v11 }
 0x48b   : > { %v5991_v32 = vpop.f32.mrb[16].mxu1 }
 0x48c   : > { %v1100_v33 = vsub.f32 %v5901_v24, %v5991_v32  ;;  %v5995_v34 = vpop.f32.mrb[17].mxu1 }
 0x48d   : > { %v1099_v35 = vsub.f32 %v5897_v22, %v5995_v34 }
 0x48e   : > { %v1116_v40 = vmul.f32 %v1100_v33, %v1100_v33 }
 0x48f   : > { %v1115_v41 = vmul.f32 %v1099_v35, %v1099_v35  ;;  %v5999_v42 = vpop.f32.mrb[18].mxu1 }
 0x490   : > { %v1102_v43 = vsub.f32 %v5899_v23, %v5999_v42  ;;  %v6003_v44 = vpop.f32.mrb[19].mxu1 }
 0x491   : > { %v1101_v11 = vsub.f32 %v5903_v25, %v6003_v44  ;;  %v4769_v45 = vpack.c.bf16 %v1116_v40, %v1115_v41 }
 0x492   : > { %v1118_v46 = vmul.f32 %v1102_v43, %v1102_v43 }
 0x493   : > { %v1117_v47 = vmul.f32 %v1101_v11, %v1101_v11  ;;  %v6007_v48 = vpop.f32.mrb[20].mxu1  ;;  %4770 = vmatprep.subr.bf16.mxu0 %v4769_v45 }
 0x494   : > { %v1104_v49 = vsub.f32 %v5913_v38, %v6007_v48  ;;  %v6011_v54 = vpop.f32.mrb[21].mxu1  ;;  %4772 = vmatpush3.bf16.msra.mxu0 %v4769_v45 }
 0x495   : > { %v1103_v55 = vsub.f32 %v5909_v36, %v6011_v54  ;;  %v4773_v56 = vpack.c.bf16 %v1118_v46, %v1117_v47 }
 0x496   : > { %v1120_v57 = vmul.f32 %v1104_v49, %v1104_v49 }
 0x497   : > { %v1119_v58 = vmul.f32 %v1103_v55, %v1103_v55  ;;  %v6015_v59 = vpop.f32.mrb[22].mxu1  ;;  %4774 = vmatprep.subr.bf16.mxu0 %v4773_v56 }
 0x498   : > { %v1106_v60 = vsub.f32 %v5911_v37, %v6015_v59  ;;  %v6019_v61 = vpop.f32.mrb[23].mxu1  ;;  %4776 = vmatpush3.bf16.msra.mxu0 %v4773_v56 }
 0x499   : > { %v1105_v62 = vsub.f32 %v5915_v39, %v6019_v61  ;;  %v4777_v63 = vpack.c.bf16 %v1120_v57, %v1119_v58 }
 0x49a   : > { %v1122_v4 = vmul.f32 %v1106_v60, %v1106_v60 }
 0x49b   : > { %v1121_v5 = vmul.f32 %v1105_v62, %v1105_v62  ;;  %v6023_v33 = vpop.f32.mrb[24].mxu1  ;;  %4778 = vmatprep.subr.bf16.mxu0 %v4777_v63 }
 0x49c   : > { %v1108_v35 = vsub.f32 %v5925_v52, %v6023_v33  ;;  %v6027_v40 = vpop.f32.mrb[25].mxu1  ;;  %4780 = vmatpush3.bf16.msra.mxu0 %v4777_v63 }
 0x49d   : > { %v1107_v41 = vsub.f32 %v5921_v50, %v6027_v40  ;;  %v4781_v43 = vpack.c.bf16 %v1122_v4, %v1121_v5 }
 0x49e   : > { %v1124_v11 = vmul.f32 %v1108_v35, %v1108_v35 }
 0x49f   : > { %v1123_v45 = vmul.f32 %v1107_v41, %v1107_v41  ;;  %v6031_v46 = vpop.f32.mrb[26].mxu1  ;;  %4782 = vmatprep.subr.bf16.mxu0 %v4781_v43 }
 0x4a0   : > { %v1110_v47 = vsub.f32 %v5923_v51, %v6031_v46  ;;  %v6035_v49 = vpop.f32.mrb[27].mxu1  ;;  %4784 = vmatpush3.bf16.msra.mxu0 %v4781_v43 }
 0x4a1   : > { %v1109_v55 = vsub.f32 %v5927_v53, %v6035_v49  ;;  %v4785_v56 = vpack.c.bf16 %v1124_v11, %v1123_v45 }
 0x4a2   : > { %v1126_v57 = vmul.f32 %v1110_v47, %v1110_v47 }
 0x4a3   : > { %v1125_v58 = vmul.f32 %v1109_v55, %v1109_v55  ;;  %v6039_v60 = vpop.f32.mrb[28].mxu1  ;;  %4786 = vmatprep.subr.bf16.mxu0 %v4785_v56 }
 0x4a4   : > { %v1112_v62 = vsub.f32 %v5937_v2, %v6039_v60  ;;  %v6043_v63 = vpop.f32.mrb[29].mxu1  ;;  %4788 = vmatpush3.bf16.msra.mxu0 %v4785_v56 }
 0x4a5   : > { %v1111_v4 = vsub.f32 %v5933_v0, %v6043_v63  ;;  %v4789_v5 = vpack.c.bf16 %v1126_v57, %v1125_v58 }
 0x4a6   : > { %v1128_v35 = vmul.f32 %v1112_v62, %v1112_v62  ;;  %v7347_v62 = vlaneseq }
 0x4a7   : > { %v1127_v41 = vmul.f32 %v1111_v4, %v1111_v4  ;;  %v6047_v43 = vpop.f32.mrb[30].mxu1  ;;  %4790 = vmatprep.subr.bf16.mxu0 %v4789_v5 }
 0x4a8   : > { %v1114_v11 = vsub.f32 %v5935_v1, %v6047_v43  ;;  %v6051_v45 = vpop.f32.mrb[31].mxu1  ;;  %4792 = vmatpush3.bf16.msra.mxu0 %v4789_v5  ;;  %v6081_v4 = vand.u32 127, %v7347_v62 }
 0x4a9   : > { %v1113_v47 = vsub.f32 %v5939_v3, %v6051_v45  ;;  %v4793_v55 = vpack.c.bf16 %v1128_v35, %v1127_v41 }
 0x4aa   : > { %v1130_v56 = vmul.f32 %v1114_v11, %v1114_v11  ;;  %vm1380_vm0 = vcmp.lt.s32.totalorder %v6081_v4, 32  ;;  %vm3495_vm1 = vcmp.eq.s32.totalorder %v6081_v4, 96 }
 0x4ab   : > { %v1129_v8 = vmul.f32 %v1113_v47, %v1113_v47  ;;  %4794 = vmatprep.subr.bf16.mxu0 %v4793_v55 }
 0x4ac   : > { %4796 = vmatpush3.bf16.msra.mxu0 %v4793_v55 }
 0x4ad   : > { %v4797_v57 = vpack.c.bf16 %v1130_v56, %v1129_v8 }
 0x4af   : > { %4798 = vmatprep.subr.bf16.mxu0 %v4797_v57 }
 0x4b0   : > { %4800 = vmatpush3.bf16.msra.mxu0 %v4797_v57 }
 0x4b3   : > { %4298 = vmatmul.mubr.f32.vlgmr.msra.gmra.mrb[32].mxu0 %v5945_v13 }
 0x4b4   : > { %4300 = vmatprep.mubr.f32.mxu0 %v5947_v14 }
 0x4b7   : > { %4301 = vmatmul.mubr.f32.gmra.mrb[34].mxu0 %v5951_v15 }
 0x4b8   : > { %4303 = vmatprep.mubr.f32.mxu0 %v5953_v16 }
 0x4bb   : > { %4304 = vmatmul.mubr.f32.gmra.mrb[36].mxu0 %v5957_v17 }
 0x4bc   : > { %4306 = vmatprep.mubr.f32.mxu0 %v5959_v18 }
 0x4bf   : > { %4307 = vmatmul.mubr.f32.gmra.mrb[38].mxu0 %v5963_v19  ;;  %v6071_v19 = vsub.s32 2, %v5879_v9 }
 0x4c0   : > { %4309 = vmatprep.mubr.f32.mxu0 %v5965_v20 }
 0x4c3   : > { %4310 = vmatmul.mubr.f32.gmra.mrb[40].mxu0 %v5969_v21 }
 0x4c4   : > { %4312 = vmatprep.mubr.f32.mxu0 %v5971_v26 }
 0x4c7   : > { %4313 = vmatmul.mubr.f32.gmra.mrb[42].mxu0 %v5975_v27 }
 0x4c8   : > { %4315 = vmatprep.mubr.f32.mxu0 %v5977_v28  ;;  %v6075_v28 = vrot.slane %v5884_v12, %v6071_v19 }
 0x4cb   : > { %4316 = vmatmul.mubr.f32.gmra.mrb[44].mxu0 %v5981_v29 }
 0x4cc   : > { %4318 = vmatprep.mubr.f32.mxu0 %v5983_v30  ;;  %v6078_v30 = vsub.s32 3, %v5879_v9 }
 0x4ce   : > { %v6086_v55 = vrot.slane %v5884_v12, %v6078_v30 }
 0x4cf   : > { %4319 = vmatmul.mubr.f32.gmra.mrb[46].mxu0 %v5987_v31 }
 0x586   : > { %v4299_v8 = vpop.f32.mrb[32].mxu0 }
 0x587   : > { %v1203_v13 = vadd.f32 1e-05, %v4299_v8  ;;  %v1197_v14 = vpop.f32.mrb[33].mxu0 }
 0x588   : > { %v1198_v15 = vadd.f32 1e-05, %v1197_v14 }
 0x589   : > { %5101 = vrsqrt.f32 %v1203_v13 }
 0x58a   : > { %5103 = vrsqrt.f32 %v1198_v15  ;;  %v4302_v16 = vpop.f32.mrb[34].mxu0 }
 0x58b   : > { %v1213_v17 = vadd.f32 1e-05, %v4302_v16  ;;  %v1207_v18 = vpop.f32.mrb[35].mxu0 }
 0x58c   : > { %v1208_v20 = vadd.f32 1e-05, %v1207_v18 }
 0x58d   : > { %5105 = vrsqrt.f32 %v1213_v17 }
 0x58e   : > { %5107 = vrsqrt.f32 %v1208_v20  ;;  %v4305_v21 = vpop.f32.mrb[36].mxu0 }
 0x58f   : > { %v1223_v26 = vadd.f32 1e-05, %v4305_v21  ;;  %v1217_v27 = vpop.f32.mrb[37].mxu0 }
 0x590   : > { %v1218_v29 = vadd.f32 1e-05, %v1217_v27 }
 0x591   : > { %5109 = vrsqrt.f32 %v1223_v26 }
 0x592   : > { %5111 = vrsqrt.f32 %v1218_v29  ;;  %v4308_v31 = vpop.f32.mrb[38].mxu0 }
 0x593   : > { %v5102_v58 = vpop.eup %5101  ;;  %v1233_v5 = vadd.f32 1e-05, %v4308_v31  ;;  %v1227_v35 = vpop.f32.mrb[39].mxu0 }
 0x594   : > { %v5104_v41 = vpop.eup %5103  ;;  %v1228_v11 = vadd.f32 1e-05, %v1227_v35  ;;  %v1297_v47 = vmul.f32 %v5102_v58, %v6075_v28 }
 0x595   : > { %v1296_v9 = vmul.f32 %v5104_v41, %v6075_v28  ;;  %5113 = vrsqrt.f32 %v1233_v5 }
 0x596   : > { %5115 = vrsqrt.f32 %v1228_v11  ;;  %v4311_v56 = vpop.f32.mrb[40].mxu0  ;;  %v1313_v57 = vmul.f32 %v5991_v32, %v1297_v47  ;;  %v1349_v12 = vmul.f32 %v1297_v47, %v5901_v24 }
 0x597   : > { %v5106_v8 = vpop.eup %5105  ;;  %v1243_v13 = vadd.f32 1e-05, %v4311_v56  ;;  %v1237_v14 = vpop.f32.mrb[41].mxu0  ;;  %v1312_v15 = vmul.f32 %v1296_v9, %v5995_v34  ;;  %v1348_v26 = vmul.f32 %v1296_v9, %v5897_v22 }
 0x598   : > { %v5108_v16 = vpop.eup %5107  ;;  %v1238_v17 = vadd.f32 1e-05, %v1237_v14  ;;  %v1333_v18 = vsub.f32 %v6086_v55, %v1313_v57  ;;  %v1299_v20 = vmul.f32 %v5106_v8, %v6075_v28 }
 0x599   : > { %v1298_v21 = vmul.f32 %v5108_v16, %v6075_v28  ;;  %5117 = vrsqrt.f32 %v1243_v13  ;;  %v1332_v32 = vsub.f32 %v6086_v55, %v1312_v15 }
 0x59a   : > { %5119 = vrsqrt.f32 %v1238_v17  ;;  %v4314_v27 = vpop.f32.mrb[42].mxu0  ;;  %v6098_v29 = vadd.f32 %v1349_v12, %v1333_v18  ;;  %v1315_v34 = vmul.f32 %v5999_v42, %v1299_v20  ;;  %v1351_v24 = vmul.f32 %v1299_v20, %v5899_v23 }
 0x59b   : > { %v5110_v31 = vpop.eup %5109  ;;  %v1253_v58 = vadd.f32 1e-05, %v4314_v27  ;;  %v1247_v62 = vpop.f32.mrb[43].mxu0  ;;  %v6101_v5 = vadd.f32 %v1348_v26, %v1332_v32  ;;  %v1314_v35 = vmul.f32 %v1298_v21, %v6003_v44  ;;  %v1350_v23 = vmul.f32 %v1298_v21, %v5903_v25 }
 0x59c   : > { %7348 = vst [vmem:[#allocation23_spill] sm:$0xff] %v6098_v29  ;;  %v5112_v41 = vpop.eup %5111  ;;  %v1301_v11 = vmul.f32 %v5110_v31, %v6075_v28  ;;  %v1248_v47 = vadd.f32 1e-05, %v1247_v62  ;;  %v1382_v22 = vsel %vm1380_vm0, %v6098_v29, -inf  ;;  %v1335_v9 = vsub.f32 %v6086_v55, %v1315_v34 }
 0x59d   : > { %7349 = vst [vmem:[#allocation24_spill] sm:$0xff] %v6101_v5  ;;  %5121 = vrsqrt.f32 %v1253_v58  ;;  %1399 = vmax.xlane.f32.xlu0 %v1382_v22  ;;  %v1481_v42 = vpack.c.bf16 %v6098_v29, %v6101_v5  ;;  %v1334_v56 = vsub.f32 %v6086_v55, %v1314_v35  ;;  %v1300_v8 = vmul.f32 %v5112_v41, %v6075_v28 }
 0x59e   : > { %5123 = vrsqrt.f32 %v1248_v47  ;;  %v4317_v44 = vpop.f32.mrb[44].mxu0  ;;  %v6114_v57 = vadd.f32 %v1351_v24, %v1335_v9  ;;  %v1317_v13 = vmul.f32 %v6007_v48, %v1301_v11  ;;  %v1381_v17 = vsel %vm1380_vm0, %v6101_v5, -inf }
 0x59f   : > { %v5114_v14 = vpop.eup %5113  ;;  %v1263_v15 = vadd.f32 1e-05, %v4317_v44  ;;  %v1257_v16 = vpop.f32.mrb[45].mxu0  ;;  %4321 = vmatprep.subr.bf16.mxu1 %v1481_v42  ;;  %v6121_v18 = vadd.f32 %v1350_v23, %v1334_v56  ;;  %v1316_v48 = vmul.f32 %v1300_v8, %v6011_v54  ;;  %v1352_v26 = vmul.f32 %v1300_v8, %v5909_v36 }
 0x5a0   : > { %7350 = vst [vmem:[#allocation25_spill] sm:$0xff] %v6114_v57  ;;  %v5116_v12 = vpop.eup %5115  ;;  %v1303_v25 = vmul.f32 %v5114_v14, %v6075_v28  ;;  %v1258_v20 = vadd.f32 1e-05, %v1257_v16  ;;  %4322 = vmatpush3.bf16.msra.mxu1 %v1481_v42  ;;  %v1384_v21 = vsel %vm1380_vm0, %v6114_v57, -inf  ;;  %v1353_v27 = vmul.f32 %v1301_v11, %v5913_v38 }
 0x5a1   : > { %7351 = vst [vmem:[#allocation26_spill] sm:$0xff] %v6121_v18  ;;  %5125 = vrsqrt.f32 %v1263_v15  ;;  %1403 = vmax.xlane.f32.xlu1 %v1384_v21  ;;  %1397 = vmax.xlane.f32.xlu0 %v1381_v17  ;;  %v1482_v32 = vpack.c.bf16 %v6114_v57, %v6121_v18  ;;  %v1336_v31 = vsub.f32 %v6086_v55, %v1316_v48  ;;  %v1383_v41 = vsel %vm1380_vm0, %v6121_v18, -inf }
 0x5a2   : > { %5127 = vrsqrt.f32 %v1258_v20  ;;  %v4320_v34 = vpop.f32.mrb[46].mxu0  ;;  %v1337_v58 = vsub.f32 %v6086_v55, %v1317_v13  ;;  %v1302_v62 = vmul.f32 %v5116_v12, %v6075_v28  ;;  %v1319_v36 = vmul.f32 %v6015_v59, %v1303_v25 }
 0x5a3   : > { %v5118_v24 = vpop.eup %5117  ;;  %v1273_v54 = vadd.f32 1e-05, %v4320_v34  ;;  %v1267_v35 = vpop.f32.mrb[47].mxu0  ;;  %4323 = vmatprep.subr.bf16.mxu1 %v1482_v32  ;;  %v6140_v22 = vadd.f32 %v1352_v26, %v1336_v31  ;;  %v1355_v23 = vmul.f32 %v1303_v25, %v5911_v37 }
 0x5a4   : > { %v5120_v47 = vpop.eup %5119  ;;  %v1305_v38 = vmul.f32 %v5118_v24, %v6075_v28  ;;  %v1268_v11 = vadd.f32 1e-05, %v1267_v35  ;;  %4324 = vmatpush3.bf16.msra.mxu1 %v1482_v32  ;;  %v6142_v9 = vadd.f32 %v1353_v27, %v1337_v58  ;;  %v1318_v42 = vmul.f32 %v1302_v62, %v6019_v61 }
 0x5a5   : > { %7352 = vst [vmem:[#allocation27_spill] sm:$0xff] %v6140_v22  ;;  %5129 = vrsqrt.f32 %v1273_v54  ;;  %1401 = vmax.xlane.f32.xlu1 %v1383_v41  ;;  %v1339_v56 = vsub.f32 %v6086_v55, %v1319_v36  ;;  %v1385_v59 = vsel %vm1380_vm0, %v6140_v22, -inf  ;;  %v1354_v8 = vmul.f32 %v1302_v62, %v5915_v39 }
 0x5a6   : > { %7353 = vst [vmem:[#allocation28_spill] sm:$0xff] %v6142_v9  ;;  %5131 = vrsqrt.f32 %v1268_v11  ;;  %v1483_v44 = vpack.c.bf16 %v6142_v9, %v6140_v22  ;;  %1405 = vmax.xlane.f32.xlu0 %v1385_v59  ;;  %v1338_v14 = vsub.f32 %v6086_v55, %v1318_v42  ;;  %v1304_v61 = vmul.f32 %v5120_v47, %v6075_v28 }
 0x5a7   : > { %v5122_v13 = vpop.eup %5121  ;;  %v6154_v15 = vadd.f32 %v1355_v23, %v1339_v56  ;;  %v1321_v37 = vmul.f32 %v6023_v33, %v1305_v38  ;;  %v1386_v12 = vsel %vm1380_vm0, %v6142_v9, -inf  ;;  %v1357_v20 = vmul.f32 %v1305_v38, %v5925_v52 }
 0x5a8   : > { %v5124_v16 = vpop.eup %5123  ;;  %v1307_v17 = vmul.f32 %v5122_v13, %v6075_v28  ;;  %4325 = vmatprep.subr.bf16.mxu1 %v1483_v44  ;;  %v6162_v39 = vadd.f32 %v1354_v8, %v1338_v14  ;;  %v1320_v25 = vmul.f32 %v1304_v61, %v6027_v40  ;;  %v1356_v34 = vmul.f32 %v1304_v61, %v5921_v50 }
 0x5a9   : > { %7354 = vst [vmem:[#allocation29_spill] sm:$0xff] %v6154_v15  ;;  %4326 = vmatpush3.bf16.msra.mxu1 %v1483_v44  ;;  %1407 = vmax.xlane.f32.xlu1 %v1386_v12  ;;  %v1388_v33 = vsel %vm1380_vm0, %v6154_v15, -inf  ;;  %v1341_v21 = vsub.f32 %v6086_v55, %v1321_v37  ;;  %v1306_v48 = vmul.f32 %v5124_v16, %v6075_v28 }
 0x5aa   : > { %7355 = vst [vmem:[#allocation30_spill] sm:$0xff] %v6162_v39  ;;  %v1323_v32 = vmul.f32 %v6031_v46, %v1307_v17  ;;  %v1387_v27 = vsel %vm1380_vm0, %v6162_v39, -inf  ;;  %v1484_v40 = vpack.c.bf16 %v6154_v15, %v6162_v39  ;;  %v1340_v52 = vsub.f32 %v6086_v55, %v1320_v25 }
 0x5ab   : > { %v5126_v26 = vpop.eup %5125  ;;  %1409 = vmax.xlane.f32.xlu0 %v1387_v27  ;;  %v6180_v62 = vadd.f32 %v1357_v20, %v1341_v21  ;;  %v1322_v46 = vmul.f32 %v1306_v48, %v6035_v49  ;;  %v1359_v24 = vmul.f32 %v1307_v17, %v5923_v51  ;;  %v1358_v47 = vmul.f32 %v1306_v48, %v5927_v53  ;;  %v6257_v27 = vld [vmem:[%s5823_s3 + $0x18] sm:$0xff]  }
 0x5ac   : > { %v5128_v31 = vpop.eup %5127  ;;  %v1309_v58 = vmul.f32 %v5126_v26, %v6075_v28  ;;  %4327 = vmatprep.subr.bf16.mxu1 %v1484_v40  ;;  %v6184_v54 = vadd.f32 %v1356_v34, %v1340_v52  ;;  %v1343_v35 = vsub.f32 %v6086_v55, %v1323_v32  ;;  %v6249_v32 = vld [vmem:[%s5823_s3 + $0x8] sm:$0xff]   ;;  %v6253_v26 = vld [vmem:[%s5823_s3 + $0x10] sm:$0xff]   ;;  %7365 = vst [vmem:[#allocation40_spill] sm:$0xff] %v6257_v27  ;;  %v5069_v52 = vld [vmem:[#allocation8 + $0x40] sm:$0xff]  }
 0x5ad   : > { %7356 = vst [vmem:[#allocation31_spill] sm:$0xff] %v6180_v62  ;;  %1411 = vmax.xlane.f32.xlu1 %v1388_v33  ;;  %v1308_v41 = vmul.f32 %v5128_v31, %v6075_v28  ;;  %4328 = vmatpush3.bf16.msra.mxu1 %v1484_v40  ;;  %v1390_v50 = vsel %vm1380_vm0, %v6180_v62, -inf  ;;  %v1342_v36 = vsub.f32 %v6086_v55, %v1322_v46  ;;  %7364 = vst [vmem:[#allocation39_spill] sm:$0xff] %v6253_v26  ;;  %v6261_v40 = vld [vmem:[%s5823_s3 + $0x20] sm:$0xff]   ;;  %v5070_v34 = vld [vmem:[#allocation8 + $0x48] sm:$0xff]  }
 0x5ae   : > { %7357 = vst [vmem:[#allocation32_spill] sm:$0xff] %v6184_v54  ;;  %v1325_v49 = vmul.f32 %v6039_v60, %v1309_v58  ;;  %v1389_v38 = vsel %vm1380_vm0, %v6184_v54, -inf  ;;  %v1485_v11 = vpack.c.bf16 %v6180_v62, %v6184_v54  ;;  %v6199_v42 = vadd.f32 %v1359_v24, %v1343_v35  ;;  %7366 = vst [vmem:[#allocation41_spill] sm:$0xff] %v6261_v40  ;;  %v5071_v31 = vld [vmem:[#allocation8 + $0x50] sm:$0xff]   ;;  %v5072_v24 = vld [vmem:[#allocation8 + $0x58] sm:$0xff]  }
 0x5af   : > { %v5130_v51 = vpop.eup %5129  ;;  %v1324_v56 = vmul.f32 %v1308_v41, %v6043_v63  ;;  %1413 = vmax.xlane.f32.xlu0 %v1389_v38  ;;  %v6203_v44 = vadd.f32 %v1358_v47, %v1342_v36  ;;  %v1361_v60 = vmul.f32 %v1309_v58, %v5937_v2  ;;  %v1360_v13 = vmul.f32 %v1308_v41, %v5933_v0  ;;  %v6265_v58 = vld [vmem:[%s5823_s3 + $0x28] sm:$0xff]   ;;  %v6269_v46 = vld [vmem:[%s5823_s3 + $0x30] sm:$0xff]   ;;  %v5073_v35 = vld [vmem:[#allocation8 + $0x60] sm:$0xff]  }
 0x5b0   : > { %7358 = vst [vmem:[#allocation33_spill] sm:$0xff] %v6199_v42  ;;  %v5132_v23 = vpop.eup %5131  ;;  %v1311_v59 = vmul.f32 %v5130_v51, %v6075_v28  ;;  %v1345_v53 = vsub.f32 %v6086_v55, %v1325_v49  ;;  %4329 = vmatprep.subr.bf16.mxu1 %v1485_v11  ;;  %v1392_v0 = vsel %vm1380_vm0, %v6199_v42, -inf  ;;  %4353 = vmatprep.subr.bf16.mxu0 %v5069_v52  ;;  %7367 = vst [vmem:[#allocation42_spill] sm:$0xff] %v6265_v58  ;;  %v6273_v41 = vld [vmem:[%s5823_s3 + $0x38] sm:$0xff]   ;;  %v5075_v36 = vld [vmem:[#allocation8 + $0x70] sm:$0xff]  }
 0x5b1   : > { %7359 = vst [vmem:[#allocation34_spill] sm:$0xff] %v6203_v44  ;;  %1415 = vmax.xlane.f32.xlu1 %v1390_v50  ;;  %v1344_v8 = vsub.f32 %v6086_v55, %v1324_v56  ;;  %v1310_v14 = vmul.f32 %v5132_v23, %v6075_v28  ;;  %4330 = vmatpush3.bf16.msra.mxu1 %v1485_v11  ;;  %v1391_v63 = vsel %vm1380_vm0, %v6203_v44, -inf  ;;  %7368 = vst [vmem:[#allocation43_spill] sm:$0xff] %v6269_v46  ;;  %v5074_v50 = vld [vmem:[#allocation8 + $0x68] sm:$0xff]   ;;  %v5076_v47 = vld [vmem:[#allocation8 + $0x78] sm:$0xff]  }
 0x5b2   : > { %v1486_v61 = vpack.c.bf16 %v6199_v42, %v6203_v44  ;;  %v6215_v37 = vadd.f32 %v1361_v60, %v1345_v53  ;;  %v1327_v2 = vmul.f32 %v6047_v43, %v1311_v59  ;;  %v1363_v12 = vmul.f32 %v1311_v59, %v5935_v1  ;;  %4354 = vmatpush3.bf16.msra.mxu0 %v5069_v52  ;;  %v5077_v49 = vld [vmem:[#allocation10 + $0x40] sm:$0xff]   ;;  %v5078_v51 = vld [vmem:[#allocation10 + $0x48] sm:$0xff]   ;;  %v5079_v38 = vld [vmem:[#allocation10 + $0x50] sm:$0xff]  }
 0x5b3   : > { %v6218_v16 = vadd.f32 %v1360_v13, %v1344_v8  ;;  %v1326_v17 = vmul.f32 %v1310_v14, %v6051_v45  ;;  %1417 = vmax.xlane.f32.xlu0 %v1391_v63  ;;  %v1362_v20 = vmul.f32 %v1310_v14, %v5939_v3  ;;  %4355 = vmatprep.subr.bf16.mxu0 %v5070_v34  ;;  %v5080_v11 = vld [vmem:[#allocation10 + $0x58] sm:$0xff]   ;;  %v5081_v56 = vld [vmem:[#allocation10 + $0x60] sm:$0xff]   ;;  %v5082_v23 = vld [vmem:[#allocation10 + $0x68] sm:$0xff]  }
 0x5b4   : > { %7360 = vst [vmem:[#allocation35_spill] sm:$0xff] %v6215_v37  ;;  %4331 = vmatprep.subr.bf16.mxu1 %v1486_v61  ;;  %v1347_v28 = vsub.f32 %v6086_v55, %v1327_v2  ;;  %v1394_v1 = vsel %vm1380_vm0, %v6215_v37, -inf  ;;  %7369 = vst [vmem:[#allocation44_spill] sm:$0xff] %v6273_v41 }
 0x5b5   : > { %7361 = vst [vmem:[#allocation36_spill] sm:$0xff] %v6218_v16  ;;  %1419 = vmax.xlane.f32.xlu1 %v1392_v0  ;;  %v1393_v25 = vsel %vm1380_vm0, %v6218_v16, -inf  ;;  %v1487_v43 = vpack.c.bf16 %v6215_v37, %v6218_v16  ;;  %v1346_v45 = vsub.f32 %v6086_v55, %v1326_v17  ;;  %4332 = vmatpush3.bf16.msra.mxu1 %v1486_v61 }
 0x5b6   : > { %v6233_v33 = vadd.f32 %v1363_v12, %v1347_v28  ;;  %4356 = vmatpush3.bf16.msra.mxu0 %v5070_v34 }
 0x5b7   : > { %4333 = vmatprep.subr.bf16.mxu1 %v1487_v43  ;;  %v6235_v21 = vadd.f32 %v1362_v20, %v1346_v45  ;;  %1421 = vmax.xlane.f32.xlu0 %v1393_v25 }
 0x5b8   : > { %7362 = vst [vmem:[#allocation37_spill] sm:$0xff] %v6233_v33  ;;  %v1396_v48 = vsel %vm1380_vm0, %v6233_v33, -inf  ;;  %4357 = vmatprep.subr.bf16.mxu0 %v5071_v31 }
 0x5b9   : > { %7363 = vst [vmem:[#allocation38_spill] sm:$0xff] %v6235_v21  ;;  %1423 = vmax.xlane.f32.xlu1 %v1394_v1  ;;  %v1395_v3 = vsel %vm1380_vm0, %v6235_v21, -inf  ;;  %v1488_v55 = vpack.c.bf16 %v6233_v33, %v6235_v21  ;;  %4334 = vmatpush3.bf16.msra.mxu1 %v1487_v43 }
 0x5ba   : > { %4358 = vmatpush3.bf16.msra.mxu0 %v5071_v31 }
 0x5bb   : > { %4335 = vmatprep.subr.bf16.mxu1 %v1488_v55  ;;  %1425 = vmax.xlane.f32.xlu0 %v1395_v3 }
 0x5bc   : > { %4359 = vmatprep.subr.bf16.mxu0 %v5072_v24 }
 0x5bd   : > { %1427 = vmax.xlane.f32.xlu1 %v1396_v48  ;;  %4336 = vmatpush3.bf16.msra.mxu1 %v1488_v55 }
 0x5be   : > { %4360 = vmatpush3.bf16.msra.mxu0 %v5072_v24  ;;  %4385 = vmatprep.subr.bf16.mxu1 %v5077_v49  ;;  %v5083_v24 = vld [vmem:[#allocation10 + $0x70] sm:$0xff]  }
 0x5bf   : > { %4361 = vmatprep.subr.bf16.mxu0 %v5073_v35 }
 0x5c0   : > { %4338 = vmatmul.mubr.bf16.vlgmr.msra.gmra.mrb[32].mxu1 %v6249_v32 }
 0x5c1   : > { %4341 = vmatprep.mubr.bf16.mxu1 %v6253_v26  ;;  %4386 = vmatpush3.bf16.msra.mxu1 %v5077_v49 }
 0x5c2   : > { %4362 = vmatpush3.bf16.msra.mxu0 %v5073_v35  ;;  %4387 = vmatprep.subr.bf16.mxu1 %v5078_v51  ;;  %v5084_v35 = vld [vmem:[#allocation10 + $0x78] sm:$0xff]  }
 0x5c3   : > { %4363 = vmatprep.subr.bf16.mxu0 %v5074_v50 }
 0x5c5   : > { %4388 = vmatpush3.bf16.msra.mxu1 %v5078_v51 }
 0x5c6   : > { %4364 = vmatpush3.bf16.msra.mxu0 %v5074_v50  ;;  %4389 = vmatprep.subr.bf16.mxu1 %v5079_v38  ;;  %v6277_v50 = vld [vmem:[#allocation11 + $0x8] sm:$0xff] }
 0x5c7   : > { %4365 = vmatprep.subr.bf16.mxu0 %v5075_v36 }
 0x5c8   : > { %4342 = vmatmul.mubr.bf16.gmra.mrb[36].mxu1 %v6257_v27 }
 0x5c9   : > { %4345 = vmatprep.mubr.bf16.mxu1 %v6261_v40  ;;  %4390 = vmatpush3.bf16.msra.mxu1 %v5079_v38 }
 0x5ca   : > { %4366 = vmatpush3.bf16.msra.mxu0 %v5075_v36  ;;  %4391 = vmatprep.subr.bf16.mxu1 %v5080_v11  ;;  %v1597_v36 = vrot.slane %v6277_v50, %v5882_v10 }
 0x5cb   : > { %4367 = vmatprep.subr.bf16.mxu0 %v5076_v47 }
 0x5cd   : > { %4392 = vmatpush3.bf16.msra.mxu1 %v5080_v11 }
 0x5ce   : > { %4368 = vmatpush3.bf16.msra.mxu0 %v5076_v47  ;;  %4393 = vmatprep.subr.bf16.mxu1 %v5081_v56 }
 0x5d0   : > { %4346 = vmatmul.mubr.bf16.gmra.mrb[40].mxu1 %v6265_v58 }
 0x5d1   : > { %4349 = vmatprep.mubr.bf16.mxu1 %v6269_v46  ;;  %4394 = vmatpush3.bf16.msra.mxu1 %v5081_v56 }
 0x5d2   : > { %4395 = vmatprep.subr.bf16.mxu1 %v5082_v23 }
 0x5d5   : > { %4396 = vmatpush3.bf16.msra.mxu1 %v5082_v23 }
 0x5d6   : > { %4397 = vmatprep.subr.bf16.mxu1 %v5083_v24 }
 0x5d8   : > { %4350 = vmatmul.mubr.bf16.gmra.mrb[44].mxu1 %v6273_v41 }
 0x5d9   : > { %4398 = vmatpush3.bf16.msra.mxu1 %v5083_v24 }
 0x5da   : > { %4399 = vmatprep.subr.bf16.mxu1 %v5084_v35 }
 0x5dd   : > { %4400 = vmatpush3.bf16.msra.mxu1 %v5084_v35 }
 0x693   : > { %v4339_v59 = vpop.f32.mrb[32].mxu1 }
 0x694   : > { %v1523_v53 = vpop.f32.mrb[33].mxu1 }
 0x695   : > { %v4340_v60 = vpop.f32.mrb[34].mxu1 }
 0x696   : > { %v1587_v8 = vpack.c.bf16 %v4340_v60, %v4339_v59  ;;  %v1526_v13 = vpop.f32.mrb[35].mxu1 }
 0x697   : > { %v1586_v14 = vpack.c.bf16 %v1526_v13, %v1523_v53 }
 0x699   : > { %4369 = vmatprep.mubr.bf16.mxu0 %v1586_v14 }
 0x69a   : > { %4370 = vmatmul.mubr.bf16.vlgmr.msra.gmra.mrb[48].mxu0 %v1587_v8 }
 0x69b   : > { %v4343_v63 = vpop.f32.mrb[36].mxu1 }
 0x69c   : > { %v1539_v61 = vpop.f32.mrb[37].mxu1 }
 0x69d   : > { %v4344_v2 = vpop.f32.mrb[38].mxu1 }
 0x69e   : > { %v1589_v17 = vpack.c.bf16 %v4344_v2, %v4343_v63  ;;  %v1542_v0 = vpop.f32.mrb[39].mxu1 }
 0x69f   : > { %v1588_v28 = vpack.c.bf16 %v1542_v0, %v1539_v61 }
 0x6a1   : > { %4373 = vmatprep.mubr.bf16.mxu0 %v1588_v28 }
 0x6a2   : > { %4374 = vmatmul.mubr.bf16.gmra.mrb[52].mxu0 %v1589_v17 }
 0x6a3   : > { %v4347_v12 = vpop.f32.mrb[40].mxu1 }
 0x6a4   : > { %v1555_v25 = vpop.f32.mrb[41].mxu1 }
 0x6a5   : > { %v4348_v43 = vpop.f32.mrb[42].mxu1 }
 0x6a6   : > { %v1591_v45 = vpack.c.bf16 %v4348_v43, %v4347_v12  ;;  %v1558_v20 = vpop.f32.mrb[43].mxu1 }
 0x6a7   : > { %v1590_v1 = vpack.c.bf16 %v1558_v20, %v1555_v25 }
 0x6a9   : > { %4377 = vmatprep.mubr.bf16.mxu0 %v1590_v1 }
 0x6aa   : > { %4378 = vmatmul.mubr.bf16.gmra.mrb[56].mxu0 %v1591_v45 }
 0x6ab   : > { %v4351_v3 = vpop.f32.mrb[44].mxu1 }
 0x6ac   : > { %v1571_v55 = vpop.f32.mrb[45].mxu1 }
 0x6ad   : > { %v4352_v48 = vpop.f32.mrb[46].mxu1 }
 0x6ae   : > { %v1593_v52 = vpack.c.bf16 %v4352_v48, %v4351_v3  ;;  %v1574_v34 = vpop.f32.mrb[47].mxu1 }
 0x6af   : > { %v1592_v31 = vpack.c.bf16 %v1574_v34, %v1571_v55 }
 0x6b1   : > { %4381 = vmatprep.mubr.bf16.mxu0 %v1592_v31 }
 0x6b2   : > { %4382 = vmatmul.mubr.bf16.gmra.mrb[60].mxu0 %v1593_v52 }
 0x6b3   : > { %4449 = vmatprep.mubr.f32.mxu0 %v5888_v6 }
 0x76d   : > { %v4371_v47 = vpop.f32.mrb[48].mxu0 }
 0x76e   : > { %v1689_v49 = vadd.f32 %v4371_v47, %v1597_v36  ;;  %v1680_v51 = vpop.f32.mrb[49].mxu0 }
 0x76f   : > { %v1681_v38 = vadd.f32 %v1680_v51, %v1597_v36  ;;  %v4372_v11 = vpop.f32.mrb[50].mxu0 }
 0x770   : > { %v1692_v56 = vadd.f32 %v4372_v11, %v1597_v36  ;;  %v1683_v23 = vpop.f32.mrb[51].mxu0  ;;  %v1745_v6 = vmax.f32 %v1689_v49, 0.0 }
 0x771   : > { %v1684_v59 = vadd.f32 %v1683_v23, %v1597_v36  ;;  %v1743_v60 = vmax.f32 %v1681_v38, 0.0 }
 0x772   : > { %v1746_v53 = vmax.f32 %v1692_v56, 0.0 }
 0x773   : > { %v1744_v8 = vmax.f32 %v1684_v59, 0.0 }
 0x774   : > { %v1760_v13 = vpack.c.bf16 %v1746_v53, %v1745_v6 }
 0x775   : > { %v1759_v14 = vpack.c.bf16 %v1744_v8, %v1743_v60  ;;  %v4375_v63 = vpop.f32.mrb[52].mxu0 }
 0x776   : > { %v1705_v61 = vadd.f32 %v4375_v63, %v1597_v36  ;;  %v1696_v2 = vpop.f32.mrb[53].mxu0 }
 0x777   : > { %v1697_v17 = vadd.f32 %v1696_v2, %v1597_v36  ;;  %v4376_v0 = vpop.f32.mrb[54].mxu0  ;;  %4401 = vmatprep.mubr.bf16.mxu1 %v1759_v14 }
 0x778   : > { %v1708_v28 = vadd.f32 %v4376_v0, %v1597_v36  ;;  %v1699_v12 = vpop.f32.mrb[55].mxu0  ;;  %4402 = vmatmul.mubr.bf16.vlgmr.msra.gmra.mrb[48].mxu1 %v1760_v13  ;;  %v1749_v43 = vmax.f32 %v1705_v61, 0.0 }
 0x779   : > { %v1700_v25 = vadd.f32 %v1699_v12, %v1597_v36  ;;  %v1747_v20 = vmax.f32 %v1697_v17, 0.0 }
 0x77a   : > { %v1750_v45 = vmax.f32 %v1708_v28, 0.0 }
 0x77b   : > { %v1748_v1 = vmax.f32 %v1700_v25, 0.0 }
 0x77c   : > { %v1762_v3 = vpack.c.bf16 %v1750_v45, %v1749_v43  ;;  %v6281_v43 = vld [vmem:[#allocation7] sm:$0xff]  ;;  %v1770_v45 = vrot.slane %v6277_v50, %v5893_v7 }
 0x77d   : > { %v1761_v55 = vpack.c.bf16 %v1748_v1, %v1747_v20  ;;  %v4379_v48 = vpop.f32.mrb[56].mxu0  ;;  %7370 = vst [vmem:[#allocation45_spill] sm:$0xff] %v6281_v43 }
 0x77e   : > { %v1721_v52 = vadd.f32 %v4379_v48, %v1597_v36  ;;  %v1712_v34 = vpop.f32.mrb[57].mxu0 }
 0x77f   : > { %v1713_v31 = vadd.f32 %v1712_v34, %v1597_v36  ;;  %v4380_v24 = vpop.f32.mrb[58].mxu0  ;;  %4405 = vmatprep.mubr.bf16.mxu1 %v1761_v55 }
 0x780   : > { %v1724_v35 = vadd.f32 %v4380_v24, %v1597_v36  ;;  %v1715_v47 = vpop.f32.mrb[59].mxu0  ;;  %4406 = vmatmul.mubr.bf16.gmra.mrb[52].mxu1 %v1762_v3  ;;  %v1753_v51 = vmax.f32 %v1721_v52, 0.0 }
 0x781   : > { %v1716_v49 = vadd.f32 %v1715_v47, %v1597_v36  ;;  %v1751_v11 = vmax.f32 %v1713_v31, 0.0 }
 0x782   : > { %v1754_v38 = vmax.f32 %v1724_v35, 0.0 }
 0x783   : > { %v1752_v56 = vmax.f32 %v1716_v49, 0.0 }
 0x784   : > { %v1764_v23 = vpack.c.bf16 %v1754_v38, %v1753_v51 }
 0x785   : > { %v1763_v59 = vpack.c.bf16 %v1752_v56, %v1751_v11  ;;  %v4383_v6 = vpop.f32.mrb[60].mxu0 }
 0x786   : > { %v1737_v53 = vadd.f32 %v4383_v6, %v1597_v36  ;;  %v1728_v60 = vpop.f32.mrb[61].mxu0 }
 0x787   : > { %v1729_v8 = vadd.f32 %v1728_v60, %v1597_v36  ;;  %v4384_v13 = vpop.f32.mrb[62].mxu0  ;;  %4409 = vmatprep.mubr.bf16.mxu1 %v1763_v59 }
 0x788   : > { %v1740_v14 = vadd.f32 %v4384_v13, %v1597_v36  ;;  %v1731_v63 = vpop.f32.mrb[63].mxu0  ;;  %4410 = vmatmul.mubr.bf16.gmra.mrb[56].mxu1 %v1764_v23  ;;  %v1757_v2 = vmax.f32 %v1737_v53, 0.0 }
 0x789   : > { %v1732_v61 = vadd.f32 %v1731_v63, %v1597_v36  ;;  %v1755_v0 = vmax.f32 %v1729_v8, 0.0 }
 0x78a   : > { %v1758_v17 = vmax.f32 %v1740_v14, 0.0 }
 0x78b   : > { %v1756_v28 = vmax.f32 %v1732_v61, 0.0 }
 0x78c   : > { %v1766_v12 = vpack.c.bf16 %v1758_v17, %v1757_v2 }
 0x78d   : > { %v1765_v25 = vpack.c.bf16 %v1756_v28, %v1755_v0 }
 0x78f   : > { %4413 = vmatprep.mubr.bf16.mxu1 %v1765_v25 }
 0x790   : > { %4414 = vmatmul.mubr.bf16.gmra.mrb[60].mxu1 %v1766_v12 }
 0x791   : > { %4505 = vmatprep.mubr.f32.mxu1 %v6281_v43 }
 0x84b   : > { %v4403_v20 = vpop.f32.mrb[48].mxu1 }
 0x84c   : > { %v1853_v1 = vpop.f32.mrb[49].mxu1  ;;  %v1862_v52 = vadd.f32 %v4403_v20, %v1770_v45 }
 0x84d   : > { %v1854_v3 = vadd.f32 %v1853_v1, %v1770_v45  ;;  %v4404_v55 = vpop.f32.mrb[50].mxu1 }
 0x84e   : > { %v1865_v36 = vadd.f32 %v4404_v55, %v1770_v45  ;;  %v1856_v48 = vpop.f32.mrb[51].mxu1  ;;  %v6292_v47 = vmax.f32 %v1862_v52, 0.0 }
 0x84f   : > { %v1857_v34 = vadd.f32 %v1856_v48, %v1770_v45  ;;  %v6286_v31 = vmax.f32 %v1854_v3, 0.0 }
 0x850   : > { %v6288_v24 = vmax.f32 %v1865_v36, 0.0 }
 0x851   : > { %v6290_v35 = vmax.f32 %v1857_v34, 0.0 }
 0x852   : > { %v4805_v23 = vpack.c.bf16 %v6288_v24, %v6292_v47 }
 0x853   : > { %v4407_v49 = vpop.f32.mrb[52].mxu1  ;;  %v4801_v51 = vpack.c.bf16 %v6290_v35, %v6286_v31 }
 0x854   : > { %v1869_v38 = vpop.f32.mrb[53].mxu1  ;;  %v1878_v53 = vadd.f32 %v4407_v49, %v1770_v45 }
 0x855   : > { %v1870_v11 = vadd.f32 %v1869_v38, %v1770_v45  ;;  %v4408_v56 = vpop.f32.mrb[54].mxu1  ;;  %4802 = vmatprep.subr.bf16.mxu0 %v4801_v51 }
 0x856   : > { %v1881_v59 = vadd.f32 %v4408_v56, %v1770_v45  ;;  %v1872_v6 = vpop.f32.mrb[55].mxu1  ;;  %4804 = vmatpush3.bf16.msra.mxu0 %v4801_v51  ;;  %v6304_v63 = vmax.f32 %v1878_v53, 0.0 }
 0x857   : > { %v1873_v60 = vadd.f32 %v1872_v6, %v1770_v45  ;;  %4806 = vmatprep.subr.bf16.mxu0 %v4805_v23  ;;  %v6298_v8 = vmax.f32 %v1870_v11, 0.0 }
 0x858   : > { %v6300_v13 = vmax.f32 %v1881_v59, 0.0 }
 0x859   : > { %v6302_v14 = vmax.f32 %v1873_v60, 0.0 }
 0x85a   : > { %4808 = vmatpush3.bf16.msra.mxu0 %v4805_v23  ;;  %v4813_v12 = vpack.c.bf16 %v6300_v13, %v6304_v63 }
 0x85b   : > { %v4411_v61 = vpop.f32.mrb[56].mxu1  ;;  %v4809_v2 = vpack.c.bf16 %v6302_v14, %v6298_v8 }
 0x85c   : > { %v1885_v17 = vpop.f32.mrb[57].mxu1  ;;  %v1894_v1 = vadd.f32 %v4411_v61, %v1770_v45 }
 0x85d   : > { %v1886_v0 = vadd.f32 %v1885_v17, %v1770_v45  ;;  %v4412_v28 = vpop.f32.mrb[58].mxu1  ;;  %4810 = vmatprep.subr.bf16.mxu0 %v4809_v2 }
 0x85e   : > { %v1897_v25 = vadd.f32 %v4412_v28, %v1770_v45  ;;  %v1888_v20 = vpop.f32.mrb[59].mxu1  ;;  %4812 = vmatpush3.bf16.msra.mxu0 %v4809_v2  ;;  %v6316_v52 = vmax.f32 %v1894_v1, 0.0  ;;  %v6346_v1 = vld [vmem:[#allocation7 + $0x28] sm:$0xff] }
 0x85f   : > { %v1889_v3 = vadd.f32 %v1888_v20, %v1770_v45  ;;  %4814 = vmatprep.subr.bf16.mxu0 %v4813_v12  ;;  %v6310_v55 = vmax.f32 %v1886_v0, 0.0  ;;  %v6343_v20 = vld [vmem:[#allocation7 + $0x20] sm:$0xff] }
 0x860   : > { %v6312_v36 = vmax.f32 %v1897_v25, 0.0  ;;  %v6340_v25 = vld [vmem:[#allocation7 + $0x18] sm:$0xff] }
 0x861   : > { %v6314_v48 = vmax.f32 %v1889_v3, 0.0  ;;  %v6349_v3 = vld [vmem:[#allocation7 + $0x30] sm:$0xff] }
 0x862   : > { %4816 = vmatpush3.bf16.msra.mxu0 %v4813_v12  ;;  %v4821_v56 = vpack.c.bf16 %v6312_v36, %v6316_v52  ;;  %v6337_v12 = vld [vmem:[#allocation7 + $0x10] sm:$0xff] }
 0x863   : > { %v4415_v34 = vpop.f32.mrb[60].mxu1  ;;  %v4817_v49 = vpack.c.bf16 %v6314_v48, %v6310_v55 }
 0x864   : > { %v1901_v51 = vpop.f32.mrb[61].mxu1  ;;  %v1910_v6 = vadd.f32 %v4415_v34, %v1770_v45  ;;  %v6352_v34 = vld [vmem:[#allocation7 + $0x38] sm:$0xff] }
 0x865   : > { %v1902_v38 = vadd.f32 %v1901_v51, %v1770_v45  ;;  %v4416_v11 = vpop.f32.mrb[62].mxu1  ;;  %4818 = vmatprep.subr.bf16.mxu0 %v4817_v49  ;;  %v6358_v51 = vld [vmem:[#allocation7 + $0x48] sm:$0xff] }
 0x866   : > { %v1913_v23 = vadd.f32 %v4416_v11, %v1770_v45  ;;  %v1904_v59 = vpop.f32.mrb[63].mxu1  ;;  %4820 = vmatpush3.bf16.msra.mxu0 %v4817_v49  ;;  %v6328_v17 = vmax.f32 %v1910_v6, 0.0  ;;  %v6355_v49 = vld [vmem:[#allocation7 + $0x40] sm:$0xff]  ;;  %v6364_v11 = vld [vmem:[#allocation7 + $0x58] sm:$0xff] }
 0x867   : > { %v1905_v53 = vadd.f32 %v1904_v59, %v1770_v45  ;;  %4822 = vmatprep.subr.bf16.mxu0 %v4821_v56  ;;  %v6322_v60 = vmax.f32 %v1902_v38, 0.0  ;;  %v6334_v45 = vld [vmem:[#allocation7 + $0x8] sm:$0xff]  ;;  %v6361_v38 = vld [vmem:[#allocation7 + $0x50] sm:$0xff]  ;;  %v6376_v6 = vld [vmem:[#allocation7 + $0x78] sm:$0xff] }
 0x868   : > { %v6324_v61 = vmax.f32 %v1913_v23, 0.0  ;;  %v6370_v23 = vld [vmem:[#allocation7 + $0x68] sm:$0xff]  ;;  %v6373_v59 = vld [vmem:[#allocation7 + $0x70] sm:$0xff] }
 0x869   : > { %v6326_v2 = vmax.f32 %v1905_v53, 0.0  ;;  %v5220_v53 = vld [vmem:[%s5823_s3] sm:$0xff]  }
 0x86a   : > { %4824 = vmatpush3.bf16.msra.mxu0 %v4821_v56  ;;  %v4829_v28 = vpack.c.bf16 %v6324_v61, %v6328_v17  ;;  %v6367_v56 = vld [vmem:[#allocation7 + $0x60] sm:$0xff] }
 0x86b   : > { %v4825_v0 = vpack.c.bf16 %v6326_v2, %v6322_v60 }
 0x86d   : > { %4826 = vmatprep.subr.bf16.mxu0 %v4825_v0 }
 0x86e   : > { %4828 = vmatpush3.bf16.msra.mxu0 %v4825_v0 }
 0x86f   : > { %4830 = vmatprep.subr.bf16.mxu0 %v4829_v28 }
 0x872   : > { %4832 = vmatpush3.bf16.msra.mxu0 %v4829_v28 }
 0x875   : > { %4450 = vmatmul.mubr.f32.vlgmr.msra.gmra.mrb[64].mxu0 %v6334_v45 }
 0x876   : > { %4452 = vmatprep.mubr.f32.mxu0 %v6337_v12 }
 0x879   : > { %4453 = vmatmul.mubr.f32.gmra.mrb[66].mxu0 %v6340_v25 }
 0x87a   : > { %4455 = vmatprep.mubr.f32.mxu0 %v6343_v20 }
 0x87d   : > { %4456 = vmatmul.mubr.f32.gmra.mrb[68].mxu0 %v6346_v1 }
 0x87e   : > { %4458 = vmatprep.mubr.f32.mxu0 %v6349_v3 }
 0x881   : > { %4459 = vmatmul.mubr.f32.gmra.mrb[70].mxu0 %v6352_v34 }
 0x882   : > { %4461 = vmatprep.mubr.f32.mxu0 %v6355_v49 }
 0x885   : > { %4462 = vmatmul.mubr.f32.gmra.mrb[72].mxu0 %v6358_v51 }
 0x886   : > { %4464 = vmatprep.mubr.f32.mxu0 %v6361_v38 }
 0x889   : > { %4465 = vmatmul.mubr.f32.gmra.mrb[74].mxu0 %v6364_v11 }
 0x88a   : > { %4467 = vmatprep.mubr.f32.mxu0 %v6367_v56 }
 0x88d   : > { %4468 = vmatmul.mubr.f32.gmra.mrb[76].mxu0 %v6370_v23 }
 0x88e   : > { %4470 = vmatprep.mubr.f32.mxu0 %v6373_v59 }
 0x891   : > { %4471 = vmatmul.mubr.f32.gmra.mrb[78].mxu0 %v6376_v6 }
 0x892   : > { %4545 = vmatprep.mubr.bf16.mxu0 %v5220_v53 }
 0x948   : > { %v6380_v0 = vpop.f32.mrb[64].mxu0 }
 0x949   : > { %v2078_v28 = vsub.f32 %v6290_v35, %v6380_v0  ;;  %v6384_v33 = vpop.f32.mrb[65].mxu0 }
 0x94a   : > { %v2077_v21 = vsub.f32 %v6286_v31, %v6384_v33 }
 0x94b   : > { %v2094_v15 = vmul.f32 %v2078_v28, %v2078_v28 }
 0x94c   : > { %v2093_v39 = vmul.f32 %v2077_v21, %v2077_v21  ;;  %v6388_v37 = vpop.f32.mrb[66].mxu0 }
 0x94d   : > { %v2080_v16 = vsub.f32 %v6288_v24, %v6388_v37  ;;  %v6392_v9 = vpop.f32.mrb[67].mxu0 }
 0x94e   : > { %v2079_v53 = vsub.f32 %v6292_v47, %v6392_v9  ;;  %v4833_v22 = vpack.c.bf16 %v2094_v15, %v2093_v39 }
 0x94f   : > { %v2096_v18 = vmul.f32 %v2080_v16, %v2080_v16 }
 0x950   : > { %v2095_v44 = vmul.f32 %v2079_v53, %v2079_v53  ;;  %v6396_v42 = vpop.f32.mrb[68].mxu0  ;;  %4834 = vmatprep.subr.bf16.mxu1 %v4833_v22 }
 0x951   : > { %v2082_v28 = vsub.f32 %v6302_v14, %v6396_v42  ;;  %v6400_v21 = vpop.f32.mrb[69].mxu0  ;;  %4836 = vmatpush3.bf16.msra.mxu1 %v4833_v22 }
 0x952   : > { %v2081_v57 = vsub.f32 %v6298_v8, %v6400_v21  ;;  %v4837_v62 = vpack.c.bf16 %v2096_v18, %v2095_v44 }
 0x953   : > { %v2098_v54 = vmul.f32 %v2082_v28, %v2082_v28 }
 0x954   : > { %v2097_v29 = vmul.f32 %v2081_v57, %v2081_v57  ;;  %v6404_v5 = vpop.f32.mrb[70].mxu0  ;;  %4838 = vmatprep.subr.bf16.mxu1 %v4837_v62 }
 0x955   : > { %v2084_v15 = vsub.f32 %v6300_v13, %v6404_v5  ;;  %v6408_v39 = vpop.f32.mrb[71].mxu0  ;;  %4840 = vmatpush3.bf16.msra.mxu1 %v4837_v62 }
 0x956   : > { %v2083_v16 = vsub.f32 %v6304_v63, %v6408_v39  ;;  %v4841_v53 = vpack.c.bf16 %v2098_v54, %v2097_v29 }
 0x957   : > { %v2100_v22 = vmul.f32 %v2084_v15, %v2084_v15 }
 0x958   : > { %v2099_v7 = vmul.f32 %v2083_v16, %v2083_v16  ;;  %v6412_v10 = vpop.f32.mrb[72].mxu0  ;;  %4842 = vmatprep.subr.bf16.mxu1 %v4841_v53 }
 0x959   : > { %v2086_v57 = vsub.f32 %v6314_v48, %v6412_v10  ;;  %v6416_v18 = vpop.f32.mrb[73].mxu0  ;;  %4844 = vmatpush3.bf16.msra.mxu1 %v4841_v53 }
 0x95a   : > { %v2085_v44 = vsub.f32 %v6310_v55, %v6416_v18  ;;  %v4845_v28 = vpack.c.bf16 %v2100_v22, %v2099_v7 }
 0x95b   : > { %v2102_v62 = vmul.f32 %v2086_v57, %v2086_v57 }
 0x95c   : > { %v2101_v43 = vmul.f32 %v2085_v44, %v2085_v44  ;;  %v6420_v41 = vpop.f32.mrb[74].mxu0  ;;  %4846 = vmatprep.subr.bf16.mxu1 %v4845_v28 }
 0x95d   : > { %v2088_v29 = vsub.f32 %v6312_v36, %v6420_v41  ;;  %v6424_v54 = vpop.f32.mrb[75].mxu0  ;;  %4848 = vmatpush3.bf16.msra.mxu1 %v4845_v28 }
 0x95e   : > { %v2087_v15 = vsub.f32 %v6316_v52, %v6424_v54  ;;  %v4849_v16 = vpack.c.bf16 %v2102_v62, %v2101_v43 }
 0x95f   : > { %v2104_v53 = vmul.f32 %v2088_v29, %v2088_v29 }
 0x960   : > { %v2103_v46 = vmul.f32 %v2087_v15, %v2087_v15  ;;  %v6428_v58 = vpop.f32.mrb[76].mxu0  ;;  %4850 = vmatprep.subr.bf16.mxu1 %v4849_v16 }
 0x961   : > { %v2090_v7 = vsub.f32 %v6326_v2, %v6428_v58  ;;  %v6432_v22 = vpop.f32.mrb[77].mxu0  ;;  %4852 = vmatpush3.bf16.msra.mxu1 %v4849_v16 }
 0x962   : > { %v2089_v57 = vsub.f32 %v6322_v60, %v6432_v22  ;;  %v4853_v44 = vpack.c.bf16 %v2104_v53, %v2103_v46 }
 0x963   : > { %v2106_v28 = vmul.f32 %v2090_v7, %v2090_v7 }
 0x964   : > { %v2105_v40 = vmul.f32 %v2089_v57, %v2089_v57  ;;  %v6436_v27 = vpop.f32.mrb[78].mxu0  ;;  %4854 = vmatprep.subr.bf16.mxu1 %v4853_v44 }
 0x965   : > { %v2092_v43 = vsub.f32 %v6324_v61, %v6436_v27  ;;  %v6440_v62 = vpop.f32.mrb[79].mxu0  ;;  %4856 = vmatpush3.bf16.msra.mxu1 %v4853_v44  ;;  %v6466_v44 = vrot.slane %v6277_v50, %v6078_v30 }
 0x966   : > { %v2091_v29 = vsub.f32 %v6328_v17, %v6440_v62  ;;  %v4857_v15 = vpack.c.bf16 %v2106_v28, %v2105_v40 }
 0x967   : > { %v2108_v16 = vmul.f32 %v2092_v43, %v2092_v43 }
 0x968   : > { %v2107_v26 = vmul.f32 %v2091_v29, %v2091_v29  ;;  %4858 = vmatprep.subr.bf16.mxu1 %v4857_v15 }
 0x969   : > { %4860 = vmatpush3.bf16.msra.mxu1 %v4857_v15 }
 0x96a   : > { %v4861_v46 = vpack.c.bf16 %v2108_v16, %v2107_v26 }
 0x96c   : > { %4862 = vmatprep.subr.bf16.mxu1 %v4861_v46 }
 0x96d   : > { %4864 = vmatpush3.bf16.msra.mxu1 %v4861_v46 }
 0x970   : > { %4506 = vmatmul.mubr.f32.vlgmr.msra.gmra.mrb[64].mxu1 %v6334_v45 }
 0x971   : > { %4508 = vmatprep.mubr.f32.mxu1 %v6337_v12 }
 0x974   : > { %4509 = vmatmul.mubr.f32.gmra.mrb[66].mxu1 %v6340_v25 }
 0x975   : > { %4511 = vmatprep.mubr.f32.mxu1 %v6343_v20 }
 0x978   : > { %4512 = vmatmul.mubr.f32.gmra.mrb[68].mxu1 %v6346_v1 }
 0x979   : > { %4514 = vmatprep.mubr.f32.mxu1 %v6349_v3 }
 0x97c   : > { %4515 = vmatmul.mubr.f32.gmra.mrb[70].mxu1 %v6352_v34 }
 0x97d   : > { %4517 = vmatprep.mubr.f32.mxu1 %v6355_v49 }
 0x980   : > { %4518 = vmatmul.mubr.f32.gmra.mrb[72].mxu1 %v6358_v51 }
 0x981   : > { %4520 = vmatprep.mubr.f32.mxu1 %v6361_v38  ;;  %v6461_v38 = vrot.slane %v6277_v50, %v6071_v19 }
 0x984   : > { %4521 = vmatmul.mubr.f32.gmra.mrb[74].mxu1 %v6364_v11 }
 0x985   : > { %4523 = vmatprep.mubr.f32.mxu1 %v6367_v56 }
 0x988   : > { %4524 = vmatmul.mubr.f32.gmra.mrb[76].mxu1 %v6370_v23 }
 0x989   : > { %4526 = vmatprep.mubr.f32.mxu1 %v6373_v59 }
 0x98c   : > { %4527 = vmatmul.mubr.f32.gmra.mrb[78].mxu1 %v6376_v6 }
 0xa43   : > { %v4507_v26 = vpop.f32.mrb[64].mxu1 }
 0xa44   : > { %v2181_v40 = vadd.f32 1e-05, %v4507_v26  ;;  %v2175_v45 = vpop.f32.mrb[65].mxu1 }
 0xa45   : > { %v2176_v12 = vadd.f32 1e-05, %v2175_v45 }
 0xa46   : > { %5133 = vrsqrt.f32 %v2181_v40 }
 0xa47   : > { %5135 = vrsqrt.f32 %v2176_v12  ;;  %v4510_v25 = vpop.f32.mrb[66].mxu1 }
 0xa48   : > { %v2191_v20 = vadd.f32 1e-05, %v4510_v25  ;;  %v2185_v1 = vpop.f32.mrb[67].mxu1 }
 0xa49   : > { %v2186_v3 = vadd.f32 1e-05, %v2185_v1 }
 0xa4a   : > { %5137 = vrsqrt.f32 %v2191_v20 }
 0xa4b   : > { %5139 = vrsqrt.f32 %v2186_v3  ;;  %v4513_v34 = vpop.f32.mrb[68].mxu1 }
 0xa4c   : > { %v2201_v49 = vadd.f32 1e-05, %v4513_v34  ;;  %v2195_v51 = vpop.f32.mrb[69].mxu1 }
 0xa4d   : > { %v2196_v11 = vadd.f32 1e-05, %v2195_v51 }
 0xa4e   : > { %5141 = vrsqrt.f32 %v2201_v49 }
 0xa4f   : > { %5143 = vrsqrt.f32 %v2196_v11  ;;  %v4516_v56 = vpop.f32.mrb[70].mxu1 }
 0xa50   : > { %v5134_v23 = vpop.eup %5133  ;;  %v2211_v59 = vadd.f32 1e-05, %v4516_v56  ;;  %v2205_v6 = vpop.f32.mrb[71].mxu1 }
 0xa51   : > { %v5136_v53 = vpop.eup %5135  ;;  %v2206_v7 = vadd.f32 1e-05, %v2205_v6  ;;  %v2275_v57 = vmul.f32 %v5134_v23, %v6461_v38 }
 0xa52   : > { %5145 = vrsqrt.f32 %v2211_v59  ;;  %v2274_v28 = vmul.f32 %v5136_v53, %v6461_v38 }
 0xa53   : > { %5147 = vrsqrt.f32 %v2206_v7  ;;  %v4519_v43 = vpop.f32.mrb[72].mxu1  ;;  %v2291_v29 = vmul.f32 %v6380_v0, %v2275_v57  ;;  %v2327_v50 = vmul.f32 %v2275_v57, %v6290_v35 }
 0xa54   : > { %v5138_v15 = vpop.eup %5137  ;;  %v2221_v16 = vadd.f32 1e-05, %v4519_v43  ;;  %v2215_v46 = vpop.f32.mrb[73].mxu1  ;;  %v2290_v26 = vmul.f32 %v2274_v28, %v6384_v33  ;;  %v2326_v0 = vmul.f32 %v2274_v28, %v6286_v31 }
 0xa55   : > { %v5140_v40 = vpop.eup %5139  ;;  %v2277_v45 = vmul.f32 %v5138_v15, %v6461_v38  ;;  %v2216_v12 = vadd.f32 1e-05, %v2215_v46  ;;  %v2311_v25 = vsub.f32 %v6466_v44, %v2291_v29 }
 0xa56   : > { %v2276_v20 = vmul.f32 %v5140_v40, %v6461_v38  ;;  %5149 = vrsqrt.f32 %v2221_v16  ;;  %v2310_v1 = vsub.f32 %v6466_v44, %v2290_v26 }
 0xa57   : > { %5151 = vrsqrt.f32 %v2216_v12  ;;  %v4522_v3 = vpop.f32.mrb[74].mxu1  ;;  %v6477_v34 = vadd.f32 %v2327_v50, %v2311_v25  ;;  %v2293_v33 = vmul.f32 %v6388_v37, %v2277_v45  ;;  %v2329_v23 = vmul.f32 %v2277_v45, %v6288_v24 }
 0xa58   : > { %v5142_v49 = vpop.eup %5141  ;;  %v2231_v51 = vadd.f32 1e-05, %v4522_v3  ;;  %v2225_v11 = vpop.f32.mrb[75].mxu1  ;;  %v6480_v56 = vadd.f32 %v2326_v0, %v2310_v1  ;;  %v2292_v35 = vmul.f32 %v2276_v20, %v6392_v9  ;;  %v2328_v37 = vmul.f32 %v2276_v20, %v6292_v47 }
 0xa59   : > { %v5144_v59 = vpop.eup %5143  ;;  %v2279_v6 = vmul.f32 %v5142_v49, %v6461_v38  ;;  %v2226_v53 = vadd.f32 1e-05, %v2225_v11  ;;  %2424 = vrot.lane.b32.xlu1 %v6477_v34, %s5503_s27  ;;  %v2313_v31 = vsub.f32 %v6466_v44, %v2293_v33 }
 0xa5a   : > { %v2278_v7 = vmul.f32 %v5144_v59, %v6461_v38  ;;  %5153 = vrsqrt.f32 %v2231_v51  ;;  %2422 = vrot.lane.b32.xlu0 %v6480_v56, %s5503_s27  ;;  %v2506_v9 = vpack.c.bf16 %v6477_v34, %v6480_v56  ;;  %v2312_v24 = vsub.f32 %v6466_v44, %v2292_v35 }
 0xa5b   : > { %5155 = vrsqrt.f32 %v2226_v53  ;;  %v4525_v57 = vpop.f32.mrb[76].mxu1  ;;  %v6495_v28 = vadd.f32 %v2329_v23, %v2313_v31  ;;  %v2295_v43 = vmul.f32 %v6396_v42, %v2279_v6  ;;  %v2331_v26 = vmul.f32 %v2279_v6, %v6302_v14 }
 0xa5c   : > { %v5146_v29 = vpop.eup %5145  ;;  %v2241_v15 = vadd.f32 1e-05, %v4525_v57  ;;  %v2235_v47 = vpop.f32.mrb[77].mxu1  ;;  %4529 = vmatprep.subr.bf16.mxu0 %v2506_v9  ;;  %v6498_v16 = vadd.f32 %v2328_v37, %v2312_v24  ;;  %v2294_v46 = vmul.f32 %v2278_v7, %v6400_v21  ;;  %v2330_v50 = vmul.f32 %v2278_v7, %v6298_v8 }
 0xa5d   : > { %v5148_v40 = vpop.eup %5147  ;;  %v2281_v45 = vmul.f32 %v5146_v29, %v6461_v38  ;;  %v2236_v12 = vadd.f32 1e-05, %v2235_v47  ;;  %4530 = vmatpush3.bf16.msra.mxu0 %v2506_v9  ;;  %v2315_v25 = vsub.f32 %v6466_v44, %v2295_v43 }
 0xa5e   : > { %v2280_v42 = vmul.f32 %v5148_v40, %v6461_v38  ;;  %5157 = vrsqrt.f32 %v2241_v15  ;;  %v2507_v20 = vpack.c.bf16 %v6495_v28, %v6498_v16  ;;  %v2314_v1 = vsub.f32 %v6466_v44, %v2294_v46 }
 0xa5f   : > { %5159 = vrsqrt.f32 %v2236_v12  ;;  %v4528_v21 = vpop.f32.mrb[78].mxu1  ;;  %v6509_v14 = vadd.f32 %v2331_v26, %v2315_v25  ;;  %v2297_v0 = vmul.f32 %v6404_v5, %v2281_v45  ;;  %v2333_v11 = vmul.f32 %v2281_v45, %v6300_v13 }
 0xa60   : > { %v5150_v3 = vpop.eup %5149  ;;  %v2251_v33 = vadd.f32 1e-05, %v4528_v21  ;;  %v2245_v49 = vpop.f32.mrb[79].mxu1  ;;  %4531 = vmatprep.subr.bf16.mxu0 %v2507_v20  ;;  %v6512_v51 = vadd.f32 %v2330_v50, %v2314_v1  ;;  %v2296_v8 = vmul.f32 %v2280_v42, %v6408_v39  ;;  %v2332_v53 = vmul.f32 %v2280_v42, %v6304_v63 }
 0xa61   : > { %v5152_v35 = vpop.eup %5151  ;;  %v2283_v23 = vmul.f32 %v5150_v3, %v6461_v38  ;;  %v2246_v59 = vadd.f32 1e-05, %v2245_v49  ;;  %4532 = vmatpush3.bf16.msra.mxu0 %v2507_v20  ;;  %v2317_v6 = vsub.f32 %v6466_v44, %v2297_v0 }
 0xa62   : > { %v2282_v5 = vmul.f32 %v5152_v35, %v6461_v38  ;;  %5161 = vrsqrt.f32 %v2251_v33  ;;  %v2508_v31 = vpack.c.bf16 %v6509_v14, %v6512_v51  ;;  %v2316_v37 = vsub.f32 %v6466_v44, %v2296_v8 }
 0xa63   : > { %5163 = vrsqrt.f32 %v2246_v59  ;;  %v6523_v39 = vadd.f32 %v2333_v11, %v2317_v6  ;;  %v2299_v13 = vmul.f32 %v6412_v10, %v2283_v23  ;;  %v2335_v29 = vmul.f32 %v2283_v23, %v6314_v48 }
 0xa64   : > { %v5154_v7 = vpop.eup %5153  ;;  %4533 = vmatprep.subr.bf16.mxu0 %v2508_v31  ;;  %v6526_v9 = vadd.f32 %v2332_v53, %v2316_v37  ;;  %v2298_v24 = vmul.f32 %v2282_v5, %v6416_v18  ;;  %v2334_v46 = vmul.f32 %v2282_v5, %v6310_v55 }
 0xa65   : > { %v5156_v63 = vpop.eup %5155  ;;  %v2285_v57 = vmul.f32 %v5154_v7, %v6461_v38  ;;  %4534 = vmatpush3.bf16.msra.mxu0 %v2508_v31  ;;  %v2319_v43 = vsub.f32 %v6466_v44, %v2299_v13  ;;  %v7371_v13 = vld [vmem:[#allocation39_spill] sm:$0xff]  ;;  %v7372_v7 = vld [vmem:[#allocation40_spill] sm:$0xff] }
 0xa66   : > { %v2284_v15 = vmul.f32 %v5156_v63, %v6461_v38  ;;  %v2509_v47 = vpack.c.bf16 %v6523_v39, %v6526_v9  ;;  %v2318_v10 = vsub.f32 %v6466_v44, %v2298_v24  ;;  %v7373_v24 = vld [vmem:[#allocation41_spill] sm:$0xff]  ;;  %v7375_v63 = vld [vmem:[#allocation43_spill] sm:$0xff] }
 0xa67   : > { %v6537_v26 = vadd.f32 %v2335_v29, %v2319_v43  ;;  %v2301_v18 = vmul.f32 %v6420_v41, %v2285_v57  ;;  %v2337_v42 = vmul.f32 %v2285_v57, %v6312_v36  ;;  %v2362_v57 = vsel %vm1380_vm0, %v6512_v51, -inf  ;;  %v5085_v43 = vld [vmem:[#allocation8 + $0x80] sm:$0xff]   ;;  %v5086_v29 = vld [vmem:[#allocation8 + $0x88] sm:$0xff]  }
 0xa68   : > { %v5158_v40 = vpop.eup %5157  ;;  %4535 = vmatprep.subr.bf16.mxu0 %v2509_v47  ;;  %v6540_v45 = vadd.f32 %v2334_v46, %v2318_v10  ;;  %v2300_v12 = vmul.f32 %v2284_v15, %v6424_v54  ;;  %v2336_v1 = vmul.f32 %v2284_v15, %v6316_v52  ;;  %4561 = vmatprep.subr.bf16.mxu1 %v5085_v43  ;;  %v5087_v15 = vld [vmem:[#allocation8 + $0x90] sm:$0xff]   ;;  %v5092_v46 = vld [vmem:[#allocation8 + $0xb8] sm:$0xff]  }
 0xa69   : > { %v5160_v48 = vpop.eup %5159  ;;  %v2287_v25 = vmul.f32 %v5158_v40, %v6461_v38  ;;  %4536 = vmatpush3.bf16.msra.mxu0 %v2509_v47  ;;  %v2321_v50 = vsub.f32 %v6466_v44, %v2301_v18  ;;  %4562 = vmatpush3.bf16.msra.mxu1 %v5085_v43  ;;  %v5088_v47 = vld [vmem:[#allocation8 + $0x98] sm:$0xff]   ;;  %v5091_v10 = vld [vmem:[#allocation8 + $0xb0] sm:$0xff]   ;;  %v2363_v18 = vsel %vm1380_vm0, %v6509_v14, -inf }
 0xa6a   : > { %v2286_v55 = vmul.f32 %v5160_v48, %v6461_v38  ;;  %v2510_v20 = vpack.c.bf16 %v6537_v26, %v6540_v45  ;;  %v2320_v41 = vsub.f32 %v6466_v44, %v2300_v12  ;;  %4563 = vmatprep.subr.bf16.mxu1 %v5086_v29  ;;  %v2366_v40 = vsel %vm1380_vm0, %v6540_v45, -inf }
 0xa6b   : > { %v6551_v21 = vadd.f32 %v2337_v42, %v2321_v50  ;;  %v2303_v54 = vmul.f32 %v6428_v58, %v2287_v25  ;;  %v2339_v11 = vmul.f32 %v2287_v25, %v6326_v2 }
 0xa6c   : > { %v5162_v0 = vpop.eup %5161  ;;  %4537 = vmatprep.subr.bf16.mxu0 %v2510_v20  ;;  %v6554_v3 = vadd.f32 %v2336_v1, %v2320_v41  ;;  %v2302_v33 = vmul.f32 %v2286_v55, %v6432_v22  ;;  %v2338_v23 = vmul.f32 %v2286_v55, %v6322_v60 }
 0xa6d   : > { %v5164_v36 = vpop.eup %5163  ;;  %v2289_v49 = vmul.f32 %v5162_v0, %v6461_v38  ;;  %4538 = vmatpush3.bf16.msra.mxu0 %v2510_v20  ;;  %v2323_v8 = vsub.f32 %v6466_v44, %v2303_v54  ;;  %4564 = vmatpush3.bf16.msra.mxu1 %v5086_v29 }
 0xa6e   : > { %v2288_v52 = vmul.f32 %v5164_v36, %v6461_v38  ;;  %v2511_v35 = vpack.c.bf16 %v6551_v21, %v6554_v3  ;;  %v2322_v58 = vsub.f32 %v6466_v44, %v2302_v33  ;;  %4565 = vmatprep.subr.bf16.mxu1 %v5087_v15  ;;  %v2368_v48 = vsel %vm1380_vm0, %v6554_v3, -inf }
 0xa6f   : > { %v6565_v59 = vadd.f32 %v2339_v11, %v2323_v8  ;;  %v2305_v22 = vmul.f32 %v6436_v27, %v2289_v49  ;;  %v2341_v38 = vmul.f32 %v2289_v49, %v6324_v61  ;;  %v2358_v61 = vsel %vm1380_vm0, %v6480_v56, -inf  ;;  %v7374_v56 = vld [vmem:[#allocation42_spill] sm:$0xff] }
 0xa70   : > { %4539 = vmatprep.subr.bf16.mxu0 %v2511_v35  ;;  %v6568_v6 = vadd.f32 %v2338_v23, %v2322_v58  ;;  %v2304_v53 = vmul.f32 %v2288_v52, %v6440_v62  ;;  %v2340_v60 = vmul.f32 %v2288_v52, %v6328_v17  ;;  %v2359_v17 = vsel %vm1380_vm0, %v6477_v34, -inf }
 0xa71   : > { %4540 = vmatpush3.bf16.msra.mxu0 %v2511_v35  ;;  %v2325_v2 = vsub.f32 %v6466_v44, %v2305_v22  ;;  %v2361_v34 = vsel %vm1380_vm0, %v6495_v28, -inf  ;;  %4566 = vmatpush3.bf16.msra.mxu1 %v5087_v15 }
 0xa72   : > { %v2512_v5 = vpack.c.bf16 %v6565_v59, %v6568_v6  ;;  %v2324_v31 = vsub.f32 %v6466_v44, %v2304_v53  ;;  %v2360_v44 = vsel %vm1380_vm0, %v6498_v16, -inf  ;;  %4567 = vmatprep.subr.bf16.mxu1 %v5088_v47  ;;  %v7377_v53 = vld [vmem:[#allocation45_spill] sm:$0xff] }
 0xa73   : > { %v6577_v37 = vadd.f32 %v2341_v38, %v2325_v2  ;;  %v2370_v2 = vsel %vm1380_vm0, %v6568_v6, -inf  ;;  %v2369_v38 = vsel %vm1380_vm0, %v6551_v21, -inf }
 0xa74   : > { %4541 = vmatprep.subr.bf16.mxu0 %v2512_v5  ;;  %v6579_v27 = vadd.f32 %v2340_v60, %v2324_v31  ;;  %v5094_v31 = vld [vmem:[#allocation10 + $0x88] sm:$0xff]   ;;  %v5095_v60 = vld [vmem:[#allocation10 + $0x90] sm:$0xff]  }
 0xa75   : > { %4542 = vmatpush3.bf16.msra.mxu0 %v2512_v5  ;;  %4568 = vmatpush3.bf16.msra.mxu1 %v5088_v47  ;;  %v5093_v5 = vld [vmem:[#allocation10 + $0x80] sm:$0xff]  }
 0xa76   : > { %v2513_v62 = vpack.c.bf16 %v6577_v37, %v6579_v27 }
 0xa78   : > { %4543 = vmatprep.subr.bf16.mxu0 %v2513_v62 }
 0xa79   : > { %4544 = vmatpush3.bf16.msra.mxu0 %v2513_v62  ;;  %2374 = vmax.xlane.f32.xlu0 %v2358_v61  ;;  %v5097_v62 = vld [vmem:[#allocation10 + $0xa0] sm:$0xff]   ;;  %v5099_v61 = vld [vmem:[#allocation10 + $0xb0] sm:$0xff]  }
 0xa7a   : > { %4593 = vmatprep.subr.bf16.mxu0 %v5093_v5 }
 0xa7c   : > { %4546 = vmatmul.mubr.bf16.vlgmr.msra.gmra.mrb[80].mxu0 %v6249_v32  ;;  %v7376_v32 = vld [vmem:[#allocation44_spill] sm:$0xff] }
 0xa7d   : > { %2376 = vmax.xlane.f32.xlu1 %v2359_v17  ;;  %2378 = vmax.xlane.f32.xlu0 %v2360_v44  ;;  %v5100_v17 = vld [vmem:[#allocation10 + $0xb8] sm:$0xff]   ;;  %v2372_v44 = vsel %vm1380_vm0, %v6579_v27, -inf }
 0xa7e   : > { %4549 = vmatprep.mubr.bf16.mxu0 %v7371_v13  ;;  %4594 = vmatpush3.bf16.msra.mxu0 %v5093_v5  ;;  %v2371_v13 = vsel %vm1380_vm0, %v6565_v59, -inf }
 0xa7f   : > { %4595 = vmatprep.subr.bf16.mxu0 %v5094_v31 }
 0xa82   : > { %4596 = vmatpush3.bf16.msra.mxu0 %v5094_v31 }
 0xa83   : > { %4597 = vmatprep.subr.bf16.mxu0 %v5095_v60 }
 0xa84   : > { %4550 = vmatmul.mubr.bf16.gmra.mrb[84].mxu0 %v7372_v7  ;;  %v2373_v7 = vsel %vm1380_vm0, %v6577_v37, -inf }
 0xa85   : > { %4553 = vmatprep.mubr.bf16.mxu0 %v7373_v24  ;;  %v6667_v24 = vld [vmem:[#allocation11 + $0x10] sm:$0xff] }
 0xa86   : > { %4598 = vmatpush3.bf16.msra.mxu0 %v5095_v60 }
 0xa8c   : > { %4554 = vmatmul.mubr.bf16.gmra.mrb[88].mxu0 %v7374_v56  ;;  %v7378_v56 = vld [vmem:[#allocation21_spill] sm:$0xff] }
 0xa8d   : > { %4557 = vmatprep.mubr.bf16.mxu0 %v7375_v63  ;;  %v2622_v63 = vrot.slane %v6667_v24, %v7378_v56 }
 0xa8e   : > { %2428 = vrot.lane.b32.xlu1 %v6495_v28, %s5503_s27  ;;  %v5089_v28 = vld [vmem:[#allocation8 + $0xa0] sm:$0xff]  }
 0xa8f   : > { %4569 = vmatprep.subr.bf16.mxu1 %v5089_v28 }
 0xa90   : > { %4570 = vmatpush3.bf16.msra.mxu1 %v5089_v28 }
 0xa93   : > { %2430 = vrot.lane.b32.xlu0 %v6512_v51, %s5503_s27  ;;  %v5090_v51 = vld [vmem:[#allocation8 + $0xa8] sm:$0xff]  }
 0xa94   : > { %4558 = vmatmul.mubr.bf16.gmra.mrb[92].mxu0 %v7376_v32  ;;  %4571 = vmatprep.subr.bf16.mxu1 %v5090_v51 }
 0xa95   : > { %4572 = vmatpush3.bf16.msra.mxu1 %v5090_v51 }
 0xa96   : > { %4573 = vmatprep.subr.bf16.mxu1 %v5091_v10 }
 0xa99   : > { %4574 = vmatpush3.bf16.msra.mxu1 %v5091_v10 }
 0xa9a   : > { %4575 = vmatprep.subr.bf16.mxu1 %v5092_v46 }
 0xa9d   : > { %4576 = vmatpush3.bf16.msra.mxu1 %v5092_v46 }
 0xab2   : > { %2380 = vmax.xlane.f32.xlu1 %v2361_v34  ;;  %2382 = vmax.xlane.f32.xlu0 %v2362_v57 }
 0xac3   : > { %2426 = vrot.lane.b32.xlu1 %v6498_v16, %s5503_s27  ;;  %v2364_v16 = vsel %vm1380_vm0, %v6526_v9, -inf }
 0xac7   : > { %2432 = vrot.lane.b32.xlu1 %v6509_v14, %s5503_s27 }
 0xac8   : > { %2434 = vrot.lane.b32.xlu0 %v6526_v9, %s5503_s27  ;;  %v2365_v9 = vsel %vm1380_vm0, %v6523_v39, -inf }
 0xae7   : > { %2386 = vmax.xlane.f32.xlu0 %v2364_v16 }
 0xaeb   : > { %2384 = vmax.xlane.f32.xlu1 %v2363_v18 }
 0xafc   : > { %2436 = vrot.lane.b32.xlu1 %v6523_v39, %s5503_s27  ;;  %v2367_v39 = vsel %vm1380_vm0, %v6537_v26, -inf }
 0xafd   : > { %2438 = vrot.lane.b32.xlu0 %v6540_v45, %s5503_s27 }
 0xb1c   : > { %2390 = vmax.xlane.f32.xlu0 %v2366_v40 }
 0xb20   : > { %2388 = vmax.xlane.f32.xlu1 %v2365_v9 }
 0xb31   : > { %2440 = vrot.lane.b32.xlu1 %v6537_v26, %s5503_s27 }
 0xb32   : > { %2442 = vrot.lane.b32.xlu0 %v6554_v3, %s5503_s27 }
 0xb4f   : > { %v4547_v14 = vpop.f32.mrb[80].mxu0 }
 0xb50   : > { %v2548_v12 = vpop.f32.mrb[81].mxu0 }
 0xb51   : > { %v4548_v25 = vpop.f32.mrb[82].mxu0  ;;  %2394 = vmax.xlane.f32.xlu0 %v2368_v48 }
 0xb52   : > { %v2612_v45 = vpack.c.bf16 %v4548_v25, %v4547_v14  ;;  %v2551_v50 = vpop.f32.mrb[83].mxu0 }
 0xb53   : > { %v2611_v42 = vpack.c.bf16 %v2551_v50, %v2548_v12 }
 0xb55   : > { %2392 = vmax.xlane.f32.xlu1 %v2367_v39  ;;  %4577 = vmatprep.mubr.bf16.mxu1 %v2611_v42 }
 0xb56   : > { %4578 = vmatmul.mubr.bf16.vlgmr.msra.gmra.mrb[80].mxu1 %v2612_v45 }
 0xb57   : > { %v4551_v55 = vpop.f32.mrb[84].mxu0 }
 0xb58   : > { %v2564_v20 = vpop.f32.mrb[85].mxu0 }
 0xb59   : > { %v4552_v41 = vpop.f32.mrb[86].mxu0 }
 0xb5a   : > { %v2614_v1 = vpack.c.bf16 %v4552_v41, %v4551_v55  ;;  %v2567_v54 = vpop.f32.mrb[87].mxu0 }
 0xb5b   : > { %v2613_v0 = vpack.c.bf16 %v2567_v54, %v2564_v20 }
 0xb5d   : > { %4581 = vmatprep.mubr.bf16.mxu1 %v2613_v0 }
 0xb5e   : > { %4582 = vmatmul.mubr.bf16.gmra.mrb[84].mxu1 %v2614_v1 }
 0xb5f   : > { %v4555_v3 = vpop.f32.mrb[88].mxu0 }
 0xb60   : > { %v2580_v33 = vpop.f32.mrb[89].mxu0 }
 0xb61   : > { %v4556_v36 = vpop.f32.mrb[90].mxu0 }
 0xb62   : > { %v2616_v49 = vpack.c.bf16 %v4556_v36, %v4555_v3  ;;  %v2583_v8 = vpop.f32.mrb[91].mxu0 }
 0xb63   : > { %v2615_v11 = vpack.c.bf16 %v2583_v8, %v2580_v33 }
 0xb65   : > { %4585 = vmatprep.mubr.bf16.mxu1 %v2615_v11 }
 0xb66   : > { %2444 = vrot.lane.b32.xlu1 %v6551_v21, %s5503_s27  ;;  %4586 = vmatmul.mubr.bf16.gmra.mrb[88].mxu1 %v2616_v49  ;;  %v5098_v21 = vld [vmem:[#allocation10 + $0xa8] sm:$0xff]  }
 0xb67   : > { %v4559_v26 = vpop.f32.mrb[92].mxu0  ;;  %2446 = vrot.lane.b32.xlu0 %v6568_v6, %s5503_s27  ;;  %v5096_v6 = vld [vmem:[#allocation10 + $0x98] sm:$0xff]  }
 0xb68   : > { %v2596_v52 = vpop.f32.mrb[93].mxu0  ;;  %4599 = vmatprep.subr.bf16.mxu0 %v5096_v6 }
 0xb69   : > { %v4560_v35 = vpop.f32.mrb[94].mxu0  ;;  %4600 = vmatpush3.bf16.msra.mxu0 %v5096_v6 }
 0xb6a   : > { %v2618_v58 = vpack.c.bf16 %v4560_v35, %v4559_v26  ;;  %v2599_v23 = vpop.f32.mrb[95].mxu0  ;;  %4601 = vmatprep.subr.bf16.mxu0 %v5097_v62 }
 0xb6b   : > { %v2617_v22 = vpack.c.bf16 %v2599_v23, %v2596_v52 }
 0xb6d   : > { %4589 = vmatprep.mubr.bf16.mxu1 %v2617_v22  ;;  %4602 = vmatpush3.bf16.msra.mxu0 %v5097_v62 }
 0xb6e   : > { %4590 = vmatmul.mubr.bf16.gmra.mrb[92].mxu1 %v2618_v58  ;;  %4603 = vmatprep.subr.bf16.mxu0 %v5098_v21 }
 0xb6f   : > { %4657 = vmatprep.mubr.f32.mxu1 %v7377_v53 }
 0xb71   : > { %4604 = vmatpush3.bf16.msra.mxu0 %v5098_v21 }
 0xb72   : > { %4605 = vmatprep.subr.bf16.mxu0 %v5099_v61 }
 0xb75   : > { %4606 = vmatpush3.bf16.msra.mxu0 %v5099_v61 }
 0xb76   : > { %4607 = vmatprep.subr.bf16.mxu0 %v5100_v17 }
 0xb79   : > { %4608 = vmatpush3.bf16.msra.mxu0 %v5100_v17 }
 0xb86   : > { %2398 = vmax.xlane.f32.xlu0 %v2370_v2 }
 0xb8a   : > { %2396 = vmax.xlane.f32.xlu1 %v2369_v38 }
 0xb9b   : > { %2448 = vrot.lane.b32.xlu1 %v6565_v59, %s5503_s27 }
 0xb9c   : > { %2450 = vrot.lane.b32.xlu0 %v6579_v27, %s5503_s27 }
 0xbbb   : > { %2402 = vmax.xlane.f32.xlu0 %v2372_v44 }
 0xbbf   : > { %2400 = vmax.xlane.f32.xlu1 %v2371_v13  ;;  %v5221_v13 = vld [vmem:[#allocation7] sm:$0xff] }
 0xbd0   : > { %2452 = vrot.lane.b32.xlu1 %v6577_v37, %s5503_s27 }
 0xbf4   : > { %2404 = vmax.xlane.f32.xlu1 %v2373_v7  ;;  %v7379_v7 = vld [vmem:[#allocation22_spill] sm:$0xff] }
 0xbf5   : > { %v2795_v56 = vrot.slane %v6667_v24, %v7379_v7  ;;  %v6727_v7 = vld [vmem:[#allocation7 + $0x18] sm:$0xff] }
 0xc29   : > { %v4579_v27 = vpop.f32.mrb[80].mxu1 }
 0xc2a   : > { %v2714_v32 = vadd.f32 %v4579_v27, %v2622_v63  ;;  %v2705_v34 = vpop.f32.mrb[81].mxu1 }
 0xc2b   : > { %v2706_v57 = vadd.f32 %v2705_v34, %v2622_v63  ;;  %v4580_v43 = vpop.f32.mrb[82].mxu1 }
 0xc2c   : > { %v2717_v59 = vadd.f32 %v4580_v43, %v2622_v63  ;;  %v2708_v29 = vpop.f32.mrb[83].mxu1  ;;  %v2770_v47 = vmax.f32 %v2714_v32, 0.0 }
 0xc2d   : > { %v2709_v15 = vadd.f32 %v2708_v29, %v2622_v63  ;;  %v2768_v51 = vmax.f32 %v2706_v57, 0.0 }
 0xc2e   : > { %v2771_v28 = vmax.f32 %v2717_v59, 0.0 }
 0xc2f   : > { %v2769_v10 = vmax.f32 %v2709_v15, 0.0 }
 0xc30   : > { %v2785_v46 = vpack.c.bf16 %v2771_v28, %v2770_v47 }
 0xc31   : > { %v2784_v37 = vpack.c.bf16 %v2769_v10, %v2768_v51  ;;  %v4583_v16 = vpop.f32.mrb[84].mxu1 }
 0xc32   : > { %v2730_v18 = vadd.f32 %v4583_v16, %v2622_v63  ;;  %v2721_v40 = vpop.f32.mrb[85].mxu1 }
 0xc33   : > { %v2722_v9 = vadd.f32 %v2721_v40, %v2622_v63  ;;  %v4584_v14 = vpop.f32.mrb[86].mxu1  ;;  %4609 = vmatprep.mubr.bf16.mxu0 %v2784_v37 }
 0xc34   : > { %v2733_v12 = vadd.f32 %v4584_v14, %v2622_v63  ;;  %v2724_v48 = vpop.f32.mrb[87].mxu1  ;;  %4610 = vmatmul.mubr.bf16.vlgmr.msra.gmra.mrb[96].mxu0 %v2785_v46  ;;  %v2774_v45 = vmax.f32 %v2730_v18, 0.0 }
 0xc35   : > { %v2725_v25 = vadd.f32 %v2724_v48, %v2622_v63  ;;  %v2772_v42 = vmax.f32 %v2722_v9, 0.0 }
 0xc36   : > { %v2775_v50 = vmax.f32 %v2733_v12, 0.0 }
 0xc37   : > { %v2773_v39 = vmax.f32 %v2725_v25, 0.0 }
 0xc38   : > { %v2787_v55 = vpack.c.bf16 %v2775_v50, %v2774_v45 }
 0xc39   : > { %v2786_v20 = vpack.c.bf16 %v2773_v39, %v2772_v42  ;;  %v4587_v41 = vpop.f32.mrb[88].mxu1 }
 0xc3a   : > { %v2746_v1 = vadd.f32 %v4587_v41, %v2622_v63  ;;  %v2737_v54 = vpop.f32.mrb[89].mxu1 }
 0xc3b   : > { %v2738_v0 = vadd.f32 %v2737_v54, %v2622_v63  ;;  %v4588_v3 = vpop.f32.mrb[90].mxu1  ;;  %4613 = vmatprep.mubr.bf16.mxu0 %v2786_v20 }
 0xc3c   : > { %v2749_v33 = vadd.f32 %v4588_v3, %v2622_v63  ;;  %v2740_v36 = vpop.f32.mrb[91].mxu1  ;;  %4614 = vmatmul.mubr.bf16.gmra.mrb[100].mxu0 %v2787_v55  ;;  %v2778_v8 = vmax.f32 %v2746_v1, 0.0 }
 0xc3d   : > { %v2741_v49 = vadd.f32 %v2740_v36, %v2622_v63  ;;  %v2776_v26 = vmax.f32 %v2738_v0, 0.0 }
 0xc3e   : > { %v2779_v11 = vmax.f32 %v2749_v33, 0.0 }
 0xc3f   : > { %v2777_v52 = vmax.f32 %v2741_v49, 0.0 }
 0xc40   : > { %v2789_v35 = vpack.c.bf16 %v2779_v11, %v2778_v8 }
 0xc41   : > { %v2788_v58 = vpack.c.bf16 %v2777_v52, %v2776_v26  ;;  %v4591_v23 = vpop.f32.mrb[92].mxu1 }
 0xc42   : > { %v2762_v22 = vadd.f32 %v4591_v23, %v2622_v63  ;;  %v2753_v53 = vpop.f32.mrb[93].mxu1 }
 0xc43   : > { %v2754_v2 = vadd.f32 %v2753_v53, %v2622_v63  ;;  %v4592_v38 = vpop.f32.mrb[94].mxu1  ;;  %4617 = vmatprep.mubr.bf16.mxu0 %v2788_v58 }
 0xc44   : > { %v2765_v5 = vadd.f32 %v4592_v38, %v2622_v63  ;;  %v2756_v31 = vpop.f32.mrb[95].mxu1  ;;  %4618 = vmatmul.mubr.bf16.gmra.mrb[104].mxu0 %v2789_v35  ;;  %v2782_v6 = vmax.f32 %v2762_v22, 0.0 }
 0xc45   : > { %v2757_v60 = vadd.f32 %v2756_v31, %v2622_v63  ;;  %v2780_v21 = vmax.f32 %v2754_v2, 0.0 }
 0xc46   : > { %v2783_v62 = vmax.f32 %v2765_v5, 0.0 }
 0xc47   : > { %v2781_v61 = vmax.f32 %v2757_v60, 0.0 }
 0xc48   : > { %v2791_v17 = vpack.c.bf16 %v2783_v62, %v2782_v6 }
 0xc49   : > { %v2790_v44 = vpack.c.bf16 %v2781_v61, %v2780_v21 }
 0xc4b   : > { %4621 = vmatprep.mubr.bf16.mxu0 %v2790_v44  ;;  %v6721_v44 = vld [vmem:[#allocation7 + $0x8] sm:$0xff] }
 0xc4c   : > { %4622 = vmatmul.mubr.bf16.gmra.mrb[108].mxu0 %v2791_v17 }
 0xc4d   : > { %4713 = vmatprep.mubr.f32.mxu0 %v5221_v13  ;;  %v6724_v13 = vld [vmem:[#allocation7 + $0x10] sm:$0xff] }
 0xd07   : > { %v4611_v27 = vpop.f32.mrb[96].mxu0 }
 0xd08   : > { %v2878_v32 = vpop.f32.mrb[97].mxu0  ;;  %v2887_v63 = vadd.f32 %v4611_v27, %v2795_v56  ;;  %v6733_v27 = vld [vmem:[#allocation7 + $0x28] sm:$0xff] }
 0xd09   : > { %v2879_v34 = vadd.f32 %v2878_v32, %v2795_v56  ;;  %v4612_v57 = vpop.f32.mrb[98].mxu0  ;;  %v6736_v32 = vld [vmem:[#allocation7 + $0x30] sm:$0xff] }
 0xd0a   : > { %v2890_v43 = vadd.f32 %v4612_v57, %v2795_v56  ;;  %v2881_v59 = vpop.f32.mrb[99].mxu0  ;;  %v6679_v51 = vmax.f32 %v2887_v63, 0.0  ;;  %v5229_v57 = vld [vmem:[#allocation7 + $0x40] sm:$0xff]  ;;  %v6748_v63 = vld [vmem:[#allocation7 + $0x58] sm:$0xff] }
 0xd0b   : > { %v2882_v29 = vadd.f32 %v2881_v59, %v2795_v56  ;;  %v6673_v15 = vmax.f32 %v2879_v34, 0.0  ;;  %v6739_v34 = vld [vmem:[#allocation7 + $0x38] sm:$0xff]  ;;  %v6745_v59 = vld [vmem:[#allocation7 + $0x50] sm:$0xff] }
 0xd0c   : > { %v6675_v47 = vmax.f32 %v2890_v43, 0.0  ;;  %v6742_v43 = vld [vmem:[#allocation7 + $0x48] sm:$0xff] }
 0xd0d   : > { %v6677_v28 = vmax.f32 %v2882_v29, 0.0  ;;  %v6751_v29 = vld [vmem:[#allocation7 + $0x60] sm:$0xff] }
 0xd0e   : > { %v4869_v40 = vpack.c.bf16 %v6675_v47, %v6679_v51 }
 0xd0f   : > { %v4615_v10 = vpop.f32.mrb[100].mxu0  ;;  %v4865_v46 = vpack.c.bf16 %v6677_v28, %v6673_v15 }
 0xd10   : > { %v2894_v37 = vpop.f32.mrb[101].mxu0  ;;  %v2903_v12 = vadd.f32 %v4615_v10, %v2795_v56  ;;  %v6754_v10 = vld [vmem:[#allocation7 + $0x68] sm:$0xff] }
 0xd11   : > { %v2895_v16 = vadd.f32 %v2894_v37, %v2795_v56  ;;  %v4616_v18 = vpop.f32.mrb[102].mxu0  ;;  %4866 = vmatprep.subr.bf16.mxu1 %v4865_v46  ;;  %v6760_v37 = vld [vmem:[#allocation7 + $0x78] sm:$0xff] }
 0xd12   : > { %v2906_v9 = vadd.f32 %v4616_v18, %v2795_v56  ;;  %v2897_v14 = vpop.f32.mrb[103].mxu0  ;;  %4868 = vmatpush3.bf16.msra.mxu1 %v4865_v46  ;;  %v6691_v42 = vmax.f32 %v2903_v12, 0.0  ;;  %v6757_v46 = vld [vmem:[#allocation7 + $0x70] sm:$0xff] }
 0xd13   : > { %v2898_v48 = vadd.f32 %v2897_v14, %v2795_v56  ;;  %4870 = vmatprep.subr.bf16.mxu1 %v4869_v40  ;;  %v6685_v25 = vmax.f32 %v2895_v16, 0.0 }
 0xd14   : > { %v6687_v45 = vmax.f32 %v2906_v9, 0.0 }
 0xd15   : > { %v6689_v50 = vmax.f32 %v2898_v48, 0.0 }
 0xd16   : > { %4872 = vmatpush3.bf16.msra.mxu1 %v4869_v40  ;;  %v4877_v54 = vpack.c.bf16 %v6687_v45, %v6691_v42 }
 0xd17   : > { %v4619_v39 = vpop.f32.mrb[104].mxu0  ;;  %v4873_v55 = vpack.c.bf16 %v6689_v50, %v6685_v25 }
 0xd18   : > { %v2910_v20 = vpop.f32.mrb[105].mxu0  ;;  %v2919_v33 = vadd.f32 %v4619_v39, %v2795_v56 }
 0xd19   : > { %v2911_v41 = vadd.f32 %v2910_v20, %v2795_v56  ;;  %v4620_v1 = vpop.f32.mrb[106].mxu0  ;;  %4874 = vmatprep.subr.bf16.mxu1 %v4873_v55 }
 0xd1a   : > { %v2922_v0 = vadd.f32 %v4620_v1, %v2795_v56  ;;  %v2913_v3 = vpop.f32.mrb[107].mxu0  ;;  %4876 = vmatpush3.bf16.msra.mxu1 %v4873_v55  ;;  %v6703_v26 = vmax.f32 %v2919_v33, 0.0 }
 0xd1b   : > { %v2914_v36 = vadd.f32 %v2913_v3, %v2795_v56  ;;  %4878 = vmatprep.subr.bf16.mxu1 %v4877_v54  ;;  %v6697_v49 = vmax.f32 %v2911_v41, 0.0 }
 0xd1c   : > { %v6699_v8 = vmax.f32 %v2922_v0, 0.0 }
 0xd1d   : > { %v6701_v11 = vmax.f32 %v2914_v36, 0.0 }
 0xd1e   : > { %4880 = vmatpush3.bf16.msra.mxu1 %v4877_v54  ;;  %v4885_v53 = vpack.c.bf16 %v6699_v8, %v6703_v26 }
 0xd1f   : > { %v4623_v52 = vpop.f32.mrb[108].mxu0  ;;  %v4881_v35 = vpack.c.bf16 %v6701_v11, %v6697_v49 }
 0xd20   : > { %v2926_v58 = vpop.f32.mrb[109].mxu0  ;;  %v2935_v5 = vadd.f32 %v4623_v52, %v2795_v56 }
 0xd21   : > { %v2927_v23 = vadd.f32 %v2926_v58, %v2795_v56  ;;  %v4624_v22 = vpop.f32.mrb[110].mxu0  ;;  %4882 = vmatprep.subr.bf16.mxu1 %v4881_v35 }
 0xd22   : > { %v2938_v2 = vadd.f32 %v4624_v22, %v2795_v56  ;;  %v2929_v38 = vpop.f32.mrb[111].mxu0  ;;  %4884 = vmatpush3.bf16.msra.mxu1 %v4881_v35  ;;  %v6715_v21 = vmax.f32 %v2935_v5, 0.0 }
 0xd23   : > { %v2930_v31 = vadd.f32 %v2929_v38, %v2795_v56  ;;  %4886 = vmatprep.subr.bf16.mxu1 %v4885_v53  ;;  %v6709_v60 = vmax.f32 %v2927_v23, 0.0  ;;  %v6730_v56 = vld [vmem:[#allocation7 + $0x20] sm:$0xff] }
 0xd24   : > { %v6711_v6 = vmax.f32 %v2938_v2, 0.0 }
 0xd25   : > { %v6713_v62 = vmax.f32 %v2930_v31, 0.0 }
 0xd26   : > { %4888 = vmatpush3.bf16.msra.mxu1 %v4885_v53  ;;  %v4893_v17 = vpack.c.bf16 %v6711_v6, %v6715_v21 }
 0xd27   : > { %v4889_v61 = vpack.c.bf16 %v6713_v62, %v6709_v60 }
 0xd29   : > { %4890 = vmatprep.subr.bf16.mxu1 %v4889_v61 }
 0xd2a   : > { %4892 = vmatpush3.bf16.msra.mxu1 %v4889_v61 }
 0xd2b   : > { %4894 = vmatprep.subr.bf16.mxu1 %v4893_v17 }
 0xd2e   : > { %4896 = vmatpush3.bf16.msra.mxu1 %v4893_v17 }
 0xd31   : > { %4658 = vmatmul.mubr.f32.vlgmr.msra.gmra.mrb[96].mxu1 %v6721_v44 }
 0xd32   : > { %4660 = vmatprep.mubr.f32.mxu1 %v6724_v13 }
 0xd35   : > { %4661 = vmatmul.mubr.f32.gmra.mrb[98].mxu1 %v6727_v7 }
 0xd36   : > { %4663 = vmatprep.mubr.f32.mxu1 %v6730_v56 }
 0xd39   : > { %4664 = vmatmul.mubr.f32.gmra.mrb[100].mxu1 %v6733_v27 }
 0xd3a   : > { %4666 = vmatprep.mubr.f32.mxu1 %v6736_v32 }
 0xd3d   : > { %4667 = vmatmul.mubr.f32.gmra.mrb[102].mxu1 %v6739_v34 }
 0xd3e   : > { %4669 = vmatprep.mubr.f32.mxu1 %v5229_v57 }
 0xd41   : > { %4670 = vmatmul.mubr.f32.gmra.mrb[104].mxu1 %v6742_v43 }
 0xd42   : > { %4672 = vmatprep.mubr.f32.mxu1 %v6745_v59 }
 0xd45   : > { %4673 = vmatmul.mubr.f32.gmra.mrb[106].mxu1 %v6748_v63 }
 0xd46   : > { %4675 = vmatprep.mubr.f32.mxu1 %v6751_v29 }
 0xd49   : > { %4676 = vmatmul.mubr.f32.gmra.mrb[108].mxu1 %v6754_v10 }
 0xd4a   : > { %4678 = vmatprep.mubr.f32.mxu1 %v6757_v46 }
 0xd4d   : > { %4679 = vmatmul.mubr.f32.gmra.mrb[110].mxu1 %v6760_v37 }
 0xd4e   : > { %4725 = vmatprep.mubr.f32.mxu1 %v5229_v57 }
 0xe04   : > { %v6763_v16 = vpop.f32.mrb[96].mxu1 }
 0xe05   : > { %v3103_v18 = vsub.f32 %v6677_v28, %v6763_v16  ;;  %v6767_v40 = vpop.f32.mrb[97].mxu1 }
 0xe06   : > { %v3102_v9 = vsub.f32 %v6673_v15, %v6767_v40 }
 0xe07   : > { %v3119_v14 = vmul.f32 %v3103_v18, %v3103_v18 }
 0xe08   : > { %v3118_v12 = vmul.f32 %v3102_v9, %v3102_v9  ;;  %v6771_v48 = vpop.f32.mrb[98].mxu1 }
 0xe09   : > { %v3105_v39 = vsub.f32 %v6675_v47, %v6771_v48  ;;  %v6775_v55 = vpop.f32.mrb[99].mxu1 }
 0xe0a   : > { %v4897_v20 = vpack.c.bf16 %v3119_v14, %v3118_v12  ;;  %v3104_v41 = vsub.f32 %v6679_v51, %v6775_v55 }
 0xe0b   : > { %v3121_v1 = vmul.f32 %v3105_v39, %v3105_v39 }
 0xe0c   : > { %v3120_v54 = vmul.f32 %v3104_v41, %v3104_v41  ;;  %v6779_v0 = vpop.f32.mrb[100].mxu1  ;;  %4898 = vmatprep.subr.bf16.mxu0 %v4897_v20  ;;  %4929 = vmatprep.subr.bf16.mxu1 %v4897_v20 }
 0xe0d   : > { %v3107_v3 = vsub.f32 %v6689_v50, %v6779_v0  ;;  %v6783_v33 = vpop.f32.mrb[101].mxu1  ;;  %4900 = vmatpush3.bf16.msra.mxu0 %v4897_v20  ;;  %4937 = vmatpush3.bf16.msra.mxu1 %v4897_v20 }
 0xe0e   : > { %v4901_v36 = vpack.c.bf16 %v3121_v1, %v3120_v54  ;;  %v3106_v52 = vsub.f32 %v6685_v25, %v6783_v33 }
 0xe0f   : > { %v3123_v35 = vmul.f32 %v3107_v3, %v3107_v3 }
 0xe10   : > { %v3122_v58 = vmul.f32 %v3106_v52, %v3106_v52  ;;  %v6787_v23 = vpop.f32.mrb[102].mxu1  ;;  %4902 = vmatprep.subr.bf16.mxu0 %v4901_v36  ;;  %4930 = vmatprep.subr.bf16.mxu1 %v4901_v36 }
 0xe11   : > { %v3109_v22 = vsub.f32 %v6687_v45, %v6787_v23  ;;  %v6791_v53 = vpop.f32.mrb[103].mxu1  ;;  %4904 = vmatpush3.bf16.msra.mxu0 %v4901_v36  ;;  %4938 = vmatpush3.bf16.msra.mxu1 %v4901_v36 }
 0xe12   : > { %v4905_v2 = vpack.c.bf16 %v3123_v35, %v3122_v58  ;;  %v3108_v38 = vsub.f32 %v6691_v42, %v6791_v53 }
 0xe13   : > { %v3125_v5 = vmul.f32 %v3109_v22, %v3109_v22 }
 0xe14   : > { %v3124_v31 = vmul.f32 %v3108_v38, %v3108_v38  ;;  %v6795_v61 = vpop.f32.mrb[104].mxu1  ;;  %4906 = vmatprep.subr.bf16.mxu0 %v4905_v2  ;;  %4931 = vmatprep.subr.bf16.mxu1 %v4905_v2 }
 0xe15   : > { %v3111_v17 = vsub.f32 %v6701_v11, %v6795_v61  ;;  %v6799_v57 = vpop.f32.mrb[105].mxu1  ;;  %4908 = vmatpush3.bf16.msra.mxu0 %v4905_v2  ;;  %4939 = vmatpush3.bf16.msra.mxu1 %v4905_v2 }
 0xe16   : > { %v4909_v18 = vpack.c.bf16 %v3125_v5, %v3124_v31  ;;  %v3110_v9 = vsub.f32 %v6697_v49, %v6799_v57 }
 0xe17   : > { %v3127_v14 = vmul.f32 %v3111_v17, %v3111_v17 }
 0xe18   : > { %v3126_v12 = vmul.f32 %v3110_v9, %v3110_v9  ;;  %v6803_v39 = vpop.f32.mrb[106].mxu1  ;;  %4910 = vmatprep.subr.bf16.mxu0 %v4909_v18  ;;  %4932 = vmatprep.subr.bf16.mxu1 %v4909_v18 }
 0xe19   : > { %v3113_v20 = vsub.f32 %v6699_v8, %v6803_v39  ;;  %v6807_v41 = vpop.f32.mrb[107].mxu1  ;;  %4912 = vmatpush3.bf16.msra.mxu0 %v4909_v18  ;;  %4940 = vmatpush3.bf16.msra.mxu1 %v4909_v18 }
 0xe1a   : > { %v4913_v1 = vpack.c.bf16 %v3127_v14, %v3126_v12  ;;  %v3112_v54 = vsub.f32 %v6703_v26, %v6807_v41 }
 0xe1b   : > { %v3129_v3 = vmul.f32 %v3113_v20, %v3113_v20 }
 0xe1c   : > { %v3128_v36 = vmul.f32 %v3112_v54, %v3112_v54  ;;  %v6811_v52 = vpop.f32.mrb[108].mxu1  ;;  %4914 = vmatprep.subr.bf16.mxu0 %v4913_v1  ;;  %4933 = vmatprep.subr.bf16.mxu1 %v4913_v1 }
 0xe1d   : > { %v3115_v35 = vsub.f32 %v6713_v62, %v6811_v52  ;;  %v6815_v58 = vpop.f32.mrb[109].mxu1  ;;  %4916 = vmatpush3.bf16.msra.mxu0 %v4913_v1  ;;  %4941 = vmatpush3.bf16.msra.mxu1 %v4913_v1 }
 0xe1e   : > { %v4917_v22 = vpack.c.bf16 %v3129_v3, %v3128_v36  ;;  %v3114_v2 = vsub.f32 %v6709_v60, %v6815_v58 }
 0xe1f   : > { %v3131_v38 = vmul.f32 %v3115_v35, %v3115_v35 }
 0xe20   : > { %v3130_v5 = vmul.f32 %v3114_v2, %v3114_v2  ;;  %v6819_v31 = vpop.f32.mrb[110].mxu1  ;;  %4918 = vmatprep.subr.bf16.mxu0 %v4917_v22  ;;  %4934 = vmatprep.subr.bf16.mxu1 %v4917_v22 }
 0xe21   : > { %v3117_v17 = vsub.f32 %v6711_v6, %v6819_v31  ;;  %v6823_v18 = vpop.f32.mrb[111].mxu1  ;;  %4920 = vmatpush3.bf16.msra.mxu0 %v4917_v22  ;;  %4942 = vmatpush3.bf16.msra.mxu1 %v4917_v22 }
 0xe22   : > { %v4921_v9 = vpack.c.bf16 %v3131_v38, %v3130_v5  ;;  %v3116_v14 = vsub.f32 %v6715_v21, %v6823_v18 }
 0xe23   : > { %v3133_v12 = vmul.f32 %v3117_v17, %v3117_v17 }
 0xe24   : > { %v3132_v20 = vmul.f32 %v3116_v14, %v3116_v14  ;;  %4922 = vmatprep.subr.bf16.mxu0 %v4921_v9  ;;  %4935 = vmatprep.subr.bf16.mxu1 %v4921_v9  ;;  %v6843_v14 = vrot.slane %v6667_v24, %v6071_v19 }
 0xe25   : > { %4924 = vmatpush3.bf16.msra.mxu0 %v4921_v9  ;;  %4943 = vmatpush3.bf16.msra.mxu1 %v4921_v9 }
 0xe26   : > { %v4925_v1 = vpack.c.bf16 %v3133_v12, %v3132_v20 }
 0xe28   : > { %4926 = vmatprep.subr.bf16.mxu0 %v4925_v1  ;;  %4936 = vmatprep.subr.bf16.mxu1 %v4925_v1 }
 0xe29   : > { %4928 = vmatpush3.bf16.msra.mxu0 %v4925_v1  ;;  %4944 = vmatpush3.bf16.msra.mxu1 %v4925_v1 }
 0xe2c   : > { %4714 = vmatmul.mubr.f32.vlgmr.msra.gmra.mrb[112].mxu0 %v6721_v44  ;;  %4726 = vmatmul.mubr.f32.vlgmr.msra.gmra.mrb[112].mxu1 %v6742_v43 }
 0xe2d   : > { %4716 = vmatprep.mubr.f32.mxu0 %v6724_v13  ;;  %4728 = vmatprep.mubr.f32.mxu1 %v6745_v59 }
 0xe30   : > { %4717 = vmatmul.mubr.f32.gmra.mrb[114].mxu0 %v6727_v7  ;;  %4729 = vmatmul.mubr.f32.gmra.mrb[114].mxu1 %v6748_v63 }
 0xe31   : > { %4719 = vmatprep.mubr.f32.mxu0 %v6730_v56  ;;  %4731 = vmatprep.mubr.f32.mxu1 %v6751_v29 }
 0xe34   : > { %4720 = vmatmul.mubr.f32.gmra.mrb[116].mxu0 %v6733_v27  ;;  %4732 = vmatmul.mubr.f32.gmra.mrb[116].mxu1 %v6754_v10 }
 0xe35   : > { %4722 = vmatprep.mubr.f32.mxu0 %v6736_v32  ;;  %4734 = vmatprep.mubr.f32.mxu1 %v6757_v46 }
 0xe38   : > { %4723 = vmatmul.mubr.f32.gmra.mrb[118].mxu0 %v6739_v34  ;;  %4735 = vmatmul.mubr.f32.gmra.mrb[118].mxu1 %v6760_v37 }
 0xeff   : > { %v4715_v44 = vpop.f32.mrb[112].mxu0  ;;  %v4727_v13 = vpop.f32.mrb[112].mxu1 }
 0xf00   : > { %v3206_v7 = vadd.f32 1e-05, %v4715_v44  ;;  %v3246_v43 = vadd.f32 1e-05, %v4727_v13  ;;  %v3200_v59 = vpop.f32.mrb[113].mxu0  ;;  %v3240_v56 = vpop.f32.mrb[113].mxu1 }
 0xf01   : > { %v3201_v63 = vadd.f32 1e-05, %v3200_v59  ;;  %v3241_v29 = vadd.f32 1e-05, %v3240_v56  ;;  %v6847_v59 = vrot.slane %v6667_v24, %v6078_v30 }
 0xf02   : > { %5165 = vrsqrt.f32 %v3206_v7 }
 0xf03   : > { %5167 = vrsqrt.f32 %v3246_v43  ;;  %v4718_v27 = vpop.f32.mrb[114].mxu0  ;;  %v4730_v10 = vpop.f32.mrb[114].mxu1 }
 0xf04   : > { %5169 = vrsqrt.f32 %v3201_v63  ;;  %v3216_v32 = vadd.f32 1e-05, %v4718_v27  ;;  %v3256_v54 = vadd.f32 1e-05, %v4730_v10  ;;  %v3210_v46 = vpop.f32.mrb[115].mxu0  ;;  %v3250_v3 = vpop.f32.mrb[115].mxu1 }
 0xf05   : > { %5171 = vrsqrt.f32 %v3241_v29  ;;  %v3211_v34 = vadd.f32 1e-05, %v3210_v46  ;;  %v3251_v37 = vadd.f32 1e-05, %v3250_v3 }
 0xf06   : > { %5173 = vrsqrt.f32 %v3216_v32 }
 0xf07   : > { %5175 = vrsqrt.f32 %v3256_v54  ;;  %v4721_v36 = vpop.f32.mrb[116].mxu0  ;;  %v4733_v35 = vpop.f32.mrb[116].mxu1 }
 0xf08   : > { %5177 = vrsqrt.f32 %v3211_v34  ;;  %v3226_v22 = vadd.f32 1e-05, %v4721_v36  ;;  %v3266_v2 = vadd.f32 1e-05, %v4733_v35  ;;  %v3220_v38 = vpop.f32.mrb[117].mxu0  ;;  %v3260_v5 = vpop.f32.mrb[117].mxu1 }
 0xf09   : > { %5179 = vrsqrt.f32 %v3251_v37  ;;  %v3221_v17 = vadd.f32 1e-05, %v3220_v38  ;;  %v3261_v9 = vadd.f32 1e-05, %v3260_v5 }
 0xf0a   : > { %5181 = vrsqrt.f32 %v3226_v22 }
 0xf0b   : > { %5183 = vrsqrt.f32 %v3266_v2  ;;  %v4724_v12 = vpop.f32.mrb[118].mxu0  ;;  %v4736_v20 = vpop.f32.mrb[118].mxu1 }
 0xf0c   : > { %v5166_v1 = vpop.eup %5165  ;;  %5185 = vrsqrt.f32 %v3221_v17  ;;  %v3236_v44 = vadd.f32 1e-05, %v4724_v12  ;;  %v3276_v13 = vadd.f32 1e-05, %v4736_v20  ;;  %v3230_v7 = vpop.f32.mrb[119].mxu0 }
 0xf0d   : > { %v3270_v43 = vpop.f32.mrb[119].mxu1  ;;  %v5168_v56 = vpop.eup %5167  ;;  %5187 = vrsqrt.f32 %v3261_v9  ;;  %v3231_v63 = vadd.f32 1e-05, %v3230_v7  ;;  %v3300_v19 = vmul.f32 %v5166_v1, %v6843_v14 }
 0xf0e   : > { %v3271_v29 = vadd.f32 1e-05, %v3270_v43  ;;  %v5170_v27 = vpop.eup %5169  ;;  %5189 = vrsqrt.f32 %v3236_v44  ;;  %v3308_v10 = vmul.f32 %v5168_v56, %v6843_v14 }
 0xf0f   : > { %v5172_v32 = vpop.eup %5171  ;;  %5191 = vrsqrt.f32 %v3276_v13  ;;  %v3316_v54 = vmul.f32 %v6763_v16, %v3300_v19  ;;  %v3299_v46 = vmul.f32 %v5170_v27, %v6843_v14  ;;  %v3352_v30 = vmul.f32 %v3300_v19, %v6677_v28 }
 0xf10   : > { %v5174_v3 = vpop.eup %5173  ;;  %5193 = vrsqrt.f32 %v3231_v63  ;;  %v3324_v24 = vmul.f32 %v6795_v61, %v3308_v10  ;;  %v3307_v34 = vmul.f32 %v5172_v32, %v6843_v14  ;;  %v3360_v22 = vmul.f32 %v3308_v10, %v6701_v11 }
 0xf11   : > { %v5176_v37 = vpop.eup %5175  ;;  %5195 = vrsqrt.f32 %v3271_v29  ;;  %v3336_v36 = vsub.f32 %v6847_v59, %v3316_v54  ;;  %v3315_v35 = vmul.f32 %v3299_v46, %v6767_v40  ;;  %v3351_v16 = vmul.f32 %v3299_v46, %v6673_v15 }
 0xf12   : > { %v5178_v2 = vpop.eup %5177  ;;  %v3344_v38 = vsub.f32 %v6847_v59, %v3324_v24  ;;  %v3323_v5 = vmul.f32 %v3307_v34, %v6799_v57  ;;  %v3302_v28 = vmul.f32 %v5174_v3, %v6843_v14  ;;  %v3310_v12 = vmul.f32 %v5176_v37, %v6843_v14 }
 0xf13   : > { %v5180_v61 = vpop.eup %5179  ;;  %v6863_v17 = vadd.f32 %v3352_v30, %v3336_v36  ;;  %v3335_v9 = vsub.f32 %v6847_v59, %v3315_v35  ;;  %v3301_v40 = vmul.f32 %v5178_v2, %v6843_v14  ;;  %v3359_v1 = vmul.f32 %v3307_v34, %v6697_v49 }
 0xf14   : > { %v5182_v20 = vpop.eup %5181  ;;  %v6868_v11 = vadd.f32 %v3360_v22, %v3344_v38  ;;  %v3343_v15 = vsub.f32 %v6847_v59, %v3323_v5  ;;  %v3318_v57 = vmul.f32 %v6771_v48, %v3302_v28  ;;  %v3326_v7 = vmul.f32 %v6803_v39, %v3310_v12 }
 0xf15   : > { %v5184_v44 = vpop.eup %5183  ;;  %3449 = vrot.lane.b32.xlu1 %v6863_v17, %s5504_s20  ;;  %v6875_v13 = vadd.f32 %v3351_v16, %v3335_v9  ;;  %v3354_v29 = vmul.f32 %v3302_v28, %v6675_v47  ;;  %v3309_v49 = vmul.f32 %v5180_v61, %v6843_v14  ;;  %v3362_v27 = vmul.f32 %v3310_v12, %v6699_v8 }
 0xf16   : > { %v5186_v43 = vpop.eup %5185  ;;  %v6878_v56 = vadd.f32 %v3359_v1, %v3343_v15  ;;  %v3338_v63 = vsub.f32 %v6847_v59, %v3318_v57  ;;  %v3346_v48 = vsub.f32 %v6847_v59, %v3326_v7  ;;  %v3317_v10 = vmul.f32 %v3301_v40, %v6775_v55 }
 0xf17   : > { %v5188_v19 = vpop.eup %5187  ;;  %3447 = vrot.lane.b32.xlu0 %v6875_v13, %s5504_s20  ;;  %v3325_v54 = vmul.f32 %v3309_v49, %v6807_v41  ;;  %v3353_v46 = vmul.f32 %v3301_v40, %v6679_v51  ;;  %v3304_v24 = vmul.f32 %v5182_v20, %v6843_v14  ;;  %v3303_v8 = vmul.f32 %v5186_v43, %v6843_v14 }
 0xf18   : > { %v5190_v39 = vpop.eup %5189  ;;  %v6888_v32 = vadd.f32 %v3354_v29, %v3338_v63  ;;  %v6894_v3 = vadd.f32 %v3362_v27, %v3346_v48  ;;  %v3337_v30 = vsub.f32 %v6847_v59, %v3317_v10  ;;  %v3361_v37 = vmul.f32 %v3309_v49, %v6703_v26 }
 0xf19   : > { %v5192_v47 = vpop.eup %5191  ;;  %3465 = vrot.lane.b32.xlu1 %v6868_v11, %s5504_s20  ;;  %v3345_v34 = vsub.f32 %v6847_v59, %v3325_v54  ;;  %v3312_v41 = vmul.f32 %v5184_v44, %v6843_v14  ;;  %v3311_v51 = vmul.f32 %v5188_v19, %v6843_v14  ;;  %v3320_v22 = vmul.f32 %v6779_v0, %v3304_v24 }
 0xf1a   : > { %v5194_v55 = vpop.eup %5193  ;;  %v6905_v35 = vadd.f32 %v3353_v46, %v3337_v30  ;;  %v3319_v16 = vmul.f32 %v3303_v8, %v6783_v33  ;;  %v3356_v5 = vmul.f32 %v3304_v24, %v6689_v50  ;;  %v3355_v28 = vmul.f32 %v3303_v8, %v6685_v25 }
 0xf1b   : > { %v5196_v36 = vpop.eup %5195  ;;  %3463 = vrot.lane.b32.xlu0 %v6878_v56, %s5504_s20  ;;  %v6908_v2 = vadd.f32 %v3361_v37, %v3345_v34  ;;  %v3328_v38 = vmul.f32 %v6811_v52, %v3312_v41  ;;  %v3340_v26 = vsub.f32 %v6847_v59, %v3320_v22  ;;  %v3327_v61 = vmul.f32 %v3311_v51, %v6815_v58 }
 0xf1c   : > { %v3339_v9 = vsub.f32 %v6847_v59, %v3319_v16  ;;  %v3364_v0 = vmul.f32 %v3312_v41, %v6713_v62  ;;  %v3363_v40 = vmul.f32 %v3311_v51, %v6709_v60  ;;  %v3306_v52 = vmul.f32 %v5190_v39, %v6843_v14 }
 0xf1d   : > { %v3348_v12 = vsub.f32 %v6847_v59, %v3328_v38  ;;  %v6920_v20 = vadd.f32 %v3356_v5, %v3340_v26  ;;  %v3347_v33 = vsub.f32 %v6847_v59, %v3327_v61  ;;  %v3305_v50 = vmul.f32 %v5194_v55, %v6843_v14 }
 0xf1e   : > { %v6925_v15 = vadd.f32 %v3355_v28, %v3339_v9  ;;  %v3313_v58 = vmul.f32 %v5196_v36, %v6843_v14  ;;  %v3314_v1 = vmul.f32 %v5192_v47, %v6843_v14  ;;  %v3322_v60 = vmul.f32 %v6787_v23, %v3306_v52 }
 0xf1f   : > { %v6927_v25 = vadd.f32 %v3364_v0, %v3348_v12  ;;  %v6931_v57 = vadd.f32 %v3363_v40, %v3347_v33  ;;  %v3321_v62 = vmul.f32 %v3305_v50, %v6791_v53  ;;  %v3358_v7 = vmul.f32 %v3306_v52, %v6687_v45 }
 0xf20   : > { %v3342_v44 = vsub.f32 %v6847_v59, %v3322_v60  ;;  %v3329_v43 = vmul.f32 %v3313_v58, %v6823_v18  ;;  %v3357_v29 = vmul.f32 %v3305_v50, %v6691_v42  ;;  %v3330_v49 = vmul.f32 %v6819_v31, %v3314_v1 }
 0xf21   : > { %v3341_v63 = vsub.f32 %v6847_v59, %v3321_v62  ;;  %v3365_v23 = vmul.f32 %v3313_v58, %v6715_v21  ;;  %v3366_v45 = vmul.f32 %v3314_v1, %v6711_v6  ;;  %v3383_v42 = vsel %vm1380_vm0, %v6875_v13, -inf }
 0xf22   : > { %v6941_v19 = vadd.f32 %v3358_v7, %v3342_v44  ;;  %v3349_v14 = vsub.f32 %v6847_v59, %v3329_v43  ;;  %v3350_v53 = vsub.f32 %v6847_v59, %v3330_v49  ;;  %v3384_v31 = vsel %vm1380_vm0, %v6863_v17, -inf  ;;  %v6962_v59 = vpop.xlane.xlu1 %1403  ;;  %v6972_v17 = vpop.xlane.xlu0 %1399 }
 0xf23   : > { %v6945_v48 = vadd.f32 %v3357_v29, %v3341_v63  ;;  %v3391_v21 = vsel %vm1380_vm0, %v6878_v56, -inf  ;;  %v3392_v6 = vsel %vm1380_vm0, %v6868_v11, -inf  ;;  %v3386_v13 = vsel %vm1380_vm0, %v6888_v32, -inf }
 0xf24   : > { %v6949_v27 = vadd.f32 %v3365_v23, %v3349_v14  ;;  %v6951_v18 = vadd.f32 %v3366_v45, %v3350_v53  ;;  %v3385_v16 = vsel %vm1380_vm0, %v6905_v35, -inf  ;;  %v3394_v26 = vsel %vm1380_vm0, %v6894_v3, -inf }
 0xf25   : > { %v3393_v28 = vsel %vm1380_vm0, %v6908_v2, -inf  ;;  %v3387_v23 = vsel %vm1380_vm0, %v6925_v15, -inf  ;;  %v3388_v45 = vsel %vm1380_vm0, %v6920_v20, -inf }
 0xf26   : > { %v6970_v10 = vpop.xlane.xlu1 %1401  ;;  %v6976_v56 = vpop.xlane.xlu0 %1397 }
 0xf2a   : > { %v6974_v39 = vpop.xlane.xlu1 %1407  ;;  %v6980_v46 = vpop.xlane.xlu0 %1405 }
 0xf2e   : > { %v6978_v54 = vpop.xlane.xlu1 %1411  ;;  %v6988_v47 = vpop.xlane.xlu0 %1409 }
 0xf32   : > { %v6984_v11 = vpop.xlane.xlu1 %1415  ;;  %v6994_v24 = vpop.xlane.xlu0 %1413 }
 0xf36   : > { %v6992_v30 = vpop.xlane.xlu1 %1419  ;;  %v6998_v55 = vpop.xlane.xlu0 %1417 }
 0xf3a   : > { %3399 = vmax.xlane.f32.xlu0 %v3383_v42  ;;  %v6996_v8 = vpop.xlane.xlu1 %1423  ;;  %v3395_v42 = vsel %vm1380_vm0, %v6931_v57, -inf }
 0xf3d   : > { %3401 = vmax.xlane.f32.xlu1 %v3384_v31 }
 0xf3e   : > { %3415 = vmax.xlane.f32.xlu0 %v3391_v21  ;;  %v7000_v34 = vpop.xlane.xlu1 %1427 }
 0xf3f   : > { %7380 = vst [vmem:[#allocation39_spill] sm:$0xff] %v7000_v34 }
 0xf41   : > { %3417 = vmax.xlane.f32.xlu1 %v3392_v6 }
 0xf42   : > { %3405 = vmax.xlane.f32.xlu0 %v3386_v13  ;;  %v7004_v37 = vpop.permute.xlu1 %2424 }
 0xf46   : > { %v7008_v51 = vpop.xlane.xlu1 %2376 }
 0xf4a   : > { %v7010_v22 = vpop.permute.xlu1 %2428 }
 0xf4e   : > { %v7018_v5 = vpop.xlane.xlu1 %2380 }
 0xf52   : > { %3453 = vrot.lane.b32.xlu1 %v6888_v32, %s5504_s20  ;;  %v7002_v32 = vpop.xlane.xlu0 %1421  ;;  %v7025_v9 = vpop.permute.xlu1 %2426 }
 0xf56   : > { %3469 = vrot.lane.b32.xlu1 %v6894_v3, %s5504_s20  ;;  %v7006_v41 = vpop.xlane.xlu0 %1425  ;;  %v7029_v0 = vpop.permute.xlu1 %2432 }
 0xf57   : > { %7381 = vst [vmem:[#allocation40_spill] sm:$0xff] %v7006_v41 }
 0xf58   : > { %3467 = vrot.lane.b32.xlu0 %v6908_v2, %s5504_s20 }
 0xf5a   : > { %v2423_v36 = vpop.permute.xlu0 %2422  ;;  %v7033_v33 = vpop.xlane.xlu1 %2384 }
 0xf5e   : > { %v2375_v38 = vpop.xlane.xlu0 %2374  ;;  %v7041_v2 = vpop.permute.xlu1 %2436 }
 0xf62   : > { %v7023_v61 = vpop.xlane.xlu0 %2378  ;;  %v7049_v50 = vpop.xlane.xlu1 %2388 }
 0xf66   : > { %v7027_v12 = vpop.permute.xlu0 %2430  ;;  %v2441_v58 = vpop.permute.xlu1 %2440 }
 0xf6a   : > { %v7031_v40 = vpop.xlane.xlu0 %2382  ;;  %v2393_v60 = vpop.xlane.xlu1 %2392 }
 0xf6e   : > { %v7037_v3 = vpop.permute.xlu0 %2434  ;;  %v7055_v44 = vpop.permute.xlu1 %2444 }
 0xf72   : > { %v7043_v52 = vpop.xlane.xlu0 %2386  ;;  %v7059_v43 = vpop.xlane.xlu1 %2396 }
 0xf76   : > { %v7063_v29 = vpop.permute.xlu1 %2448 }
 0xf77   : > { %3403 = vmax.xlane.f32.xlu0 %v3385_v16 }
 0xf7a   : > { %3421 = vmax.xlane.f32.xlu1 %v3394_v26  ;;  %v7067_v14 = vpop.xlane.xlu1 %2400  ;;  %v2406_v26 = vmax.f32 %v6976_v56, %v2375_v38 }
 0xf7b   : > { %3419 = vmax.xlane.f32.xlu0 %v3393_v28 }
 0xf7e   : > { %v7080_v31 = vpop.permute.xlu1 %2452 }
 0xf7f   : > { %7383 = vst [vmem:[#allocation42_spill] sm:$0xff] %v7080_v31  ;;  %v2407_v31 = vmax.f32 %v6972_v17, %v7008_v51  ;;  %v2415_v17 = vmax.f32 %v6984_v11, %v2393_v60 }
 0xf82   : > { %v7087_v6 = vpop.xlane.xlu1 %2404 }
 0xf83   : > { %7385 = vst [vmem:[#allocation44_spill] sm:$0xff] %v7087_v6 }
 0xf87   : > { %v3450_v16 = vpop.permute.xlu1 %3449 }
 0xf8b   : > { %3451 = vrot.lane.b32.xlu1 %v6905_v35, %s5504_s20  ;;  %v2439_v35 = vpop.permute.xlu0 %2438  ;;  %v3466_v28 = vpop.permute.xlu1 %3465 }
 0xf8f   : > { %3457 = vrot.lane.b32.xlu1 %v6920_v20, %s5504_s20  ;;  %v2391_v1 = vpop.xlane.xlu0 %2390 }
 0xf90   : > { %v2414_v6 = vmax.f32 %v6994_v24, %v2391_v1 }
 0xf91   : > { %3455 = vrot.lane.b32.xlu0 %v6925_v15, %s5504_s20  ;;  %v3396_v15 = vsel %vm1380_vm0, %v6927_v25, -inf }
 0xf93   : > { %3473 = vrot.lane.b32.xlu1 %v6927_v25, %s5504_s20  ;;  %v7053_v62 = vpop.permute.xlu0 %2442 }
 0xf95   : > { %3471 = vrot.lane.b32.xlu0 %v6931_v57, %s5504_s20 }
 0xf97   : > { %v7057_v7 = vpop.xlane.xlu0 %2394 }
 0xf9b   : > { %v7061_v63 = vpop.permute.xlu0 %2446 }
 0xf9f   : > { %v7065_v49 = vpop.xlane.xlu0 %2398 }
 0xfa3   : > { %v7072_v53 = vpop.permute.xlu0 %2450 }
 0xfa4   : > { %7382 = vst [vmem:[#allocation41_spill] sm:$0xff] %v7072_v53  ;;  %v7388_v53 = vld [vmem:[#allocation32_spill] sm:$0xff] }
 0xfa7   : > { %v7082_v21 = vpop.xlane.xlu0 %2402 }
 0xfa8   : > { %7384 = vst [vmem:[#allocation43_spill] sm:$0xff] %v7082_v21 }
 0xfab   : > { %v3448_v13 = vpop.permute.xlu0 %3447 }
 0xfaf   : > { %v3464_v20 = vpop.permute.xlu0 %3463 }
 0xfb4   : > { %3407 = vmax.xlane.f32.xlu0 %v3387_v23  ;;  %v7386_v23 = vld [vmem:[#allocation24_spill] sm:$0xff] }
 0xfb5   : > { %v2454_v57 = vadd.f32 %v2423_v36, %v7386_v23  ;;  %v2462_v36 = vadd.f32 %v2439_v35, %v7388_v53 }
 0xfb7   : > { %3409 = vmax.xlane.f32.xlu1 %v3388_v45  ;;  %v3479_v25 = vadd.f32 %v3448_v13, %v2454_v57  ;;  %v3487_v51 = vadd.f32 %v3464_v20, %v2462_v36  ;;  %v7390_v13 = vld [vmem:[#allocation25_spill] sm:$0xff] }
 0xfb8   : > { %3423 = vmax.xlane.f32.xlu0 %v3395_v42 }
 0xfbb   : > { %3425 = vmax.xlane.f32.xlu1 %v3396_v15  ;;  %v7387_v15 = vld [vmem:[#allocation23_spill] sm:$0xff] }
 0xfbc   : > { %v2455_v34 = vadd.f32 %v7004_v37, %v7387_v15  ;;  %v7389_v37 = vld [vmem:[#allocation31_spill] sm:$0xff]  ;;  %v3398_v15 = vsel %vm1380_vm0, %v6951_v18, -inf }
 0xfbd   : > { %v2463_v35 = vadd.f32 %v2441_v58, %v7389_v37 }
 0xfc7   : > { %v3400_v45 = vpop.xlane.xlu0 %3399 }
 0xfc8   : > { %v3431_v42 = vmax.f32 %v2406_v26, %v3400_v45  ;;  %v3480_v26 = vadd.f32 %v3450_v16, %v2455_v34  ;;  %v2409_v34 = vmax.f32 %v6962_v59, %v7018_v5  ;;  %v2457_v59 = vadd.f32 %v7010_v22, %v7390_v13 }
 0xfc9   : > { %v3390_v22 = vsel %vm1380_vm0, %v6941_v19, -inf }
 0xfca   : > { %v3496_v56 = vsel %vm3495_vm1, %v3431_v42, 0.0  ;;  %v3402_v38 = vpop.xlane.xlu1 %3401 }
 0xfcb   : > { %v3512_v23 = vadd.f32 %v3496_v56, %v3479_v25  ;;  %v3432_v41 = vmax.f32 %v2407_v31, %v3402_v38  ;;  %v3416_v21 = vpop.xlane.xlu0 %3415  ;;  %v3397_v25 = vsel %vm1380_vm0, %v6949_v27, -inf }
 0xfcc   : > { %v3439_v45 = vmax.f32 %v2414_v6, %v3416_v21  ;;  %3461 = vrot.lane.b32.xlu1 %v6941_v19, %s5504_s20  ;;  %v3488_v6 = vadd.f32 %v3466_v28, %v2463_v35  ;;  %v3389_v28 = vsel %vm1380_vm0, %v6945_v48, -inf  ;;  %v2417_v19 = vmax.f32 %v6992_v30, %v7059_v43 }
 0xfcd   : > { %3528 = vst [vmem:[%s7105_s14] sm:$0xff] %v3512_v23  ;;  %v3497_v24 = vsel %vm3495_vm1, %v3432_v41, 0.0  ;;  %v2416_v23 = vmax.f32 %v6998_v55, %v7057_v7 }
 0xfce   : > { %v3513_v1 = vadd.f32 %v3497_v24, %v3480_v26  ;;  %v3504_v11 = vsel %vm3495_vm1, %v3439_v45, 0.0  ;;  %3459 = vrot.lane.b32.xlu0 %v6945_v48, %s5504_s20  ;;  %v3418_v60 = vpop.xlane.xlu1 %3417  ;;  %v2408_v48 = vmax.f32 %v6970_v10, %v7023_v61  ;;  %v7391_v26 = vld [vmem:[#allocation33_spill] sm:$0xff] }
 0xfcf   : > { %v3520_v53 = vadd.f32 %v3504_v11, %v3487_v51  ;;  %v3440_v31 = vmax.f32 %v2415_v17, %v3418_v60  ;;  %v3406_v21 = vpop.xlane.xlu0 %3405  ;;  %v2465_v45 = vadd.f32 %v7055_v44, %v7391_v26  ;;  %v7392_v51 = vld [vmem:[#allocation34_spill] sm:$0xff] }
 0xfd0   : > { %3529 = vst [vmem:[%s7105_s14 + $0x8] sm:$0xff] %v3513_v1  ;;  %v3434_v41 = vmax.f32 %v2409_v34, %v3406_v21  ;;  %v7393_v34 = vld [vmem:[#allocation26_spill] sm:$0xff]  ;;  %v2410_v21 = vmax.f32 %v6980_v46, %v7031_v40 }
 0xfd1   : > { %3536 = vst [vmem:[%s7105_s14 + $0x40] sm:$0xff] %v3520_v53  ;;  %v3505_v5 = vsel %vm3495_vm1, %v3440_v31, 0.0  ;;  %v2456_v55 = vadd.f32 %v7025_v9, %v7393_v34 }
 0xfd2   : > { %v3521_v58 = vadd.f32 %v3505_v5, %v3488_v6  ;;  %v3454_v16 = vpop.permute.xlu1 %3453  ;;  %v3499_v57 = vsel %vm3495_vm1, %v3434_v41, 0.0  ;;  %v7394_v41 = vld [vmem:[#allocation27_spill] sm:$0xff] }
 0xfd3   : > { %v3482_v20 = vadd.f32 %v3454_v16, %v2457_v59  ;;  %v3468_v56 = vpop.permute.xlu0 %3467  ;;  %v2458_v13 = vadd.f32 %v7027_v12, %v7394_v41 }
 0xfd4   : > { %3537 = vst [vmem:[%s7105_s14 + $0x48] sm:$0xff] %v3521_v58  ;;  %v2411_v58 = vmax.f32 %v6974_v39, %v7033_v33 }
 0xfd5   : > { %v3515_v42 = vadd.f32 %v3499_v57, %v3482_v20  ;;  %v7395_v20 = vld [vmem:[#allocation28_spill] sm:$0xff] }
 0xfd6   : > { %v3470_v38 = vpop.permute.xlu1 %3469  ;;  %v2459_v57 = vadd.f32 %v7029_v0, %v7395_v20  ;;  %v2419_v0 = vmax.f32 %v6996_v8, %v7067_v14 }
 0xfd7   : > { %3531 = vst [vmem:[%s7105_s14 + $0x18] sm:$0xff] %v3515_v42  ;;  %v3490_v43 = vadd.f32 %v3470_v38, %v2465_v45  ;;  %v2418_v42 = vmax.f32 %v7002_v32, %v7065_v49  ;;  %v7397_v49 = vld [vmem:[#allocation35_spill] sm:$0xff] }
 0xfd8   : > { %v2467_v38 = vadd.f32 %v7063_v29, %v7397_v49  ;;  %v2412_v29 = vmax.f32 %v6988_v47, %v7043_v52  ;;  %v7401_v47 = vld [vmem:[#allocation40_spill] sm:$0xff] }
 0xfed   : > { %3411 = vmax.xlane.f32.xlu0 %v3389_v28  ;;  %v7396_v28 = vld [vmem:[#allocation36_spill] sm:$0xff] }
 0xfee   : > { %v2466_v12 = vadd.f32 %v7061_v63, %v7396_v28 }
 0xff0   : > { %3413 = vmax.xlane.f32.xlu1 %v3390_v22 }
 0xff1   : > { %3427 = vmax.xlane.f32.xlu0 %v3397_v25 }
 0xff4   : > { %3429 = vmax.xlane.f32.xlu1 %v3398_v15 }
0x1004   : > { %v3404_v36 = vpop.xlane.xlu0 %3403 }
0x1005   : > { %3477 = vrot.lane.b32.xlu1 %v6951_v18, %s5504_s20  ;;  %v2464_v18 = vadd.f32 %v7053_v62, %v7392_v51  ;;  %v3433_v10 = vmax.f32 %v2408_v48, %v3404_v36  ;;  %v7398_v51 = vld [vmem:[#allocation30_spill] sm:$0xff] }
0x1007   : > { %3475 = vrot.lane.b32.xlu0 %v6949_v27, %s5504_s20  ;;  %v3422_v17 = vpop.xlane.xlu1 %3421  ;;  %v3489_v7 = vadd.f32 %v3468_v56, %v2464_v18  ;;  %v3498_v11 = vsel %vm3495_vm1, %v3433_v10, 0.0  ;;  %v2460_v18 = vadd.f32 %v7037_v3, %v7398_v51 }
0x1008   : > { %v3442_v24 = vmax.f32 %v2417_v19, %v3422_v17  ;;  %v3420_v30 = vpop.xlane.xlu0 %3419 }
0x1009   : > { %v3441_v61 = vmax.f32 %v2416_v23, %v3420_v30 }
0x100a   : > { %v3507_v44 = vsel %vm3495_vm1, %v3442_v24, 0.0 }
0x100b   : > { %v3523_v27 = vadd.f32 %v3507_v44, %v3490_v43  ;;  %v3506_v37 = vsel %vm3495_vm1, %v3441_v61, 0.0  ;;  %v3452_v35 = vpop.permute.xlu1 %3451  ;;  %v2413_v43 = vmax.f32 %v6978_v54, %v7049_v50  ;;  %v7399_v61 = vld [vmem:[#allocation29_spill] sm:$0xff]  ;;  %v7400_v44 = vld [vmem:[#allocation43_spill] sm:$0xff] }
0x100c   : > { %v3522_v62 = vadd.f32 %v3506_v37, %v3489_v7  ;;  %v3481_v1 = vadd.f32 %v3452_v35, %v2456_v55  ;;  %v3456_v53 = vpop.permute.xlu0 %3455  ;;  %v2461_v34 = vadd.f32 %v7041_v2, %v7399_v61  ;;  %v2420_v52 = vmax.f32 %v7401_v47, %v7400_v44  ;;  %v7402_v2 = vld [vmem:[#allocation38_spill] sm:$0xff] }
0x100d   : > { %3539 = vst [vmem:[%s7105_s14 + $0x58] sm:$0xff] %v3523_v27  ;;  %v3483_v16 = vadd.f32 %v3456_v53, %v2458_v13  ;;  %v7406_v13 = vld [vmem:[#allocation37_spill] sm:$0xff] }
0x100e   : > { %3538 = vst [vmem:[%s7105_s14 + $0x50] sm:$0xff] %v3522_v62  ;;  %v3514_v60 = vadd.f32 %v3498_v11, %v3481_v1  ;;  %v7403_v62 = vld [vmem:[#allocation41_spill] sm:$0xff]  ;;  %v7404_v11 = vld [vmem:[#allocation44_spill] sm:$0xff] }
0x100f   : > { %v3458_v9 = vpop.permute.xlu1 %3457  ;;  %v2468_v1 = vadd.f32 %v7403_v62, %v7402_v2 }
0x1010   : > { %3530 = vst [vmem:[%s7105_s14 + $0x10] sm:$0xff] %v3514_v60  ;;  %v3472_v31 = vpop.permute.xlu0 %3471  ;;  %v3484_v39 = vadd.f32 %v3458_v9, %v2459_v57  ;;  %v7405_v60 = vld [vmem:[#allocation39_spill] sm:$0xff] }
0x1011   : > { %v3491_v56 = vadd.f32 %v3472_v31, %v2466_v12  ;;  %v2421_v53 = vmax.f32 %v7405_v60, %v7404_v11 }
0x1013   : > { %v3474_v6 = vpop.permute.xlu1 %3473 }
0x1014   : > { %v3492_v26 = vadd.f32 %v3474_v6, %v2467_v38 }
0x1041   : > { %v3408_v59 = vpop.xlane.xlu0 %3407 }
0x1042   : > { %v3435_v5 = vmax.f32 %v2410_v21, %v3408_v59  ;;  %v7407_v59 = vld [vmem:[#allocation42_spill] sm:$0xff] }
0x1044   : > { %v3500_v46 = vsel %vm3495_vm1, %v3435_v5, 0.0  ;;  %v3410_v40 = vpop.xlane.xlu1 %3409  ;;  %v2469_v5 = vadd.f32 %v7407_v59, %v7406_v13 }
0x1045   : > { %v3516_v22 = vadd.f32 %v3500_v46, %v3483_v16  ;;  %v3436_v25 = vmax.f32 %v2411_v58, %v3410_v40  ;;  %v3424_v15 = vpop.xlane.xlu0 %3423 }
0x1046   : > { %v3443_v33 = vmax.f32 %v2418_v42, %v3424_v15 }
0x1047   : > { %3532 = vst [vmem:[%s7105_s14 + $0x20] sm:$0xff] %v3516_v22  ;;  %v3501_v32 = vsel %vm3495_vm1, %v3436_v25, 0.0 }
0x1048   : > { %v3517_v63 = vadd.f32 %v3501_v32, %v3484_v39  ;;  %v3508_v36 = vsel %vm3495_vm1, %v3443_v33, 0.0  ;;  %v3426_v19 = vpop.xlane.xlu1 %3425 }
0x1049   : > { %v3524_v48 = vadd.f32 %v3508_v36, %v3491_v56  ;;  %v3444_v23 = vmax.f32 %v2419_v0, %v3426_v19  ;;  %v3460_v45 = vpop.permute.xlu0 %3459 }
0x104a   : > { %3533 = vst [vmem:[%s7105_s14 + $0x28] sm:$0xff] %v3517_v63  ;;  %v3485_v10 = vadd.f32 %v3460_v45, %v2460_v18 }
0x104b   : > { %3540 = vst [vmem:[%s7105_s14 + $0x60] sm:$0xff] %v3524_v48  ;;  %v3509_v8 = vsel %vm3495_vm1, %v3444_v23, 0.0 }
0x104c   : > { %v3525_v14 = vadd.f32 %v3509_v8, %v3492_v26  ;;  %v3462_v17 = vpop.permute.xlu1 %3461 }
0x104d   : > { %v3486_v35 = vadd.f32 %v3462_v17, %v2461_v34 }
0x104e   : > { %3541 = vst [vmem:[%s7105_s14 + $0x68] sm:$0xff] %v3525_v14 }
0x107a   : > { %v3412_v24 = vpop.xlane.xlu0 %3411 }
0x107b   : > { %v3437_v30 = vmax.f32 %v2412_v29, %v3412_v24 }
0x107d   : > { %v3502_v55 = vsel %vm3495_vm1, %v3437_v30, 0.0  ;;  %v3414_v7 = vpop.xlane.xlu1 %3413 }
0x107e   : > { %v3518_v27 = vadd.f32 %v3502_v55, %v3485_v10  ;;  %v3438_v37 = vmax.f32 %v2413_v43, %v3414_v7  ;;  %v3428_v3 = vpop.xlane.xlu0 %3427 }
0x107f   : > { %v3445_v50 = vmax.f32 %v2420_v52, %v3428_v3 }
0x1080   : > { %3534 = vst [vmem:[%s7105_s14 + $0x30] sm:$0xff] %v3518_v27  ;;  %v3503_v54 = vsel %vm3495_vm1, %v3438_v37, 0.0 }
0x1081   : > { %v3519_v9 = vadd.f32 %v3503_v54, %v3486_v35  ;;  %v3430_v31 = vpop.xlane.xlu1 %3429  ;;  %v3510_v58 = vsel %vm3495_vm1, %v3445_v50, 0.0 }
0x1082   : > { %v3476_v21 = vpop.permute.xlu0 %3475  ;;  %v3446_v6 = vmax.f32 %v2421_v53, %v3430_v31 }
0x1083   : > { %3535 = vst [vmem:[%s7105_s14 + $0x38] sm:$0xff] %v3519_v9  ;;  %v3493_v41 = vadd.f32 %v3476_v21, %v2468_v1 }
0x1084   : > { %v3511_v42 = vsel %vm3495_vm1, %v3446_v6, 0.0 }
0x1085   : > { %v3526_v16 = vadd.f32 %v3510_v58, %v3493_v41  ;;  %v3478_v20 = vpop.permute.xlu1 %3477 }
0x1086   : > { %v3494_v57 = vadd.f32 %v3478_v20, %v2469_v5 }
0x1087   : > { %3542 = vst [vmem:[%s7105_s14 + $0x70] sm:$0xff] %v3526_v16 }
0x1088   : > { %v3527_v46 = vadd.f32 %v3511_v42, %v3494_v57 }
0x108a   : > { %3543 = vst [vmem:[%s7105_s14 + $0x78] sm:$0xff] %v3527_v46 }
0x108b   : > { %5422 = shalt.err (!%p5419_p4)
}
0x108c   : > { %s5423_s12 = scalar_lea.hbm %s7224_s16, 2048  ;;  %s5427_s3 = scalar_lea.hbm %s7277_s6, 4096 }
0x108d   : > { %p5424_p11 = scmp.ne.s32.totalorder %s7224_s16, %s5423_s12  ;;  %p5428_p1 = scmp.lt.u32.totalorder %s7224_s16, %s7277_s6 }
0x108e   : > { %p5429_p2 = scmp.lt.u32.totalorder %s5427_s3, %s5423_s12  ;;  %p5431_p0 = scmp.lt.u32.totalorder %s5423_s12, %s7224_s16 }
0x108f   : > { %p5425_p7 = pnand %p5424_p11, %p5721_p3 }
0x1090   : > { %p5430_p13 = por %p5429_p2, %p5428_p1 }
0x1091   : > { %p5426_p12 = pneg %p5425_p7 }
0x1092   : > { %p5432_p6 = por %p5431_p0, %p5430_p13 }
0x1094   : > { %p5433_p8 = pnand %p5432_p6, %p5426_p12 }
0x1096   : > { %5436 = shalt.err (!%p5433_p8)
}
0x1097   : > { %s5506_s29 = smov 128   ;;  %s5507_s11 = smov 8  }
0x1098   : > { %4965 = dma.vmem_to_hbm [thread:$0]  (%p5721_p3), %s7226_s2, 2048, %s7224_s16, %s3545_s25, %s5506_s29, %s5506_s29, %s5507_s11  }
0x1099 PF: > { %s3573_s27 = sand.u32 1, %s5479_s21   ;;  %p7408_p10 = scmp.ne.s32.totalorder %s7319_s28, 0 }
0x109a   : > { %p7409_p5 = scmp.ge.s32.totalorder %s5491_s24, 2  ;;  %s3574_s20 = scalar_lea.sflag [#allocation4], %s3573_s27 }
0x109c   : > { %p4988_p9 = pnand %p7409_p5, %p7408_p10 }
0x109e   : > { %5474 = dma.done.wait (!%p4988_p9), %s3574_s20, 2048  }
0x109f   : > { %5476 = vsyncadd (!%p4988_p9), %s3574_s20, 4294965248  ;;  %s7410_s14 = sld [smem:[#allocation20_spill]]  ;;  %p24_p4 = scmp.ge.s32.totalorder %s5708_s8, 4  }
0x10a0   : > { %s7411_s21 = smov %s5483_s22  ;;  %s7412_s22 = smov %s5487_s23 }
0x10a1   : > { %s7414_s24 = smov %s5708_s8  ;;  %26 = sbr.rel (!%p24_p4) target bundleno = 15 (0xf), region = 124 }
0x10a5   : > { %s7413_s23 = smov %s7410_s14 }
0x10a8   :  { %3579 = vsyncpa [#allocation3], 1 }
0x10a9   :  { %3581 = vsyncpa [#allocation3 + $0x1], 1 }
0x10aa   :  { %3582 = vsyncpa [#allocation6], 1 }
0x10ab   :  { %3584 = vsyncpa [#allocation6 + $0x1], 1 }
0x10ac   :  { %3585 = vsyncpa [#allocation9], 1 }
0x10ad   :  { %3586 = vsyncpa [#allocation12], 1 }
0x10ae   :  { %3587 = vsyncpa [#allocation4], 1 }
0x10af   :  { %3589 = vsyncpa [#allocation4 + $0x1], 1 }

</bundles_post_ra>
